<compile_context>
chip_gen: v5e
topology: v5e:2x2
jax: 0.10.0
libtpu: 0.0.40
codegen_flags: <defaults>
</compile_context>

<pallas_src>
import math
import functools

import jax
import jax.numpy as jnp
from jax import lax
from jax.experimental import pallas as pl
from jax.experimental.pallas import tpu as pltpu

jax.config.update("jax_default_matmul_precision", "float32")

LN_EPS = 1e-5  # nn.LayerNorm default


def _gelu_exact(x):
    # torch.nn.GELU default (erf formulation); also what F.gelu uses inside
    # nn.TransformerEncoderLayer(activation='gelu').
    return 0.5 * x * (1.0 + lax.erf(x * (1.0 / math.sqrt(2.0))))


def _layernorm(x, gamma, beta):
    mean = jnp.mean(x, axis=-1, keepdims=True)
    var = jnp.mean((x - mean) ** 2, axis=-1, keepdims=True)
    return (x - mean) * lax.rsqrt(var + LN_EPS) * gamma + beta


def _make_block_kernel(n_layers, n_head):
    """Fused kernel: n_layers encoder layers + residual + downsampling FClayer."""

    def kernel(*refs):
        x_ref = refs[0]
        z_ref = refs[-2]
        d_ref = refs[-1]
        w_refs = refs[1:-2]

        x = x_ref[0].astype(jnp.float32)          # (S, D)
        D = x.shape[-1]
        Dh = D // n_head
        scale = 1.0 / math.sqrt(Dh)

        h = x
        idx = 0
        for _ in range(n_layers):
            (wq, wk, wv, bq, bk, bv, wo, bo,
             g1, be1, w1, b1, w2, b2, g2, be2) = w_refs[idx: idx + 16]
            idx += 16

            # ---- multi-head self-attention (eval: attn dropout = identity) ----
            q = jnp.dot(h, wq[...], preferred_element_type=jnp.float32) + bq[...]
            k = jnp.dot(h, wk[...], preferred_element_type=jnp.float32) + bk[...]
            v = jnp.dot(h, wv[...], preferred_element_type=jnp.float32) + bv[...]

            wo_full = wo[...]
            attn = None
            for hh in range(n_head):
                sl = slice(hh * Dh, (hh + 1) * Dh)
                qh, kh, vh = q[:, sl], k[:, sl], v[:, sl]
                # scores = qh @ kh^T  (trans_b contraction, no explicit transpose)
                s = lax.dot_general(qh, kh, (((1,), (1,)), ((), ())),
                                    preferred_element_type=jnp.float32) * scale
                s = s - jnp.max(s, axis=-1, keepdims=True)
                p = jnp.exp(s)
                p = p / jnp.sum(p, axis=-1, keepdims=True)
                oh = jnp.dot(p, vh, preferred_element_type=jnp.float32)
                # fold out-projection per head: avoids a lane-axis concat
                contrib = jnp.dot(oh, wo_full[hh * Dh:(hh + 1) * Dh, :],
                                  preferred_element_type=jnp.float32)
                attn = contrib if attn is None else attn + contrib
            attn = attn + bo[...]

            h = _layernorm(h + attn, g1[...], be1[...])

            # ---- feed-forward ----
            ff = _gelu_exact(
                jnp.dot(h, w1[...], preferred_element_type=jnp.float32) + b1[...])
            ff = jnp.dot(ff, w2[...], preferred_element_type=jnp.float32) + b2[...]
            h = _layernorm(h + ff, g2[...], be2[...])

        # ---- TransformerBlock residual: z = encoder(x) + x ----
        z = h + x
        z_ref[0] = z.astype(z_ref.dtype)

        # ---- DownSampling FClayer: Linear -> GELU -> LayerNorm (dropout=0) ----
        wd, bd, gd, bed = w_refs[idx: idx + 4]
        d = _gelu_exact(
            jnp.dot(z, wd[...], preferred_element_type=jnp.float32) + bd[...])
        d = _layernorm(d, gd[...], bed[...])
        d_ref[0] = d.astype(d_ref.dtype)

    return kernel


def _const_spec(arr):
    shape = arr.shape
    n = len(shape)
    return pl.BlockSpec(shape, lambda b, _n=n: (0,) * _n)


def transformer_block_forward(x, params, *, n_head):
    """x: (B, S, D) float32. Returns (z: (B,S,D), down: (B,S,D//2))."""
    B, S, D = x.shape
    layers = params["layers"]
    down = params["down"]
    n_layers = len(layers)
    D_half = down[0].shape[1]

    flat_weights = []
    for layer in layers:
        flat_weights.extend(layer)
    flat_weights.extend(down)

    in_specs = [pl.BlockSpec((1, S, D), lambda b: (b, 0, 0))]
    in_specs += [_const_spec(w) for w in flat_weights]

    out_specs = (pl.BlockSpec((1, S, D), lambda b: (b, 0, 0)),
                 pl.BlockSpec((1, S, D_half), lambda b: (b, 0, 0)))
    out_shape = (jax.ShapeDtypeStruct((B, S, D), jnp.float32),
                 jax.ShapeDtypeStruct((B, S, D_half), jnp.float32))

    kernel = _make_block_kernel(n_layers, n_head)

    z, d = pl.pallas_call(
        kernel,
        grid=(B,),
        in_specs=in_specs,
        out_specs=out_specs,
        out_shape=out_shape,
        compiler_params=pltpu.CompilerParams(
            dimension_semantics=("parallel",)),
    )(x, *flat_weights)
    return z, d


def init_transformer_block_params(key, n_hidden, n_head, n_layers, dim_feedforward):
    def uniform(k, shape, bound):
        return jax.random.uniform(k, shape, jnp.float32, -bound, bound)

    layers = []
    for i in range(n_layers):
        ks = jax.random.split(jax.random.fold_in(key, i), 12)
        bd = 1.0 / math.sqrt(n_hidden)
        wq = uniform(ks[0], (n_hidden, n_hidden), bd)
        wk = uniform(ks[1], (n_hidden, n_hidden), bd)
        wv = uniform(ks[2], (n_hidden, n_hidden), bd)
        bq = uniform(ks[3], (1, n_hidden), bd)
        bk = uniform(ks[4], (1, n_hidden), bd)
        bv = uniform(ks[5], (1, n_hidden), bd)
        wo = uniform(ks[6], (n_hidden, n_hidden), bd)
        bo = uniform(ks[7], (1, n_hidden), bd)
        g1 = jnp.ones((1, n_hidden), jnp.float32)
        be1 = jnp.zeros((1, n_hidden), jnp.float32)
        w1 = uniform(ks[8], (n_hidden, dim_feedforward), bd)
        b1 = uniform(ks[9], (1, dim_feedforward), bd)
        bdf = 1.0 / math.sqrt(dim_feedforward)
        w2 = uniform(ks[10], (dim_feedforward, n_hidden), bdf)
        b2 = uniform(ks[11], (1, n_hidden), bdf)
        g2 = jnp.ones((1, n_hidden), jnp.float32)
        be2 = jnp.zeros((1, n_hidden), jnp.float32)
        layers.append((wq, wk, wv, bq, bk, bv, wo, bo,
                       g1, be1, w1, b1, w2, b2, g2, be2))

    kd1, kd2 = jax.random.split(jax.random.fold_in(key, 10_000))
    half = n_hidden // 2
    bdh = 1.0 / math.sqrt(n_hidden)
    wd = uniform(kd1, (n_hidden, half), bdh)
    bdown = uniform(kd2, (1, half), bdh)
    gd = jnp.ones((1, half), jnp.float32)
    bed = jnp.zeros((1, half), jnp.float32)

    return {"layers": layers, "down": (wd, bdown, gd, bed)}


def _reference(x, params, *, n_head):
    """Pure-JAX reference (batched einsum formulation, independent of the kernel)."""
    B, S, D = x.shape
    Dh = D // n_head
    h = x
    for (wq, wk, wv, bq, bk, bv, wo, bo,
         g1, be1, w1, b1, w2, b2, g2, be2) in params["layers"]:
        q = (h @ wq + bq).reshape(B, S, n_head, Dh)
        k = (h @ wk + bk).reshape(B, S, n_head, Dh)
        v = (h @ wv + bv).reshape(B, S, n_head, Dh)
        s = jnp.einsum('bqhd,bkhd->bhqk', q, k) / math.sqrt(Dh)
        p = jax.nn.softmax(s, axis=-1)
        attn = jnp.einsum('bhqk,bkhd->bqhd', p, v).reshape(B, S, D)
        attn = attn @ wo + bo
        h = _layernorm(h + attn, g1, be1)
        ff = _gelu_exact(h @ w1 + b1) @ w2 + b2
        h = _layernorm(h + ff, g2, be2)
    z = h + x
    wd, bdown, gd, bed = params["down"]
    d = _layernorm(_gelu_exact(z @ wd + bdown), gd, bed)
    return z, d


if __name__ == "__main__":
    key = jax.random.PRNGKey(0)
    B, S = 2, 8
    n_hidden, n_head, n_layers, dim_ff = 64, 4, 2, 128

    kx, kp = jax.random.split(key)
    x = jax.random.normal(kx, (B, S, n_hidden), jnp.float32)
    params = init_transformer_block_params(kp, n_hidden, n_head, n_layers, dim_ff)

    fwd = jax.jit(functools.partial(transformer_block_forward, n_head=n_head))
    z, down = fwd(x, params)
    z = jax.block_until_ready(z)
    down = jax.block_until_ready(down)

    z_ref, d_ref = _reference(x, params, n_head=n_head)

    assert z.shape == (B, S, n_hidden)
    assert down.shape == (B, S, n_hidden // 2)
    assert jnp.allclose(z, z_ref, atol=1e-3, rtol=1e-3), float(jnp.max(jnp.abs(z - z_ref)))
    assert jnp.allclose(down, d_ref, atol=1e-3, rtol=1e-3), float(jnp.max(jnp.abs(down - d_ref)))

    print("KERNEL_OK")
</pallas_src>

<mosaic_0001>
module attributes {stable_mosaic.version = 11 : i64} {
  func.func @kernel(%arg0: i32, %arg1: memref<1x8x64xf32, #tpu.memory_space<vmem>>, %arg2: memref<64x64xf32, #tpu.memory_space<vmem>>, %arg3: memref<64x64xf32, #tpu.memory_space<vmem>>, %arg4: memref<64x64xf32, #tpu.memory_space<vmem>>, %arg5: memref<1x64xf32, #tpu.memory_space<vmem>>, %arg6: memref<1x64xf32, #tpu.memory_space<vmem>>, %arg7: memref<1x64xf32, #tpu.memory_space<vmem>>, %arg8: memref<64x64xf32, #tpu.memory_space<vmem>>, %arg9: memref<1x64xf32, #tpu.memory_space<vmem>>, %arg10: memref<1x64xf32, #tpu.memory_space<vmem>>, %arg11: memref<1x64xf32, #tpu.memory_space<vmem>>, %arg12: memref<64x128xf32, #tpu.memory_space<vmem>>, %arg13: memref<1x128xf32, #tpu.memory_space<vmem>>, %arg14: memref<128x64xf32, #tpu.memory_space<vmem>>, %arg15: memref<1x64xf32, #tpu.memory_space<vmem>>, %arg16: memref<1x64xf32, #tpu.memory_space<vmem>>, %arg17: memref<1x64xf32, #tpu.memory_space<vmem>>, %arg18: memref<64x64xf32, #tpu.memory_space<vmem>>, %arg19: memref<64x64xf32, #tpu.memory_space<vmem>>, %arg20: memref<64x64xf32, #tpu.memory_space<vmem>>, %arg21: memref<1x64xf32, #tpu.memory_space<vmem>>, %arg22: memref<1x64xf32, #tpu.memory_space<vmem>>, %arg23: memref<1x64xf32, #tpu.memory_space<vmem>>, %arg24: memref<64x64xf32, #tpu.memory_space<vmem>>, %arg25: memref<1x64xf32, #tpu.memory_space<vmem>>, %arg26: memref<1x64xf32, #tpu.memory_space<vmem>>, %arg27: memref<1x64xf32, #tpu.memory_space<vmem>>, %arg28: memref<64x128xf32, #tpu.memory_space<vmem>>, %arg29: memref<1x128xf32, #tpu.memory_space<vmem>>, %arg30: memref<128x64xf32, #tpu.memory_space<vmem>>, %arg31: memref<1x64xf32, #tpu.memory_space<vmem>>, %arg32: memref<1x64xf32, #tpu.memory_space<vmem>>, %arg33: memref<1x64xf32, #tpu.memory_space<vmem>>, %arg34: memref<64x32xf32, #tpu.memory_space<vmem>>, %arg35: memref<1x32xf32, #tpu.memory_space<vmem>>, %arg36: memref<1x32xf32, #tpu.memory_space<vmem>>, %arg37: memref<1x32xf32, #tpu.memory_space<vmem>>, %arg38: memref<1x8x64xf32, #tpu.memory_space<vmem>>, %arg39: memref<1x8x32xf32, #tpu.memory_space<vmem>>) attributes {dimension_semantics = [#tpu.dimension_semantics<parallel>], iteration_bounds = array<i64: 2>, scalar_prefetch = 0 : i64, scratch_operands = 0 : i64, tpu.core_type = #tpu.core_type<tc>, window_params = [{transform_indices = @transform_0, window_bounds = array<i64: 1, 8, 64>}, {pipeline_mode = #tpu.pipeline_mode<synchronous>, transform_indices = @transform_1, window_bounds = array<i64: 64, 64>}, {pipeline_mode = #tpu.pipeline_mode<synchronous>, transform_indices = @transform_2, window_bounds = array<i64: 64, 64>}, {pipeline_mode = #tpu.pipeline_mode<synchronous>, transform_indices = @transform_3, window_bounds = array<i64: 64, 64>}, {pipeline_mode = #tpu.pipeline_mode<synchronous>, transform_indices = @transform_4, window_bounds = array<i64: 1, 64>}, {pipeline_mode = #tpu.pipeline_mode<synchronous>, transform_indices = @transform_5, window_bounds = array<i64: 1, 64>}, {pipeline_mode = #tpu.pipeline_mode<synchronous>, transform_indices = @transform_6, window_bounds = array<i64: 1, 64>}, {pipeline_mode = #tpu.pipeline_mode<synchronous>, transform_indices = @transform_7, window_bounds = array<i64: 64, 64>}, {pipeline_mode = #tpu.pipeline_mode<synchronous>, transform_indices = @transform_8, window_bounds = array<i64: 1, 64>}, {pipeline_mode = #tpu.pipeline_mode<synchronous>, transform_indices = @transform_9, window_bounds = array<i64: 1, 64>}, {pipeline_mode = #tpu.pipeline_mode<synchronous>, transform_indices = @transform_10, window_bounds = array<i64: 1, 64>}, {pipeline_mode = #tpu.pipeline_mode<synchronous>, transform_indices = @transform_11, window_bounds = array<i64: 64, 128>}, {pipeline_mode = #tpu.pipeline_mode<synchronous>, transform_indices = @transform_12, window_bounds = array<i64: 1, 128>}, {pipeline_mode = #tpu.pipeline_mode<synchronous>, transform_indices = @transform_13, window_bounds = array<i64: 128, 64>}, {pipeline_mode = #tpu.pipeline_mode<synchronous>, transform_indices = @transform_14, window_bounds = array<i64: 1, 64>}, {pipeline_mode = #tpu.pipeline_mode<synchronous>, transform_indices = @transform_15, window_bounds = array<i64: 1, 64>}, {pipeline_mode = #tpu.pipeline_mode<synchronous>, transform_indices = @transform_16, window_bounds = array<i64: 1, 64>}, {pipeline_mode = #tpu.pipeline_mode<synchronous>, transform_indices = @transform_17, window_bounds = array<i64: 64, 64>}, {pipeline_mode = #tpu.pipeline_mode<synchronous>, transform_indices = @transform_18, window_bounds = array<i64: 64, 64>}, {pipeline_mode = #tpu.pipeline_mode<synchronous>, transform_indices = @transform_19, window_bounds = array<i64: 64, 64>}, {pipeline_mode = #tpu.pipeline_mode<synchronous>, transform_indices = @transform_20, window_bounds = array<i64: 1, 64>}, {pipeline_mode = #tpu.pipeline_mode<synchronous>, transform_indices = @transform_21, window_bounds = array<i64: 1, 64>}, {pipeline_mode = #tpu.pipeline_mode<synchronous>, transform_indices = @transform_22, window_bounds = array<i64: 1, 64>}, {pipeline_mode = #tpu.pipeline_mode<synchronous>, transform_indices = @transform_23, window_bounds = array<i64: 64, 64>}, {pipeline_mode = #tpu.pipeline_mode<synchronous>, transform_indices = @transform_24, window_bounds = array<i64: 1, 64>}, {pipeline_mode = #tpu.pipeline_mode<synchronous>, transform_indices = @transform_25, window_bounds = array<i64: 1, 64>}, {pipeline_mode = #tpu.pipeline_mode<synchronous>, transform_indices = @transform_26, window_bounds = array<i64: 1, 64>}, {pipeline_mode = #tpu.pipeline_mode<synchronous>, transform_indices = @transform_27, window_bounds = array<i64: 64, 128>}, {pipeline_mode = #tpu.pipeline_mode<synchronous>, transform_indices = @transform_28, window_bounds = array<i64: 1, 128>}, {pipeline_mode = #tpu.pipeline_mode<synchronous>, transform_indices = @transform_29, window_bounds = array<i64: 128, 64>}, {pipeline_mode = #tpu.pipeline_mode<synchronous>, transform_indices = @transform_30, window_bounds = array<i64: 1, 64>}, {pipeline_mode = #tpu.pipeline_mode<synchronous>, transform_indices = @transform_31, window_bounds = array<i64: 1, 64>}, {pipeline_mode = #tpu.pipeline_mode<synchronous>, transform_indices = @transform_32, window_bounds = array<i64: 1, 64>}, {pipeline_mode = #tpu.pipeline_mode<synchronous>, transform_indices = @transform_33, window_bounds = array<i64: 64, 32>}, {pipeline_mode = #tpu.pipeline_mode<synchronous>, transform_indices = @transform_34, window_bounds = array<i64: 1, 32>}, {pipeline_mode = #tpu.pipeline_mode<synchronous>, transform_indices = @transform_35, window_bounds = array<i64: 1, 32>}, {pipeline_mode = #tpu.pipeline_mode<synchronous>, transform_indices = @transform_36, window_bounds = array<i64: 1, 32>}, {transform_indices = @transform_37, window_bounds = array<i64: 1, 8, 64>}, {transform_indices = @transform_38, window_bounds = array<i64: 1, 8, 32>}]} {
    %c0 = arith.constant 0 : index
    %c0_0 = arith.constant 0 : index
    %c0_1 = arith.constant 0 : index
    %0 = vector.load %arg1[%c0, %c0_0, %c0_1] : memref<1x8x64xf32, #tpu.memory_space<vmem>>, vector<1x8x64xf32>
    %1 = vector.shape_cast %0 : vector<1x8x64xf32> to vector<8x64xf32>
    %c0_2 = arith.constant 0 : index
    %c0_3 = arith.constant 0 : index
    %2 = vector.load %arg2[%c0_2, %c0_3] : memref<64x64xf32, #tpu.memory_space<vmem>>, vector<64x64xf32>
    %cst = arith.constant dense<0.000000e+00> : vector<8x64xf32>
    %3 = tpu.matmul %1, %2, %cst {dimension_numbers = #tpu.dot_dimension_numbers<[1], [0], [0], [1], [0, 0, 1, 1], [], []>, precision = #tpu.contract_precision<fp32>} : vector<8x64xf32>, vector<64x64xf32>, vector<8x64xf32> -> vector<8x64xf32>
    %c0_4 = arith.constant 0 : index
    %c0_5 = arith.constant 0 : index
    %4 = vector.load %arg5[%c0_4, %c0_5] : memref<1x64xf32, #tpu.memory_space<vmem>>, vector<1x64xf32>
    %5 = vector.broadcast %4 : vector<1x64xf32> to vector<8x64xf32>
    %6 = arith.addf %3, %5 : vector<8x64xf32>
    %c0_6 = arith.constant 0 : index
    %c0_7 = arith.constant 0 : index
    %7 = vector.load %arg3[%c0_6, %c0_7] : memref<64x64xf32, #tpu.memory_space<vmem>>, vector<64x64xf32>
    %cst_8 = arith.constant dense<0.000000e+00> : vector<8x64xf32>
    %8 = tpu.matmul %1, %7, %cst_8 {dimension_numbers = #tpu.dot_dimension_numbers<[1], [0], [0], [1], [0, 0, 1, 1], [], []>, precision = #tpu.contract_precision<fp32>} : vector<8x64xf32>, vector<64x64xf32>, vector<8x64xf32> -> vector<8x64xf32>
    %c0_9 = arith.constant 0 : index
    %c0_10 = arith.constant 0 : index
    %9 = vector.load %arg6[%c0_9, %c0_10] : memref<1x64xf32, #tpu.memory_space<vmem>>, vector<1x64xf32>
    %10 = vector.broadcast %9 : vector<1x64xf32> to vector<8x64xf32>
    %11 = arith.addf %8, %10 : vector<8x64xf32>
    %c0_11 = arith.constant 0 : index
    %c0_12 = arith.constant 0 : index
    %12 = vector.load %arg4[%c0_11, %c0_12] : memref<64x64xf32, #tpu.memory_space<vmem>>, vector<64x64xf32>
    %cst_13 = arith.constant dense<0.000000e+00> : vector<8x64xf32>
    %13 = tpu.matmul %1, %12, %cst_13 {dimension_numbers = #tpu.dot_dimension_numbers<[1], [0], [0], [1], [0, 0, 1, 1], [], []>, precision = #tpu.contract_precision<fp32>} : vector<8x64xf32>, vector<64x64xf32>, vector<8x64xf32> -> vector<8x64xf32>
    %c0_14 = arith.constant 0 : index
    %c0_15 = arith.constant 0 : index
    %14 = vector.load %arg7[%c0_14, %c0_15] : memref<1x64xf32, #tpu.memory_space<vmem>>, vector<1x64xf32>
    %15 = vector.broadcast %14 : vector<1x64xf32> to vector<8x64xf32>
    %16 = arith.addf %13, %15 : vector<8x64xf32>
    %c0_16 = arith.constant 0 : index
    %c0_17 = arith.constant 0 : index
    %17 = vector.load %arg8[%c0_16, %c0_17] : memref<64x64xf32, #tpu.memory_space<vmem>>, vector<64x64xf32>
    %18 = vector.extract_strided_slice %6 {offsets = [0, 0], sizes = [8, 16], strides = [1, 1]} : vector<8x64xf32> to vector<8x16xf32>
    %19 = vector.extract_strided_slice %11 {offsets = [0, 0], sizes = [8, 16], strides = [1, 1]} : vector<8x64xf32> to vector<8x16xf32>
    %20 = vector.extract_strided_slice %16 {offsets = [0, 0], sizes = [8, 16], strides = [1, 1]} : vector<8x64xf32> to vector<8x16xf32>
    %cst_18 = arith.constant dense<0.000000e+00> : vector<8x8xf32>
    %21 = tpu.matmul %18, %19, %cst_18 {dimension_numbers = #tpu.dot_dimension_numbers<[1], [1], [0], [0], [0, 0, 1, 0], [], []>, precision = #tpu.contract_precision<fp32>} : vector<8x16xf32>, vector<8x16xf32>, vector<8x8xf32> -> vector<8x8xf32>
    %cst_19 = arith.constant 2.500000e-01 : f32
    %22 = vector.broadcast %cst_19 : f32 to vector<8x8xf32>
    %23 = arith.mulf %21, %22 : vector<8x8xf32>
    %cst_20 = arith.constant dense<0xFF800000> : vector<8xf32>
    %24 = vector.multi_reduction <maximumf>, %23, %cst_20 [1] : vector<8x8xf32> to vector<8xf32>
    %25 = vector.shape_cast %24 : vector<8xf32> to vector<8x1xf32>
    %26 = vector.broadcast %25 : vector<8x1xf32> to vector<8x8xf32>
    %27 = arith.subf %23, %26 : vector<8x8xf32>
    %28 = math.exp %27 : vector<8x8xf32>
    %cst_21 = arith.constant dense<0.000000e+00> : vector<8xf32>
    %29 = vector.multi_reduction <add>, %28, %cst_21 [1] : vector<8x8xf32> to vector<8xf32>
    %30 = vector.shape_cast %29 : vector<8xf32> to vector<8x1xf32>
    %31 = vector.broadcast %30 : vector<8x1xf32> to vector<8x8xf32>
    %32 = arith.divf %28, %31 : vector<8x8xf32>
    %cst_22 = arith.constant dense<0.000000e+00> : vector<8x16xf32>
    %33 = tpu.matmul %32, %20, %cst_22 {dimension_numbers = #tpu.dot_dimension_numbers<[1], [0], [0], [1], [0, 0, 1, 1], [], []>, precision = #tpu.contract_precision<fp32>} : vector<8x8xf32>, vector<8x16xf32>, vector<8x16xf32> -> vector<8x16xf32>
    %34 = vector.extract_strided_slice %17 {offsets = [0, 0], sizes = [16, 64], strides = [1, 1]} : vector<64x64xf32> to vector<16x64xf32>
    %cst_23 = arith.constant dense<0.000000e+00> : vector<8x64xf32>
    %35 = tpu.matmul %33, %34, %cst_23 {dimension_numbers = #tpu.dot_dimension_numbers<[1], [0], [0], [1], [0, 0, 1, 1], [], []>, precision = #tpu.contract_precision<fp32>} : vector<8x16xf32>, vector<16x64xf32>, vector<8x64xf32> -> vector<8x64xf32>
    %36 = vector.extract_strided_slice %6 {offsets = [0, 16], sizes = [8, 16], strides = [1, 1]} : vector<8x64xf32> to vector<8x16xf32>
    %37 = vector.extract_strided_slice %11 {offsets = [0, 16], sizes = [8, 16], strides = [1, 1]} : vector<8x64xf32> to vector<8x16xf32>
    %38 = vector.extract_strided_slice %16 {offsets = [0, 16], sizes = [8, 16], strides = [1, 1]} : vector<8x64xf32> to vector<8x16xf32>
    %cst_24 = arith.constant dense<0.000000e+00> : vector<8x8xf32>
    %39 = tpu.matmul %36, %37, %cst_24 {dimension_numbers = #tpu.dot_dimension_numbers<[1], [1], [0], [0], [0, 0, 1, 0], [], []>, precision = #tpu.contract_precision<fp32>} : vector<8x16xf32>, vector<8x16xf32>, vector<8x8xf32> -> vector<8x8xf32>
    %cst_25 = arith.constant 2.500000e-01 : f32
    %40 = vector.broadcast %cst_25 : f32 to vector<8x8xf32>
    %41 = arith.mulf %39, %40 : vector<8x8xf32>
    %cst_26 = arith.constant dense<0xFF800000> : vector<8xf32>
    %42 = vector.multi_reduction <maximumf>, %41, %cst_26 [1] : vector<8x8xf32> to vector<8xf32>
    %43 = vector.shape_cast %42 : vector<8xf32> to vector<8x1xf32>
    %44 = vector.broadcast %43 : vector<8x1xf32> to vector<8x8xf32>
    %45 = arith.subf %41, %44 : vector<8x8xf32>
    %46 = math.exp %45 : vector<8x8xf32>
    %cst_27 = arith.constant dense<0.000000e+00> : vector<8xf32>
    %47 = vector.multi_reduction <add>, %46, %cst_27 [1] : vector<8x8xf32> to vector<8xf32>
    %48 = vector.shape_cast %47 : vector<8xf32> to vector<8x1xf32>
    %49 = vector.broadcast %48 : vector<8x1xf32> to vector<8x8xf32>
    %50 = arith.divf %46, %49 : vector<8x8xf32>
    %cst_28 = arith.constant dense<0.000000e+00> : vector<8x16xf32>
    %51 = tpu.matmul %50, %38, %cst_28 {dimension_numbers = #tpu.dot_dimension_numbers<[1], [0], [0], [1], [0, 0, 1, 1], [], []>, precision = #tpu.contract_precision<fp32>} : vector<8x8xf32>, vector<8x16xf32>, vector<8x16xf32> -> vector<8x16xf32>
    %52 = vector.extract_strided_slice %17 {offsets = [16, 0], sizes = [16, 64], strides = [1, 1]} : vector<64x64xf32> to vector<16x64xf32>
    %cst_29 = arith.constant dense<0.000000e+00> : vector<8x64xf32>
    %53 = tpu.matmul %51, %52, %cst_29 {dimension_numbers = #tpu.dot_dimension_numbers<[1], [0], [0], [1], [0, 0, 1, 1], [], []>, precision = #tpu.contract_precision<fp32>} : vector<8x16xf32>, vector<16x64xf32>, vector<8x64xf32> -> vector<8x64xf32>
    %54 = arith.addf %35, %53 : vector<8x64xf32>
    %55 = vector.extract_strided_slice %6 {offsets = [0, 32], sizes = [8, 16], strides = [1, 1]} : vector<8x64xf32> to vector<8x16xf32>
    %56 = vector.extract_strided_slice %11 {offsets = [0, 32], sizes = [8, 16], strides = [1, 1]} : vector<8x64xf32> to vector<8x16xf32>
    %57 = vector.extract_strided_slice %16 {offsets = [0, 32], sizes = [8, 16], strides = [1, 1]} : vector<8x64xf32> to vector<8x16xf32>
    %cst_30 = arith.constant dense<0.000000e+00> : vector<8x8xf32>
    %58 = tpu.matmul %55, %56, %cst_30 {dimension_numbers = #tpu.dot_dimension_numbers<[1], [1], [0], [0], [0, 0, 1, 0], [], []>, precision = #tpu.contract_precision<fp32>} : vector<8x16xf32>, vector<8x16xf32>, vector<8x8xf32> -> vector<8x8xf32>
    %cst_31 = arith.constant 2.500000e-01 : f32
    %59 = vector.broadcast %cst_31 : f32 to vector<8x8xf32>
    %60 = arith.mulf %58, %59 : vector<8x8xf32>
    %cst_32 = arith.constant dense<0xFF800000> : vector<8xf32>
    %61 = vector.multi_reduction <maximumf>, %60, %cst_32 [1] : vector<8x8xf32> to vector<8xf32>
    %62 = vector.shape_cast %61 : vector<8xf32> to vector<8x1xf32>
    %63 = vector.broadcast %62 : vector<8x1xf32> to vector<8x8xf32>
    %64 = arith.subf %60, %63 : vector<8x8xf32>
    %65 = math.exp %64 : vector<8x8xf32>
    %cst_33 = arith.constant dense<0.000000e+00> : vector<8xf32>
    %66 = vector.multi_reduction <add>, %65, %cst_33 [1] : vector<8x8xf32> to vector<8xf32>
    %67 = vector.shape_cast %66 : vector<8xf32> to vector<8x1xf32>
    %68 = vector.broadcast %67 : vector<8x1xf32> to vector<8x8xf32>
    %69 = arith.divf %65, %68 : vector<8x8xf32>
    %cst_34 = arith.constant dense<0.000000e+00> : vector<8x16xf32>
    %70 = tpu.matmul %69, %57, %cst_34 {dimension_numbers = #tpu.dot_dimension_numbers<[1], [0], [0], [1], [0, 0, 1, 1], [], []>, precision = #tpu.contract_precision<fp32>} : vector<8x8xf32>, vector<8x16xf32>, vector<8x16xf32> -> vector<8x16xf32>
    %71 = vector.extract_strided_slice %17 {offsets = [32, 0], sizes = [16, 64], strides = [1, 1]} : vector<64x64xf32> to vector<16x64xf32>
    %cst_35 = arith.constant dense<0.000000e+00> : vector<8x64xf32>
    %72 = tpu.matmul %70, %71, %cst_35 {dimension_numbers = #tpu.dot_dimension_numbers<[1], [0], [0], [1], [0, 0, 1, 1], [], []>, precision = #tpu.contract_precision<fp32>} : vector<8x16xf32>, vector<16x64xf32>, vector<8x64xf32> -> vector<8x64xf32>
    %73 = arith.addf %54, %72 : vector<8x64xf32>
    %74 = vector.extract_strided_slice %6 {offsets = [0, 48], sizes = [8, 16], strides = [1, 1]} : vector<8x64xf32> to vector<8x16xf32>
    %75 = vector.extract_strided_slice %11 {offsets = [0, 48], sizes = [8, 16], strides = [1, 1]} : vector<8x64xf32> to vector<8x16xf32>
    %76 = vector.extract_strided_slice %16 {offsets = [0, 48], sizes = [8, 16], strides = [1, 1]} : vector<8x64xf32> to vector<8x16xf32>
    %cst_36 = arith.constant dense<0.000000e+00> : vector<8x8xf32>
    %77 = tpu.matmul %74, %75, %cst_36 {dimension_numbers = #tpu.dot_dimension_numbers<[1], [1], [0], [0], [0, 0, 1, 0], [], []>, precision = #tpu.contract_precision<fp32>} : vector<8x16xf32>, vector<8x16xf32>, vector<8x8xf32> -> vector<8x8xf32>
    %cst_37 = arith.constant 2.500000e-01 : f32
    %78 = vector.broadcast %cst_37 : f32 to vector<8x8xf32>
    %79 = arith.mulf %77, %78 : vector<8x8xf32>
    %cst_38 = arith.constant dense<0xFF800000> : vector<8xf32>
    %80 = vector.multi_reduction <maximumf>, %79, %cst_38 [1] : vector<8x8xf32> to vector<8xf32>
    %81 = vector.shape_cast %80 : vector<8xf32> to vector<8x1xf32>
    %82 = vector.broadcast %81 : vector<8x1xf32> to vector<8x8xf32>
    %83 = arith.subf %79, %82 : vector<8x8xf32>
    %84 = math.exp %83 : vector<8x8xf32>
    %cst_39 = arith.constant dense<0.000000e+00> : vector<8xf32>
    %85 = vector.multi_reduction <add>, %84, %cst_39 [1] : vector<8x8xf32> to vector<8xf32>
    %86 = vector.shape_cast %85 : vector<8xf32> to vector<8x1xf32>
    %87 = vector.broadcast %86 : vector<8x1xf32> to vector<8x8xf32>
    %88 = arith.divf %84, %87 : vector<8x8xf32>
    %cst_40 = arith.constant dense<0.000000e+00> : vector<8x16xf32>
    %89 = tpu.matmul %88, %76, %cst_40 {dimension_numbers = #tpu.dot_dimension_numbers<[1], [0], [0], [1], [0, 0, 1, 1], [], []>, precision = #tpu.contract_precision<fp32>} : vector<8x8xf32>, vector<8x16xf32>, vector<8x16xf32> -> vector<8x16xf32>
    %90 = vector.extract_strided_slice %17 {offsets = [48, 0], sizes = [16, 64], strides = [1, 1]} : vector<64x64xf32> to vector<16x64xf32>
    %cst_41 = arith.constant dense<0.000000e+00> : vector<8x64xf32>
    %91 = tpu.matmul %89, %90, %cst_41 {dimension_numbers = #tpu.dot_dimension_numbers<[1], [0], [0], [1], [0, 0, 1, 1], [], []>, precision = #tpu.contract_precision<fp32>} : vector<8x16xf32>, vector<16x64xf32>, vector<8x64xf32> -> vector<8x64xf32>
    %92 = arith.addf %73, %91 : vector<8x64xf32>
    %c0_42 = arith.constant 0 : index
    %c0_43 = arith.constant 0 : index
    %93 = vector.load %arg9[%c0_42, %c0_43] : memref<1x64xf32, #tpu.memory_space<vmem>>, vector<1x64xf32>
    %94 = vector.broadcast %93 : vector<1x64xf32> to vector<8x64xf32>
    %95 = arith.addf %92, %94 : vector<8x64xf32>
    %96 = arith.addf %1, %95 : vector<8x64xf32>
    %c0_44 = arith.constant 0 : index
    %c0_45 = arith.constant 0 : index
    %97 = vector.load %arg10[%c0_44, %c0_45] : memref<1x64xf32, #tpu.memory_space<vmem>>, vector<1x64xf32>
    %c0_46 = arith.constant 0 : index
    %c0_47 = arith.constant 0 : index
    %98 = vector.load %arg11[%c0_46, %c0_47] : memref<1x64xf32, #tpu.memory_space<vmem>>, vector<1x64xf32>
    %cst_48 = arith.constant dense<0.000000e+00> : vector<8xf32>
    %99 = vector.multi_reduction <add>, %96, %cst_48 [1] : vector<8x64xf32> to vector<8xf32>
    %100 = vector.shape_cast %99 : vector<8xf32> to vector<8x1xf32>
    %cst_49 = arith.constant 6.400000e+01 : f32
    %101 = vector.broadcast %cst_49 : f32 to vector<8x1xf32>
    %102 = arith.divf %100, %101 : vector<8x1xf32>
    %103 = vector.broadcast %102 : vector<8x1xf32> to vector<8x64xf32>
    %104 = arith.subf %96, %103 : vector<8x64xf32>
    %105 = arith.mulf %104, %104 : vector<8x64xf32>
    %cst_50 = arith.constant dense<0.000000e+00> : vector<8xf32>
    %106 = vector.multi_reduction <add>, %105, %cst_50 [1] : vector<8x64xf32> to vector<8xf32>
    %107 = vector.shape_cast %106 : vector<8xf32> to vector<8x1xf32>
    %cst_51 = arith.constant 6.400000e+01 : f32
    %108 = vector.broadcast %cst_51 : f32 to vector<8x1xf32>
    %109 = arith.divf %107, %108 : vector<8x1xf32>
    %110 = vector.broadcast %102 : vector<8x1xf32> to vector<8x64xf32>
    %111 = arith.subf %96, %110 : vector<8x64xf32>
    %cst_52 = arith.constant 9.99999974E-6 : f32
    %112 = vector.broadcast %cst_52 : f32 to vector<8x1xf32>
    %113 = arith.addf %109, %112 : vector<8x1xf32>
    %114 = math.rsqrt %113 : vector<8x1xf32>
    %115 = vector.broadcast %114 : vector<8x1xf32> to vector<8x64xf32>
    %116 = arith.mulf %111, %115 : vector<8x64xf32>
    %117 = vector.broadcast %97 : vector<1x64xf32> to vector<8x64xf32>
    %118 = arith.mulf %116, %117 : vector<8x64xf32>
    %119 = vector.broadcast %98 : vector<1x64xf32> to vector<8x64xf32>
    %120 = arith.addf %118, %119 : vector<8x64xf32>
    %c0_53 = arith.constant 0 : index
    %c0_54 = arith.constant 0 : index
    %121 = vector.load %arg12[%c0_53, %c0_54] : memref<64x128xf32, #tpu.memory_space<vmem>>, vector<64x128xf32>
    %cst_55 = arith.constant dense<0.000000e+00> : vector<8x128xf32>
    %122 = tpu.matmul %120, %121, %cst_55 {dimension_numbers = #tpu.dot_dimension_numbers<[1], [0], [0], [1], [0, 0, 1, 1], [], []>, precision = #tpu.contract_precision<fp32>} : vector<8x64xf32>, vector<64x128xf32>, vector<8x128xf32> -> vector<8x128xf32>
    %c0_56 = arith.constant 0 : index
    %c0_57 = arith.constant 0 : index
    %123 = vector.load %arg13[%c0_56, %c0_57] : memref<1x128xf32, #tpu.memory_space<vmem>>, vector<1x128xf32>
    %124 = vector.broadcast %123 : vector<1x128xf32> to vector<8x128xf32>
    %125 = arith.addf %122, %124 : vector<8x128xf32>
    %cst_58 = arith.constant 5.000000e-01 : f32
    %126 = vector.broadcast %cst_58 : f32 to vector<8x128xf32>
    %127 = arith.mulf %126, %125 : vector<8x128xf32>
    %cst_59 = arith.constant 0.707106769 : f32
    %128 = vector.broadcast %cst_59 : f32 to vector<8x128xf32>
    %129 = arith.mulf %125, %128 : vector<8x128xf32>
    %130 = math.erf %129 : vector<8x128xf32>
    %cst_60 = arith.constant 1.000000e+00 : f32
    %131 = vector.broadcast %cst_60 : f32 to vector<8x128xf32>
    %132 = arith.addf %131, %130 : vector<8x128xf32>
    %133 = arith.mulf %127, %132 : vector<8x128xf32>
    %c0_61 = arith.constant 0 : index
    %c0_62 = arith.constant 0 : index
    %134 = vector.load %arg14[%c0_61, %c0_62] : memref<128x64xf32, #tpu.memory_space<vmem>>, vector<128x64xf32>
    %cst_63 = arith.constant dense<0.000000e+00> : vector<8x64xf32>
    %135 = tpu.matmul %133, %134, %cst_63 {dimension_numbers = #tpu.dot_dimension_numbers<[1], [0], [0], [1], [0, 0, 1, 1], [], []>, precision = #tpu.contract_precision<fp32>} : vector<8x128xf32>, vector<128x64xf32>, vector<8x64xf32> -> vector<8x64xf32>
    %c0_64 = arith.constant 0 : index
    %c0_65 = arith.constant 0 : index
    %136 = vector.load %arg15[%c0_64, %c0_65] : memref<1x64xf32, #tpu.memory_space<vmem>>, vector<1x64xf32>
    %137 = vector.broadcast %136 : vector<1x64xf32> to vector<8x64xf32>
    %138 = arith.addf %135, %137 : vector<8x64xf32>
    %139 = arith.addf %120, %138 : vector<8x64xf32>
    %c0_66 = arith.constant 0 : index
    %c0_67 = arith.constant 0 : index
    %140 = vector.load %arg16[%c0_66, %c0_67] : memref<1x64xf32, #tpu.memory_space<vmem>>, vector<1x64xf32>
    %c0_68 = arith.constant 0 : index
    %c0_69 = arith.constant 0 : index
    %141 = vector.load %arg17[%c0_68, %c0_69] : memref<1x64xf32, #tpu.memory_space<vmem>>, vector<1x64xf32>
    %cst_70 = arith.constant dense<0.000000e+00> : vector<8xf32>
    %142 = vector.multi_reduction <add>, %139, %cst_70 [1] : vector<8x64xf32> to vector<8xf32>
    %143 = vector.shape_cast %142 : vector<8xf32> to vector<8x1xf32>
    %cst_71 = arith.constant 6.400000e+01 : f32
    %144 = vector.broadcast %cst_71 : f32 to vector<8x1xf32>
    %145 = arith.divf %143, %144 : vector<8x1xf32>
    %146 = vector.broadcast %145 : vector<8x1xf32> to vector<8x64xf32>
    %147 = arith.subf %139, %146 : vector<8x64xf32>
    %148 = arith.mulf %147, %147 : vector<8x64xf32>
    %cst_72 = arith.constant dense<0.000000e+00> : vector<8xf32>
    %149 = vector.multi_reduction <add>, %148, %cst_72 [1] : vector<8x64xf32> to vector<8xf32>
    %150 = vector.shape_cast %149 : vector<8xf32> to vector<8x1xf32>
    %cst_73 = arith.constant 6.400000e+01 : f32
    %151 = vector.broadcast %cst_73 : f32 to vector<8x1xf32>
    %152 = arith.divf %150, %151 : vector<8x1xf32>
    %153 = vector.broadcast %145 : vector<8x1xf32> to vector<8x64xf32>
    %154 = arith.subf %139, %153 : vector<8x64xf32>
    %cst_74 = arith.constant 9.99999974E-6 : f32
    %155 = vector.broadcast %cst_74 : f32 to vector<8x1xf32>
    %156 = arith.addf %152, %155 : vector<8x1xf32>
    %157 = math.rsqrt %156 : vector<8x1xf32>
    %158 = vector.broadcast %157 : vector<8x1xf32> to vector<8x64xf32>
    %159 = arith.mulf %154, %158 : vector<8x64xf32>
    %160 = vector.broadcast %140 : vector<1x64xf32> to vector<8x64xf32>
    %161 = arith.mulf %159, %160 : vector<8x64xf32>
    %162 = vector.broadcast %141 : vector<1x64xf32> to vector<8x64xf32>
    %163 = arith.addf %161, %162 : vector<8x64xf32>
    %c0_75 = arith.constant 0 : index
    %c0_76 = arith.constant 0 : index
    %164 = vector.load %arg18[%c0_75, %c0_76] : memref<64x64xf32, #tpu.memory_space<vmem>>, vector<64x64xf32>
    %cst_77 = arith.constant dense<0.000000e+00> : vector<8x64xf32>
    %165 = tpu.matmul %163, %164, %cst_77 {dimension_numbers = #tpu.dot_dimension_numbers<[1], [0], [0], [1], [0, 0, 1, 1], [], []>, precision = #tpu.contract_precision<fp32>} : vector<8x64xf32>, vector<64x64xf32>, vector<8x64xf32> -> vector<8x64xf32>
    %c0_78 = arith.constant 0 : index
    %c0_79 = arith.constant 0 : index
    %166 = vector.load %arg21[%c0_78, %c0_79] : memref<1x64xf32, #tpu.memory_space<vmem>>, vector<1x64xf32>
    %167 = vector.broadcast %166 : vector<1x64xf32> to vector<8x64xf32>
    %168 = arith.addf %165, %167 : vector<8x64xf32>
    %c0_80 = arith.constant 0 : index
    %c0_81 = arith.constant 0 : index
    %169 = vector.load %arg19[%c0_80, %c0_81] : memref<64x64xf32, #tpu.memory_space<vmem>>, vector<64x64xf32>
    %cst_82 = arith.constant dense<0.000000e+00> : vector<8x64xf32>
    %170 = tpu.matmul %163, %169, %cst_82 {dimension_numbers = #tpu.dot_dimension_numbers<[1], [0], [0], [1], [0, 0, 1, 1], [], []>, precision = #tpu.contract_precision<fp32>} : vector<8x64xf32>, vector<64x64xf32>, vector<8x64xf32> -> vector<8x64xf32>
    %c0_83 = arith.constant 0 : index
    %c0_84 = arith.constant 0 : index
    %171 = vector.load %arg22[%c0_83, %c0_84] : memref<1x64xf32, #tpu.memory_space<vmem>>, vector<1x64xf32>
    %172 = vector.broadcast %171 : vector<1x64xf32> to vector<8x64xf32>
    %173 = arith.addf %170, %172 : vector<8x64xf32>
    %c0_85 = arith.constant 0 : index
    %c0_86 = arith.constant 0 : index
    %174 = vector.load %arg20[%c0_85, %c0_86] : memref<64x64xf32, #tpu.memory_space<vmem>>, vector<64x64xf32>
    %cst_87 = arith.constant dense<0.000000e+00> : vector<8x64xf32>
    %175 = tpu.matmul %163, %174, %cst_87 {dimension_numbers = #tpu.dot_dimension_numbers<[1], [0], [0], [1], [0, 0, 1, 1], [], []>, precision = #tpu.contract_precision<fp32>} : vector<8x64xf32>, vector<64x64xf32>, vector<8x64xf32> -> vector<8x64xf32>
    %c0_88 = arith.constant 0 : index
    %c0_89 = arith.constant 0 : index
    %176 = vector.load %arg23[%c0_88, %c0_89] : memref<1x64xf32, #tpu.memory_space<vmem>>, vector<1x64xf32>
    %177 = vector.broadcast %176 : vector<1x64xf32> to vector<8x64xf32>
    %178 = arith.addf %175, %177 : vector<8x64xf32>
    %c0_90 = arith.constant 0 : index
    %c0_91 = arith.constant 0 : index
    %179 = vector.load %arg24[%c0_90, %c0_91] : memref<64x64xf32, #tpu.memory_space<vmem>>, vector<64x64xf32>
    %180 = vector.extract_strided_slice %168 {offsets = [0, 0], sizes = [8, 16], strides = [1, 1]} : vector<8x64xf32> to vector<8x16xf32>
    %181 = vector.extract_strided_slice %173 {offsets = [0, 0], sizes = [8, 16], strides = [1, 1]} : vector<8x64xf32> to vector<8x16xf32>
    %182 = vector.extract_strided_slice %178 {offsets = [0, 0], sizes = [8, 16], strides = [1, 1]} : vector<8x64xf32> to vector<8x16xf32>
    %cst_92 = arith.constant dense<0.000000e+00> : vector<8x8xf32>
    %183 = tpu.matmul %180, %181, %cst_92 {dimension_numbers = #tpu.dot_dimension_numbers<[1], [1], [0], [0], [0, 0, 1, 0], [], []>, precision = #tpu.contract_precision<fp32>} : vector<8x16xf32>, vector<8x16xf32>, vector<8x8xf32> -> vector<8x8xf32>
    %cst_93 = arith.constant 2.500000e-01 : f32
    %184 = vector.broadcast %cst_93 : f32 to vector<8x8xf32>
    %185 = arith.mulf %183, %184 : vector<8x8xf32>
    %cst_94 = arith.constant dense<0xFF800000> : vector<8xf32>
    %186 = vector.multi_reduction <maximumf>, %185, %cst_94 [1] : vector<8x8xf32> to vector<8xf32>
    %187 = vector.shape_cast %186 : vector<8xf32> to vector<8x1xf32>
    %188 = vector.broadcast %187 : vector<8x1xf32> to vector<8x8xf32>
    %189 = arith.subf %185, %188 : vector<8x8xf32>
    %190 = math.exp %189 : vector<8x8xf32>
    %cst_95 = arith.constant dense<0.000000e+00> : vector<8xf32>
    %191 = vector.multi_reduction <add>, %190, %cst_95 [1] : vector<8x8xf32> to vector<8xf32>
    %192 = vector.shape_cast %191 : vector<8xf32> to vector<8x1xf32>
    %193 = vector.broadcast %192 : vector<8x1xf32> to vector<8x8xf32>
    %194 = arith.divf %190, %193 : vector<8x8xf32>
    %cst_96 = arith.constant dense<0.000000e+00> : vector<8x16xf32>
    %195 = tpu.matmul %194, %182, %cst_96 {dimension_numbers = #tpu.dot_dimension_numbers<[1], [0], [0], [1], [0, 0, 1, 1], [], []>, precision = #tpu.contract_precision<fp32>} : vector<8x8xf32>, vector<8x16xf32>, vector<8x16xf32> -> vector<8x16xf32>
    %196 = vector.extract_strided_slice %179 {offsets = [0, 0], sizes = [16, 64], strides = [1, 1]} : vector<64x64xf32> to vector<16x64xf32>
    %cst_97 = arith.constant dense<0.000000e+00> : vector<8x64xf32>
    %197 = tpu.matmul %195, %196, %cst_97 {dimension_numbers = #tpu.dot_dimension_numbers<[1], [0], [0], [1], [0, 0, 1, 1], [], []>, precision = #tpu.contract_precision<fp32>} : vector<8x16xf32>, vector<16x64xf32>, vector<8x64xf32> -> vector<8x64xf32>
    %198 = vector.extract_strided_slice %168 {offsets = [0, 16], sizes = [8, 16], strides = [1, 1]} : vector<8x64xf32> to vector<8x16xf32>
    %199 = vector.extract_strided_slice %173 {offsets = [0, 16], sizes = [8, 16], strides = [1, 1]} : vector<8x64xf32> to vector<8x16xf32>
    %200 = vector.extract_strided_slice %178 {offsets = [0, 16], sizes = [8, 16], strides = [1, 1]} : vector<8x64xf32> to vector<8x16xf32>
    %cst_98 = arith.constant dense<0.000000e+00> : vector<8x8xf32>
    %201 = tpu.matmul %198, %199, %cst_98 {dimension_numbers = #tpu.dot_dimension_numbers<[1], [1], [0], [0], [0, 0, 1, 0], [], []>, precision = #tpu.contract_precision<fp32>} : vector<8x16xf32>, vector<8x16xf32>, vector<8x8xf32> -> vector<8x8xf32>
    %cst_99 = arith.constant 2.500000e-01 : f32
    %202 = vector.broadcast %cst_99 : f32 to vector<8x8xf32>
    %203 = arith.mulf %201, %202 : vector<8x8xf32>
    %cst_100 = arith.constant dense<0xFF800000> : vector<8xf32>
    %204 = vector.multi_reduction <maximumf>, %203, %cst_100 [1] : vector<8x8xf32> to vector<8xf32>
    %205 = vector.shape_cast %204 : vector<8xf32> to vector<8x1xf32>
    %206 = vector.broadcast %205 : vector<8x1xf32> to vector<8x8xf32>
    %207 = arith.subf %203, %206 : vector<8x8xf32>
    %208 = math.exp %207 : vector<8x8xf32>
    %cst_101 = arith.constant dense<0.000000e+00> : vector<8xf32>
    %209 = vector.multi_reduction <add>, %208, %cst_101 [1] : vector<8x8xf32> to vector<8xf32>
    %210 = vector.shape_cast %209 : vector<8xf32> to vector<8x1xf32>
    %211 = vector.broadcast %210 : vector<8x1xf32> to vector<8x8xf32>
    %212 = arith.divf %208, %211 : vector<8x8xf32>
    %cst_102 = arith.constant dense<0.000000e+00> : vector<8x16xf32>
    %213 = tpu.matmul %212, %200, %cst_102 {dimension_numbers = #tpu.dot_dimension_numbers<[1], [0], [0], [1], [0, 0, 1, 1], [], []>, precision = #tpu.contract_precision<fp32>} : vector<8x8xf32>, vector<8x16xf32>, vector<8x16xf32> -> vector<8x16xf32>
    %214 = vector.extract_strided_slice %179 {offsets = [16, 0], sizes = [16, 64], strides = [1, 1]} : vector<64x64xf32> to vector<16x64xf32>
    %cst_103 = arith.constant dense<0.000000e+00> : vector<8x64xf32>
    %215 = tpu.matmul %213, %214, %cst_103 {dimension_numbers = #tpu.dot_dimension_numbers<[1], [0], [0], [1], [0, 0, 1, 1], [], []>, precision = #tpu.contract_precision<fp32>} : vector<8x16xf32>, vector<16x64xf32>, vector<8x64xf32> -> vector<8x64xf32>
    %216 = arith.addf %197, %215 : vector<8x64xf32>
    %217 = vector.extract_strided_slice %168 {offsets = [0, 32], sizes = [8, 16], strides = [1, 1]} : vector<8x64xf32> to vector<8x16xf32>
    %218 = vector.extract_strided_slice %173 {offsets = [0, 32], sizes = [8, 16], strides = [1, 1]} : vector<8x64xf32> to vector<8x16xf32>
    %219 = vector.extract_strided_slice %178 {offsets = [0, 32], sizes = [8, 16], strides = [1, 1]} : vector<8x64xf32> to vector<8x16xf32>
    %cst_104 = arith.constant dense<0.000000e+00> : vector<8x8xf32>
    %220 = tpu.matmul %217, %218, %cst_104 {dimension_numbers = #tpu.dot_dimension_numbers<[1], [1], [0], [0], [0, 0, 1, 0], [], []>, precision = #tpu.contract_precision<fp32>} : vector<8x16xf32>, vector<8x16xf32>, vector<8x8xf32> -> vector<8x8xf32>
    %cst_105 = arith.constant 2.500000e-01 : f32
    %221 = vector.broadcast %cst_105 : f32 to vector<8x8xf32>
    %222 = arith.mulf %220, %221 : vector<8x8xf32>
    %cst_106 = arith.constant dense<0xFF800000> : vector<8xf32>
    %223 = vector.multi_reduction <maximumf>, %222, %cst_106 [1] : vector<8x8xf32> to vector<8xf32>
    %224 = vector.shape_cast %223 : vector<8xf32> to vector<8x1xf32>
    %225 = vector.broadcast %224 : vector<8x1xf32> to vector<8x8xf32>
    %226 = arith.subf %222, %225 : vector<8x8xf32>
    %227 = math.exp %226 : vector<8x8xf32>
    %cst_107 = arith.constant dense<0.000000e+00> : vector<8xf32>
    %228 = vector.multi_reduction <add>, %227, %cst_107 [1] : vector<8x8xf32> to vector<8xf32>
    %229 = vector.shape_cast %228 : vector<8xf32> to vector<8x1xf32>
    %230 = vector.broadcast %229 : vector<8x1xf32> to vector<8x8xf32>
    %231 = arith.divf %227, %230 : vector<8x8xf32>
    %cst_108 = arith.constant dense<0.000000e+00> : vector<8x16xf32>
    %232 = tpu.matmul %231, %219, %cst_108 {dimension_numbers = #tpu.dot_dimension_numbers<[1], [0], [0], [1], [0, 0, 1, 1], [], []>, precision = #tpu.contract_precision<fp32>} : vector<8x8xf32>, vector<8x16xf32>, vector<8x16xf32> -> vector<8x16xf32>
    %233 = vector.extract_strided_slice %179 {offsets = [32, 0], sizes = [16, 64], strides = [1, 1]} : vector<64x64xf32> to vector<16x64xf32>
    %cst_109 = arith.constant dense<0.000000e+00> : vector<8x64xf32>
    %234 = tpu.matmul %232, %233, %cst_109 {dimension_numbers = #tpu.dot_dimension_numbers<[1], [0], [0], [1], [0, 0, 1, 1], [], []>, precision = #tpu.contract_precision<fp32>} : vector<8x16xf32>, vector<16x64xf32>, vector<8x64xf32> -> vector<8x64xf32>
    %235 = arith.addf %216, %234 : vector<8x64xf32>
    %236 = vector.extract_strided_slice %168 {offsets = [0, 48], sizes = [8, 16], strides = [1, 1]} : vector<8x64xf32> to vector<8x16xf32>
    %237 = vector.extract_strided_slice %173 {offsets = [0, 48], sizes = [8, 16], strides = [1, 1]} : vector<8x64xf32> to vector<8x16xf32>
    %238 = vector.extract_strided_slice %178 {offsets = [0, 48], sizes = [8, 16], strides = [1, 1]} : vector<8x64xf32> to vector<8x16xf32>
    %cst_110 = arith.constant dense<0.000000e+00> : vector<8x8xf32>
    %239 = tpu.matmul %236, %237, %cst_110 {dimension_numbers = #tpu.dot_dimension_numbers<[1], [1], [0], [0], [0, 0, 1, 0], [], []>, precision = #tpu.contract_precision<fp32>} : vector<8x16xf32>, vector<8x16xf32>, vector<8x8xf32> -> vector<8x8xf32>
    %cst_111 = arith.constant 2.500000e-01 : f32
    %240 = vector.broadcast %cst_111 : f32 to vector<8x8xf32>
    %241 = arith.mulf %239, %240 : vector<8x8xf32>
    %cst_112 = arith.constant dense<0xFF800000> : vector<8xf32>
    %242 = vector.multi_reduction <maximumf>, %241, %cst_112 [1] : vector<8x8xf32> to vector<8xf32>
    %243 = vector.shape_cast %242 : vector<8xf32> to vector<8x1xf32>
    %244 = vector.broadcast %243 : vector<8x1xf32> to vector<8x8xf32>
    %245 = arith.subf %241, %244 : vector<8x8xf32>
    %246 = math.exp %245 : vector<8x8xf32>
    %cst_113 = arith.constant dense<0.000000e+00> : vector<8xf32>
    %247 = vector.multi_reduction <add>, %246, %cst_113 [1] : vector<8x8xf32> to vector<8xf32>
    %248 = vector.shape_cast %247 : vector<8xf32> to vector<8x1xf32>
    %249 = vector.broadcast %248 : vector<8x1xf32> to vector<8x8xf32>
    %250 = arith.divf %246, %249 : vector<8x8xf32>
    %cst_114 = arith.constant dense<0.000000e+00> : vector<8x16xf32>
    %251 = tpu.matmul %250, %238, %cst_114 {dimension_numbers = #tpu.dot_dimension_numbers<[1], [0], [0], [1], [0, 0, 1, 1], [], []>, precision = #tpu.contract_precision<fp32>} : vector<8x8xf32>, vector<8x16xf32>, vector<8x16xf32> -> vector<8x16xf32>
    %252 = vector.extract_strided_slice %179 {offsets = [48, 0], sizes = [16, 64], strides = [1, 1]} : vector<64x64xf32> to vector<16x64xf32>
    %cst_115 = arith.constant dense<0.000000e+00> : vector<8x64xf32>
    %253 = tpu.matmul %251, %252, %cst_115 {dimension_numbers = #tpu.dot_dimension_numbers<[1], [0], [0], [1], [0, 0, 1, 1], [], []>, precision = #tpu.contract_precision<fp32>} : vector<8x16xf32>, vector<16x64xf32>, vector<8x64xf32> -> vector<8x64xf32>
    %254 = arith.addf %235, %253 : vector<8x64xf32>
    %c0_116 = arith.constant 0 : index
    %c0_117 = arith.constant 0 : index
    %255 = vector.load %arg25[%c0_116, %c0_117] : memref<1x64xf32, #tpu.memory_space<vmem>>, vector<1x64xf32>
    %256 = vector.broadcast %255 : vector<1x64xf32> to vector<8x64xf32>
    %257 = arith.addf %254, %256 : vector<8x64xf32>
    %258 = arith.addf %163, %257 : vector<8x64xf32>
    %c0_118 = arith.constant 0 : index
    %c0_119 = arith.constant 0 : index
    %259 = vector.load %arg26[%c0_118, %c0_119] : memref<1x64xf32, #tpu.memory_space<vmem>>, vector<1x64xf32>
    %c0_120 = arith.constant 0 : index
    %c0_121 = arith.constant 0 : index
    %260 = vector.load %arg27[%c0_120, %c0_121] : memref<1x64xf32, #tpu.memory_space<vmem>>, vector<1x64xf32>
    %cst_122 = arith.constant dense<0.000000e+00> : vector<8xf32>
    %261 = vector.multi_reduction <add>, %258, %cst_122 [1] : vector<8x64xf32> to vector<8xf32>
    %262 = vector.shape_cast %261 : vector<8xf32> to vector<8x1xf32>
    %cst_123 = arith.constant 6.400000e+01 : f32
    %263 = vector.broadcast %cst_123 : f32 to vector<8x1xf32>
    %264 = arith.divf %262, %263 : vector<8x1xf32>
    %265 = vector.broadcast %264 : vector<8x1xf32> to vector<8x64xf32>
    %266 = arith.subf %258, %265 : vector<8x64xf32>
    %267 = arith.mulf %266, %266 : vector<8x64xf32>
    %cst_124 = arith.constant dense<0.000000e+00> : vector<8xf32>
    %268 = vector.multi_reduction <add>, %267, %cst_124 [1] : vector<8x64xf32> to vector<8xf32>
    %269 = vector.shape_cast %268 : vector<8xf32> to vector<8x1xf32>
    %cst_125 = arith.constant 6.400000e+01 : f32
    %270 = vector.broadcast %cst_125 : f32 to vector<8x1xf32>
    %271 = arith.divf %269, %270 : vector<8x1xf32>
    %272 = vector.broadcast %264 : vector<8x1xf32> to vector<8x64xf32>
    %273 = arith.subf %258, %272 : vector<8x64xf32>
    %cst_126 = arith.constant 9.99999974E-6 : f32
    %274 = vector.broadcast %cst_126 : f32 to vector<8x1xf32>
    %275 = arith.addf %271, %274 : vector<8x1xf32>
    %276 = math.rsqrt %275 : vector<8x1xf32>
    %277 = vector.broadcast %276 : vector<8x1xf32> to vector<8x64xf32>
    %278 = arith.mulf %273, %277 : vector<8x64xf32>
    %279 = vector.broadcast %259 : vector<1x64xf32> to vector<8x64xf32>
    %280 = arith.mulf %278, %279 : vector<8x64xf32>
    %281 = vector.broadcast %260 : vector<1x64xf32> to vector<8x64xf32>
    %282 = arith.addf %280, %281 : vector<8x64xf32>
    %c0_127 = arith.constant 0 : index
    %c0_128 = arith.constant 0 : index
    %283 = vector.load %arg28[%c0_127, %c0_128] : memref<64x128xf32, #tpu.memory_space<vmem>>, vector<64x128xf32>
    %cst_129 = arith.constant dense<0.000000e+00> : vector<8x128xf32>
    %284 = tpu.matmul %282, %283, %cst_129 {dimension_numbers = #tpu.dot_dimension_numbers<[1], [0], [0], [1], [0, 0, 1, 1], [], []>, precision = #tpu.contract_precision<fp32>} : vector<8x64xf32>, vector<64x128xf32>, vector<8x128xf32> -> vector<8x128xf32>
    %c0_130 = arith.constant 0 : index
    %c0_131 = arith.constant 0 : index
    %285 = vector.load %arg29[%c0_130, %c0_131] : memref<1x128xf32, #tpu.memory_space<vmem>>, vector<1x128xf32>
    %286 = vector.broadcast %285 : vector<1x128xf32> to vector<8x128xf32>
    %287 = arith.addf %284, %286 : vector<8x128xf32>
    %cst_132 = arith.constant 5.000000e-01 : f32
    %288 = vector.broadcast %cst_132 : f32 to vector<8x128xf32>
    %289 = arith.mulf %288, %287 : vector<8x128xf32>
    %cst_133 = arith.constant 0.707106769 : f32
    %290 = vector.broadcast %cst_133 : f32 to vector<8x128xf32>
    %291 = arith.mulf %287, %290 : vector<8x128xf32>
    %292 = math.erf %291 : vector<8x128xf32>
    %cst_134 = arith.constant 1.000000e+00 : f32
    %293 = vector.broadcast %cst_134 : f32 to vector<8x128xf32>
    %294 = arith.addf %293, %292 : vector<8x128xf32>
    %295 = arith.mulf %289, %294 : vector<8x128xf32>
    %c0_135 = arith.constant 0 : index
    %c0_136 = arith.constant 0 : index
    %296 = vector.load %arg30[%c0_135, %c0_136] : memref<128x64xf32, #tpu.memory_space<vmem>>, vector<128x64xf32>
    %cst_137 = arith.constant dense<0.000000e+00> : vector<8x64xf32>
    %297 = tpu.matmul %295, %296, %cst_137 {dimension_numbers = #tpu.dot_dimension_numbers<[1], [0], [0], [1], [0, 0, 1, 1], [], []>, precision = #tpu.contract_precision<fp32>} : vector<8x128xf32>, vector<128x64xf32>, vector<8x64xf32> -> vector<8x64xf32>
    %c0_138 = arith.constant 0 : index
    %c0_139 = arith.constant 0 : index
    %298 = vector.load %arg31[%c0_138, %c0_139] : memref<1x64xf32, #tpu.memory_space<vmem>>, vector<1x64xf32>
    %299 = vector.broadcast %298 : vector<1x64xf32> to vector<8x64xf32>
    %300 = arith.addf %297, %299 : vector<8x64xf32>
    %301 = arith.addf %282, %300 : vector<8x64xf32>
    %c0_140 = arith.constant 0 : index
    %c0_141 = arith.constant 0 : index
    %302 = vector.load %arg32[%c0_140, %c0_141] : memref<1x64xf32, #tpu.memory_space<vmem>>, vector<1x64xf32>
    %c0_142 = arith.constant 0 : index
    %c0_143 = arith.constant 0 : index
    %303 = vector.load %arg33[%c0_142, %c0_143] : memref<1x64xf32, #tpu.memory_space<vmem>>, vector<1x64xf32>
    %cst_144 = arith.constant dense<0.000000e+00> : vector<8xf32>
    %304 = vector.multi_reduction <add>, %301, %cst_144 [1] : vector<8x64xf32> to vector<8xf32>
    %305 = vector.shape_cast %304 : vector<8xf32> to vector<8x1xf32>
    %cst_145 = arith.constant 6.400000e+01 : f32
    %306 = vector.broadcast %cst_145 : f32 to vector<8x1xf32>
    %307 = arith.divf %305, %306 : vector<8x1xf32>
    %308 = vector.broadcast %307 : vector<8x1xf32> to vector<8x64xf32>
    %309 = arith.subf %301, %308 : vector<8x64xf32>
    %310 = arith.mulf %309, %309 : vector<8x64xf32>
    %cst_146 = arith.constant dense<0.000000e+00> : vector<8xf32>
    %311 = vector.multi_reduction <add>, %310, %cst_146 [1] : vector<8x64xf32> to vector<8xf32>
    %312 = vector.shape_cast %311 : vector<8xf32> to vector<8x1xf32>
    %cst_147 = arith.constant 6.400000e+01 : f32
    %313 = vector.broadcast %cst_147 : f32 to vector<8x1xf32>
    %314 = arith.divf %312, %313 : vector<8x1xf32>
    %315 = vector.broadcast %307 : vector<8x1xf32> to vector<8x64xf32>
    %316 = arith.subf %301, %315 : vector<8x64xf32>
    %cst_148 = arith.constant 9.99999974E-6 : f32
    %317 = vector.broadcast %cst_148 : f32 to vector<8x1xf32>
    %318 = arith.addf %314, %317 : vector<8x1xf32>
    %319 = math.rsqrt %318 : vector<8x1xf32>
    %320 = vector.broadcast %319 : vector<8x1xf32> to vector<8x64xf32>
    %321 = arith.mulf %316, %320 : vector<8x64xf32>
    %322 = vector.broadcast %302 : vector<1x64xf32> to vector<8x64xf32>
    %323 = arith.mulf %321, %322 : vector<8x64xf32>
    %324 = vector.broadcast %303 : vector<1x64xf32> to vector<8x64xf32>
    %325 = arith.addf %323, %324 : vector<8x64xf32>
    %326 = arith.addf %325, %1 : vector<8x64xf32>
    %c0_149 = arith.constant 0 : index
    %c0_150 = arith.constant 0 : index
    %c0_151 = arith.constant 0 : index
    %327 = vector.load %arg38[%c0_149, %c0_150, %c0_151] : memref<1x8x64xf32, #tpu.memory_space<vmem>>, vector<1x8x64xf32>
    %328 = vector.shape_cast %327 : vector<1x8x64xf32> to vector<8x64xf32>
    %329 = vector.shape_cast %326 : vector<8x64xf32> to vector<1x8x64xf32>
    tpu.vector_store %arg38[%c0_149, %c0_150, %c0_151], %329 {strides = array<i32>} : memref<1x8x64xf32, #tpu.memory_space<vmem>>, vector<1x8x64xf32>,
    %c0_152 = arith.constant 0 : index
    %c0_153 = arith.constant 0 : index
    %330 = vector.load %arg34[%c0_152, %c0_153] : memref<64x32xf32, #tpu.memory_space<vmem>>, vector<64x32xf32>
    %cst_154 = arith.constant dense<0.000000e+00> : vector<8x32xf32>
    %331 = tpu.matmul %326, %330, %cst_154 {dimension_numbers = #tpu.dot_dimension_numbers<[1], [0], [0], [1], [0, 0, 1, 1], [], []>, precision = #tpu.contract_precision<fp32>} : vector<8x64xf32>, vector<64x32xf32>, vector<8x32xf32> -> vector<8x32xf32>
    %c0_155 = arith.constant 0 : index
    %c0_156 = arith.constant 0 : index
    %332 = vector.load %arg35[%c0_155, %c0_156] : memref<1x32xf32, #tpu.memory_space<vmem>>, vector<1x32xf32>
    %333 = vector.broadcast %332 : vector<1x32xf32> to vector<8x32xf32>
    %334 = arith.addf %331, %333 : vector<8x32xf32>
    %cst_157 = arith.constant 5.000000e-01 : f32
    %335 = vector.broadcast %cst_157 : f32 to vector<8x32xf32>
    %336 = arith.mulf %335, %334 : vector<8x32xf32>
    %cst_158 = arith.constant 0.707106769 : f32
    %337 = vector.broadcast %cst_158 : f32 to vector<8x32xf32>
    %338 = arith.mulf %334, %337 : vector<8x32xf32>
    %339 = math.erf %338 : vector<8x32xf32>
    %cst_159 = arith.constant 1.000000e+00 : f32
    %340 = vector.broadcast %cst_159 : f32 to vector<8x32xf32>
    %341 = arith.addf %340, %339 : vector<8x32xf32>
    %342 = arith.mulf %336, %341 : vector<8x32xf32>
    %c0_160 = arith.constant 0 : index
    %c0_161 = arith.constant 0 : index
    %343 = vector.load %arg36[%c0_160, %c0_161] : memref<1x32xf32, #tpu.memory_space<vmem>>, vector<1x32xf32>
    %c0_162 = arith.constant 0 : index
    %c0_163 = arith.constant 0 : index
    %344 = vector.load %arg37[%c0_162, %c0_163] : memref<1x32xf32, #tpu.memory_space<vmem>>, vector<1x32xf32>
    %cst_164 = arith.constant dense<0.000000e+00> : vector<8xf32>
    %345 = vector.multi_reduction <add>, %342, %cst_164 [1] : vector<8x32xf32> to vector<8xf32>
    %346 = vector.shape_cast %345 : vector<8xf32> to vector<8x1xf32>
    %cst_165 = arith.constant 3.200000e+01 : f32
    %347 = vector.broadcast %cst_165 : f32 to vector<8x1xf32>
    %348 = arith.divf %346, %347 : vector<8x1xf32>
    %349 = vector.broadcast %348 : vector<8x1xf32> to vector<8x32xf32>
    %350 = arith.subf %342, %349 : vector<8x32xf32>
    %351 = arith.mulf %350, %350 : vector<8x32xf32>
    %cst_166 = arith.constant dense<0.000000e+00> : vector<8xf32>
    %352 = vector.multi_reduction <add>, %351, %cst_166 [1] : vector<8x32xf32> to vector<8xf32>
    %353 = vector.shape_cast %352 : vector<8xf32> to vector<8x1xf32>
    %cst_167 = arith.constant 3.200000e+01 : f32
    %354 = vector.broadcast %cst_167 : f32 to vector<8x1xf32>
    %355 = arith.divf %353, %354 : vector<8x1xf32>
    %356 = vector.broadcast %348 : vector<8x1xf32> to vector<8x32xf32>
    %357 = arith.subf %342, %356 : vector<8x32xf32>
    %cst_168 = arith.constant 9.99999974E-6 : f32
    %358 = vector.broadcast %cst_168 : f32 to vector<8x1xf32>
    %359 = arith.addf %355, %358 : vector<8x1xf32>
    %360 = math.rsqrt %359 : vector<8x1xf32>
    %361 = vector.broadcast %360 : vector<8x1xf32> to vector<8x32xf32>
    %362 = arith.mulf %357, %361 : vector<8x32xf32>
    %363 = vector.broadcast %343 : vector<1x32xf32> to vector<8x32xf32>
    %364 = arith.mulf %362, %363 : vector<8x32xf32>
    %365 = vector.broadcast %344 : vector<1x32xf32> to vector<8x32xf32>
    %366 = arith.addf %364, %365 : vector<8x32xf32>
    %c0_169 = arith.constant 0 : index
    %c0_170 = arith.constant 0 : index
    %c0_171 = arith.constant 0 : index
    %367 = vector.load %arg39[%c0_169, %c0_170, %c0_171] : memref<1x8x32xf32, #tpu.memory_space<vmem>>, vector<1x8x32xf32>
    %368 = vector.shape_cast %367 : vector<1x8x32xf32> to vector<8x32xf32>
    %369 = vector.shape_cast %366 : vector<8x32xf32> to vector<1x8x32xf32>
    tpu.vector_store %arg39[%c0_169, %c0_170, %c0_171], %369 {strides = array<i32>} : memref<1x8x32xf32, #tpu.memory_space<vmem>>, vector<1x8x32xf32>,
    return
  }
  func.func @transform_0(%arg0: i32) -> (i32, i32, i32) {
    %c0_i32 = arith.constant 0 : i32
    %c0_i32_0 = arith.constant 0 : i32
    %c0_i32_1 = arith.constant 0 : i32
    return %arg0, %c0_i32, %c0_i32_0 : i32, i32, i32
  }
  func.func @transform_1(%arg0: i32) -> (i32, i32) {
    %c0_i32 = arith.constant 0 : i32
    %c0_i32_0 = arith.constant 0 : i32
    %c0_i32_1 = arith.constant 0 : i32
    return %c0_i32, %c0_i32_0 : i32, i32
  }
  func.func @transform_2(%arg0: i32) -> (i32, i32) {
    %c0_i32 = arith.constant 0 : i32
    %c0_i32_0 = arith.constant 0 : i32
    %c0_i32_1 = arith.constant 0 : i32
    return %c0_i32, %c0_i32_0 : i32, i32
  }
  func.func @transform_3(%arg0: i32) -> (i32, i32) {
    %c0_i32 = arith.constant 0 : i32
    %c0_i32_0 = arith.constant 0 : i32
    %c0_i32_1 = arith.constant 0 : i32
    return %c0_i32, %c0_i32_0 : i32, i32
  }
  func.func @transform_4(%arg0: i32) -> (i32, i32) {
    %c0_i32 = arith.constant 0 : i32
    %c0_i32_0 = arith.constant 0 : i32
    %c0_i32_1 = arith.constant 0 : i32
    return %c0_i32, %c0_i32_0 : i32, i32
  }
  func.func @transform_5(%arg0: i32) -> (i32, i32) {
    %c0_i32 = arith.constant 0 : i32
    %c0_i32_0 = arith.constant 0 : i32
    %c0_i32_1 = arith.constant 0 : i32
    return %c0_i32, %c0_i32_0 : i32, i32
  }
  func.func @transform_6(%arg0: i32) -> (i32, i32) {
    %c0_i32 = arith.constant 0 : i32
    %c0_i32_0 = arith.constant 0 : i32
    %c0_i32_1 = arith.constant 0 : i32
    return %c0_i32, %c0_i32_0 : i32, i32
  }
  func.func @transform_7(%arg0: i32) -> (i32, i32) {
    %c0_i32 = arith.constant 0 : i32
    %c0_i32_0 = arith.constant 0 : i32
    %c0_i32_1 = arith.constant 0 : i32
    return %c0_i32, %c0_i32_0 : i32, i32
  }
  func.func @transform_8(%arg0: i32) -> (i32, i32) {
    %c0_i32 = arith.constant 0 : i32
    %c0_i32_0 = arith.constant 0 : i32
    %c0_i32_1 = arith.constant 0 : i32
    return %c0_i32, %c0_i32_0 : i32, i32
  }
  func.func @transform_9(%arg0: i32) -> (i32, i32) {
    %c0_i32 = arith.constant 0 : i32
    %c0_i32_0 = arith.constant 0 : i32
    %c0_i32_1 = arith.constant 0 : i32
    return %c0_i32, %c0_i32_0 : i32, i32
  }
  func.func @transform_10(%arg0: i32) -> (i32, i32) {
    %c0_i32 = arith.constant 0 : i32
    %c0_i32_0 = arith.constant 0 : i32
    %c0_i32_1 = arith.constant 0 : i32
    return %c0_i32, %c0_i32_0 : i32, i32
  }
  func.func @transform_11(%arg0: i32) -> (i32, i32) {
    %c0_i32 = arith.constant 0 : i32
    %c0_i32_0 = arith.constant 0 : i32
    %c0_i32_1 = arith.constant 0 : i32
    return %c0_i32, %c0_i32_0 : i32, i32
  }
  func.func @transform_12(%arg0: i32) -> (i32, i32) {
    %c0_i32 = arith.constant 0 : i32
    %c0_i32_0 = arith.constant 0 : i32
    %c0_i32_1 = arith.constant 0 : i32
    return %c0_i32, %c0_i32_0 : i32, i32
  }
  func.func @transform_13(%arg0: i32) -> (i32, i32) {
    %c0_i32 = arith.constant 0 : i32
    %c0_i32_0 = arith.constant 0 : i32
    %c0_i32_1 = arith.constant 0 : i32
    return %c0_i32, %c0_i32_0 : i32, i32
  }
  func.func @transform_14(%arg0: i32) -> (i32, i32) {
    %c0_i32 = arith.constant 0 : i32
    %c0_i32_0 = arith.constant 0 : i32
    %c0_i32_1 = arith.constant 0 : i32
    return %c0_i32, %c0_i32_0 : i32, i32
  }
  func.func @transform_15(%arg0: i32) -> (i32, i32) {
    %c0_i32 = arith.constant 0 : i32
    %c0_i32_0 = arith.constant 0 : i32
    %c0_i32_1 = arith.constant 0 : i32
    return %c0_i32, %c0_i32_0 : i32, i32
  }
  func.func @transform_16(%arg0: i32) -> (i32, i32) {
    %c0_i32 = arith.constant 0 : i32
    %c0_i32_0 = arith.constant 0 : i32
    %c0_i32_1 = arith.constant 0 : i32
    return %c0_i32, %c0_i32_0 : i32, i32
  }
  func.func @transform_17(%arg0: i32) -> (i32, i32) {
    %c0_i32 = arith.constant 0 : i32
    %c0_i32_0 = arith.constant 0 : i32
    %c0_i32_1 = arith.constant 0 : i32
    return %c0_i32, %c0_i32_0 : i32, i32
  }
  func.func @transform_18(%arg0: i32) -> (i32, i32) {
    %c0_i32 = arith.constant 0 : i32
    %c0_i32_0 = arith.constant 0 : i32
    %c0_i32_1 = arith.constant 0 : i32
    return %c0_i32, %c0_i32_0 : i32, i32
  }
  func.func @transform_19(%arg0: i32) -> (i32, i32) {
    %c0_i32 = arith.constant 0 : i32
    %c0_i32_0 = arith.constant 0 : i32
    %c0_i32_1 = arith.constant 0 : i32
    return %c0_i32, %c0_i32_0 : i32, i32
  }
  func.func @transform_20(%arg0: i32) -> (i32, i32) {
    %c0_i32 = arith.constant 0 : i32
    %c0_i32_0 = arith.constant 0 : i32
    %c0_i32_1 = arith.constant 0 : i32
    return %c0_i32, %c0_i32_0 : i32, i32
  }
  func.func @transform_21(%arg0: i32) -> (i32, i32) {
    %c0_i32 = arith.constant 0 : i32
    %c0_i32_0 = arith.constant 0 : i32
    %c0_i32_1 = arith.constant 0 : i32
    return %c0_i32, %c0_i32_0 : i32, i32
  }
  func.func @transform_22(%arg0: i32) -> (i32, i32) {
    %c0_i32 = arith.constant 0 : i32
    %c0_i32_0 = arith.constant 0 : i32
    %c0_i32_1 = arith.constant 0 : i32
    return %c0_i32, %c0_i32_0 : i32, i32
  }
  func.func @transform_23(%arg0: i32) -> (i32, i32) {
    %c0_i32 = arith.constant 0 : i32
    %c0_i32_0 = arith.constant 0 : i32
    %c0_i32_1 = arith.constant 0 : i32
    return %c0_i32, %c0_i32_0 : i32, i32
  }
  func.func @transform_24(%arg0: i32) -> (i32, i32) {
    %c0_i32 = arith.constant 0 : i32
    %c0_i32_0 = arith.constant 0 : i32
    %c0_i32_1 = arith.constant 0 : i32
    return %c0_i32, %c0_i32_0 : i32, i32
  }
  func.func @transform_25(%arg0: i32) -> (i32, i32) {
    %c0_i32 = arith.constant 0 : i32
    %c0_i32_0 = arith.constant 0 : i32
    %c0_i32_1 = arith.constant 0 : i32
    return %c0_i32, %c0_i32_0 : i32, i32
  }
  func.func @transform_26(%arg0: i32) -> (i32, i32) {
    %c0_i32 = arith.constant 0 : i32
    %c0_i32_0 = arith.constant 0 : i32
    %c0_i32_1 = arith.constant 0 : i32
    return %c0_i32, %c0_i32_0 : i32, i32
  }
  func.func @transform_27(%arg0: i32) -> (i32, i32) {
    %c0_i32 = arith.constant 0 : i32
    %c0_i32_0 = arith.constant 0 : i32
    %c0_i32_1 = arith.constant 0 : i32
    return %c0_i32, %c0_i32_0 : i32, i32
  }
  func.func @transform_28(%arg0: i32) -> (i32, i32) {
    %c0_i32 = arith.constant 0 : i32
    %c0_i32_0 = arith.constant 0 : i32
    %c0_i32_1 = arith.constant 0 : i32
    return %c0_i32, %c0_i32_0 : i32, i32
  }
  func.func @transform_29(%arg0: i32) -> (i32, i32) {
    %c0_i32 = arith.constant 0 : i32
    %c0_i32_0 = arith.constant 0 : i32
    %c0_i32_1 = arith.constant 0 : i32
    return %c0_i32, %c0_i32_0 : i32, i32
  }
  func.func @transform_30(%arg0: i32) -> (i32, i32) {
    %c0_i32 = arith.constant 0 : i32
    %c0_i32_0 = arith.constant 0 : i32
    %c0_i32_1 = arith.constant 0 : i32
    return %c0_i32, %c0_i32_0 : i32, i32
  }
  func.func @transform_31(%arg0: i32) -> (i32, i32) {
    %c0_i32 = arith.constant 0 : i32
    %c0_i32_0 = arith.constant 0 : i32
    %c0_i32_1 = arith.constant 0 : i32
    return %c0_i32, %c0_i32_0 : i32, i32
  }
  func.func @transform_32(%arg0: i32) -> (i32, i32) {
    %c0_i32 = arith.constant 0 : i32
    %c0_i32_0 = arith.constant 0 : i32
    %c0_i32_1 = arith.constant 0 : i32
    return %c0_i32, %c0_i32_0 : i32, i32
  }
  func.func @transform_33(%arg0: i32) -> (i32, i32) {
    %c0_i32 = arith.constant 0 : i32
    %c0_i32_0 = arith.constant 0 : i32
    %c0_i32_1 = arith.constant 0 : i32
    return %c0_i32, %c0_i32_0 : i32, i32
  }
  func.func @transform_34(%arg0: i32) -> (i32, i32) {
    %c0_i32 = arith.constant 0 : i32
    %c0_i32_0 = arith.constant 0 : i32
    %c0_i32_1 = arith.constant 0 : i32
    return %c0_i32, %c0_i32_0 : i32, i32
  }
  func.func @transform_35(%arg0: i32) -> (i32, i32) {
    %c0_i32 = arith.constant 0 : i32
    %c0_i32_0 = arith.constant 0 : i32
    %c0_i32_1 = arith.constant 0 : i32
    return %c0_i32, %c0_i32_0 : i32, i32
  }
  func.func @transform_36(%arg0: i32) -> (i32, i32) {
    %c0_i32 = arith.constant 0 : i32
    %c0_i32_0 = arith.constant 0 : i32
    %c0_i32_1 = arith.constant 0 : i32
    return %c0_i32, %c0_i32_0 : i32, i32
  }
  func.func @transform_37(%arg0: i32) -> (i32, i32, i32) {
    %c0_i32 = arith.constant 0 : i32
    %c0_i32_0 = arith.constant 0 : i32
    %c0_i32_1 = arith.constant 0 : i32
    return %arg0, %c0_i32, %c0_i32_0 : i32, i32, i32
  }
  func.func @transform_38(%arg0: i32) -> (i32, i32, i32) {
    %c0_i32 = arith.constant 0 : i32
    %c0_i32_0 = arith.constant 0 : i32
    %c0_i32_1 = arith.constant 0 : i32
    return %arg0, %c0_i32, %c0_i32_0 : i32, i32, i32
  }
}

</mosaic_0001>

<bundles_post_ra>
// kernel: transformer_block_forward.1
= control target key start
LH: loop header
LB: loop body
LE: loop exit
PB: predicated region body
PF: predicated region fallthrough
CT: control target
= control target key end

     0   :  { %s9222_s6 = smov 1   ;;  %s9223_s10 = smov 2   ;;  %s11422_s0 = inlined_call_operand.smem [shape: u32[39], index: -1, kind: input, shape index: {}] }
   0x1   :  { %s9280_s5 = sld [smem:[%s11422_s0]]   ;;  %s9224_s14 = smov 3  }
   0x2   :  { %s9285_s9 = sld [smem:[%s11422_s0 + %s9222_s6]]   ;;  %s9225_s18 = smov 4  }
   0x3   :  { %s9290_s13 = sld [smem:[%s11422_s0 + %s9223_s10]]   ;;  %s9226_s22 = smov 5  }
   0x4   :  { %s9295_s17 = sld [smem:[%s11422_s0 + %s9224_s14]]   ;;  %s9227_s26 = smov 6  }
   0x5   :  { %s9300_s21 = sld [smem:[%s11422_s0 + %s9225_s18]]   ;;  %s9228_s30 = smov 7  }
   0x6   :  { %s9305_s25 = sld [smem:[%s11422_s0 + %s9226_s22]]   ;;  %s9229_s4 = smov 8  }
   0x7   :  { %s9310_s29 = sld [smem:[%s11422_s0 + %s9227_s26]]   ;;  %s9230_s10 = smov 9  }
   0x8   :  { %s9315_s3 = sld [smem:[%s11422_s0 + %s9228_s30]]   ;;  %s9231_s15 = smov 10  }
   0x9   :  { %s9320_s8 = sld [smem:[%s11422_s0 + %s9229_s4]]   ;;  %s9232_s20 = smov 11  }
   0xa   :  { %s9325_s14 = sld [smem:[%s11422_s0 + %s9230_s10]]   ;;  %s9233_s26 = smov 12  }
   0xb   :  { %s9330_s19 = sld [smem:[%s11422_s0 + %s9231_s15]]   ;;  %s9234_s1 = smov 13  }
   0xc   :  { %s9335_s24 = sld [smem:[%s11422_s0 + %s9232_s20]]   ;;  %s9235_s7 = smov 14  }
   0xd   :  { %s9340_s30 = sld [smem:[%s11422_s0 + %s9233_s26]]   ;;  %s9236_s15 = smov 15  }
   0xe   :  { %11440 = sst [smem:[#allocation19_spill]] %s9315_s3  ;;  %s9237_s22 = smov 16  }
   0xf   :  { %s9345_s6 = sld [smem:[%s11422_s0 + %s9234_s1]]   ;;  %s9238_s28 = smov 17  }
  0x10   :  { %11441 = sst [smem:[#allocation20_spill]] %s9325_s14 }
  0x11   :  { %11442 = sst [smem:[#allocation21_spill]] %s9330_s19 }
  0x12   :  { %11443 = sst [smem:[#allocation22_spill]] %s9335_s24 }
  0x13   :  { %11444 = sst [smem:[#allocation23_spill]] %s9340_s30 }
  0x14   :  { %s9350_s12 = sld [smem:[%s11422_s0 + %s9235_s7]]   ;;  %s9239_s7 = smov 18  }
  0x15   :  { %11445 = sst [smem:[#allocation24_spill]] %s9345_s6 }
  0x16   :  { %s9355_s20 = sld [smem:[%s11422_s0 + %s9236_s15]]   ;;  %s9240_s15 = smov 19  }
  0x17   :  { %s9360_s27 = sld [smem:[%s11422_s0 + %s9237_s22]]   ;;  %s9241_s22 = smov 20  }
  0x18   :  { %s9365_s4 = sld [smem:[%s11422_s0 + %s9238_s28]]   ;;  %s9242_s28 = smov 21  }
  0x19   :  { %s9385_s30 = sld [smem:[%s11422_s0 + %s9242_s28]]   ;;  %s9246_s28 = smov 25  }
  0x1a   :  { %11446 = sst [smem:[#allocation25_spill]] %s9350_s12 }
  0x1b   :  { %s9370_s12 = sld [smem:[%s11422_s0 + %s9239_s7]]   ;;  %s9243_s7 = smov 22  }
  0x1c   :  { %11447 = sst [smem:[#allocation26_spill]] %s9355_s20 }
  0x1d   :  { %11448 = sst [smem:[#allocation27_spill]] %s9360_s27 }
  0x1e   :  { %s9375_s20 = sld [smem:[%s11422_s0 + %s9240_s15]]   ;;  %s9244_s15 = smov 23  }
  0x1f   :  { %s9380_s27 = sld [smem:[%s11422_s0 + %s9241_s22]]   ;;  %s9245_s22 = smov 24  }
  0x20   :  { %11451 = sst [smem:[#allocation30_spill]] %s9385_s30 }
  0x21   :  { %11449 = sst [smem:[#allocation28_spill]] %s9370_s12 }
  0x22   :  { %s9390_s6 = sld [smem:[%s11422_s0 + %s9243_s7]]   ;;  %s9247_s7 = smov 26  }
  0x23   :  { %s9395_s19 = sld [smem:[%s11422_s0 + %s9244_s15]]   ;;  %s9248_s15 = smov 27  }
  0x24   :  { %s9405_s30 = sld [smem:[%s11422_s0 + %s9246_s28]]   ;;  %s9250_s28 = smov 29  }
  0x25   :  { %11450 = sst [smem:[#allocation29_spill]] %s9380_s27 }
  0x26   :  { %s9400_s27 = sld [smem:[%s11422_s0 + %s9245_s22]]   ;;  %s9249_s22 = smov 28  }
  0x27   :  { %s9415_s14 = sld [smem:[%s11422_s0 + %s9248_s15]]   ;;  %s9252_s15 = smov 31  }
  0x28   :  { %11452 = sst [smem:[#allocation31_spill]] %s9390_s6 }
  0x29   :  { %s9410_s6 = sld [smem:[%s11422_s0 + %s9247_s7]]   ;;  %s9251_s7 = smov 30  }
  0x2a   :  { %11454 = sst [smem:[#allocation33_spill]] %s9405_s30 }
  0x2b   :  { %s9425_s30 = sld [smem:[%s11422_s0 + %s9250_s28]]   ;;  %s9254_s28 = smov 33  }
  0x2c   :  { %11453 = sst [smem:[#allocation32_spill]] %s9400_s27 }
  0x2d   :  { %s9420_s27 = sld [smem:[%s11422_s0 + %s9249_s22]]   ;;  %s9253_s22 = smov 32  }
  0x2e   :  { %s9435_s24 = sld [smem:[%s11422_s0 + %s9252_s15]]   ;;  %s9256_s15 = smov 35  }
  0x2f   :  { %11455 = sst [smem:[#allocation34_spill]] %s9410_s6 }
  0x30   :  { %s9430_s6 = sld [smem:[%s11422_s0 + %s9251_s7]]   ;;  %s9255_s7 = smov 34  }
  0x31   :  { %11457 = sst [smem:[#allocation36_spill]] %s9425_s30 }
  0x32   :  { %s9445_s30 = sld [smem:[%s11422_s0 + %s9254_s28]]   ;;  %s9258_s28 = smov 37  }
  0x33   :  { %11456 = sst [smem:[#allocation35_spill]] %s9420_s27 }
  0x34   :  { %11459 = sst [smem:[#allocation38_spill]] %s9435_s24 }
  0x35   :  { %s9440_s27 = sld [smem:[%s11422_s0 + %s9253_s22]]   ;;  %s9257_s22 = smov 36  }
  0x36   :  { %11458 = sst [smem:[#allocation37_spill]] %s9430_s6 }
  0x37   :  { %s9450_s6 = sld [smem:[%s11422_s0 + %s9255_s7]]   ;;  %s9259_s7 = smov 38  }
  0x38   :  { %11461 = sst [smem:[#allocation40_spill]] %s9445_s30 }
  0x39   :  { %s9455_s24 = sld [smem:[%s11422_s0 + %s9256_s15]]  }
  0x3a   :  { %s9465_s30 = sld [smem:[%s11422_s0 + %s9258_s28]]  }
  0x3b   :  { %11460 = sst [smem:[#allocation39_spill]] %s9440_s27 }
  0x3c   :  { %s9460_s27 = sld [smem:[%s11422_s0 + %s9257_s22]]  }
  0x3d   :  { %11462 = sst [smem:[#allocation41_spill]] %s9450_s6 }
  0x3e   :  { %s9470_s6 = sld [smem:[%s11422_s0 + %s9259_s7]]  }
  0x3f   :  { %11463 = sst [smem:[#allocation42_spill]] %s9455_s24 }
  0x42   :  { %11464 = sst [smem:[#allocation43_spill]] %s9460_s27 }
  0x44   :  { %11465 = sst [smem:[#allocation44_spill]] %s9470_s6 }
  0x45   :  { %83 = vsyncpa [#allocation3], 0 }
  0x46   :  { %84 = vsyncpa [#allocation6], 0 }
  0x47   :  { %85 = vsyncpa [#allocation9], 0 }
  0x48   :  { %86 = vsyncpa [#allocation4], 0 }
  0x49   :  { %88 = vsyncpa [#allocation4 + $0x1], 0 }
  0x4a   :  { %89 = vsyncpa [#allocation13], 0 }
  0x4b   :  { %91 = vsyncpa [#allocation13 + $0x1], 0  ;;  %s9472_s15 = smov 0   ;;  %s9474_s16 = smov 0  }
  0x4c   :  { %s9476_s18 = smov 0   ;;  %s9478_s22 = smov 0  }
  0x4d LB: > { %s11466_s3 = sld [smem:[#allocation19_spill]]  ;;  %s9493_s0 = sadd.s32 4294967295, %s9220_s22   ;;  %s9212_s16 = sphi %s9474_s16, %s11514_s16   ;;  %s9208_s15 = sphi %s9472_s15, %s11513_s15   ;;  %s9220_s22 = sphi %s9478_s22, %s11510_s22   ;;  %s9216_s18 = sphi %s9476_s18, %s11512_s18  }
  0x4e   : > { %s11467_s12 = sld [smem:[#allocation28_spill]]  ;;  %s8721_s23 = sadd.s32 4294967294, %s9220_s22  }
  0x4f   : > { %11468 = sst [smem:[#allocation45_spill]] %s9208_s15  ;;  %s9497_s26 = sadd.s32 1, %s9220_s22  }
  0x50   : > { %11469 = sst [smem:[#allocation46_spill]] %s9216_s18  ;;  %s886_s28 = sadd.s32 1, %s9216_s18 }
  0x51   : > { %11470 = sst [smem:[#allocation47_spill]] %s9220_s22  ;;  %s883_s1 = ssub.s32 %s9220_s22, %s9497_s26 }
  0x52   : > { %11471 = sst [smem:[#allocation48_spill]] %s9497_s26  ;;  %p896_p0 = scmp.ne.s32.totalorder %s9216_s18, %s9212_s16 }
  0x53   : > { %p884_p1 = scmp.eq.s32.totalorder %s883_s1, 0  ;;  %p897_p2 = scmp.eq.s32.totalorder %s9493_s0, 1 }
  0x54   : > { %p902_p3 = scmp.ne.s32.totalorder %s9212_s16, %s9208_s15  ;;  %p903_p4 = scmp.eq.s32.totalorder %s8721_s23, 1 }
  0x55   : > { %s9508_s2 = scalar_select %p884_p1, %s9216_s18, %s886_s28  }
  0x56   : > { %p9510_p5 = por %p897_p2, %p896_p0  ;;  %p9514_p6 = por %p903_p4, %p902_p3 }
  0x57   : > { %11472 = sst [smem:[#allocation49_spill]] %s9508_s2  ;;  %p8722_p7 = scmp.ge.s32.totalorder %s9220_s22, 1 }
  0x58   : > { %s11474_s10 = scalar_select %p9514_p6, 1, 0 }
  0x59   : > { %p936_p8 = scmp.lt.s32.totalorder %s9220_s22, 3  ;;  %p8794_p9 = scmp.eq.s32.totalorder %s9493_s0, 0 }
  0x5a   : > { %11475 = sst [smem:[#allocation50_spill]] %s11474_s10  ;;  %s1009_s1 = sshll.u32 %s11467_s12, 4  ;;  %s1010_s1 = int_to_ptr.hbm [resolvable:$true] %s1009_s1 }
  0x5b   : > { %p9521_p10 = pnand %p8722_p7, %p936_p8  ;;  %s1046_s23 = sshll.u32 %s9395_s19, 4  ;;  %s9535_s23 = int_to_ptr.hbm [resolvable:$true] %s1046_s23 }
  0x5c   : > { %s9260_s2 = smov [#allocation5]   ;;  %s8964_s26 = sshra.s32 %s1010_s1, 4  ;;  %s8965_s26 = int_to_ptr.hbm [resolvable:$true] %s8964_s26 }
  0x5d   : > { %p8771_p11 = pneg %p9521_p10  ;;  %s1011_s18 = sshll.u32 %s9260_s2, 4  ;;  %s1012_s18 = int_to_ptr.vmem [resolvable:$true] %s1011_s18 }
  0x5e   : > { %s8966_s10 = scalar_lea.hbm %s8965_s26, 64  ;;  %s8971_s22 = scalar_lea.hbm %s11467_s12, 64 }
  0x5f   : > { %p9531_p12 = pnand %p8794_p9, %p8771_p11  ;;  %p8967_p13 = scmp.ne.s32.totalorder %s8965_s26, %s8966_s10 }
  0x60   : > { %p8972_p3 = scmp.lt.s32.totalorder %s8965_s26, %s11467_s12  ;;  %p8973_p4 = scmp.lt.s32.totalorder %s8971_s22, %s8966_s10 }
  0x61   : > { %p9539_p0 = pneg %p9531_p12 }
  0x62   : > { %p8974_p7 = por %p8973_p4, %p8972_p3 }
  0x63   : > { %p8969_p1 = pnand %p9539_p0, %p8967_p13 }
  0x65   : > { %p8970_p2 = pneg %p8969_p1 }
  0x67   : > { %p8975_p8 = pnand %p8974_p7, %p8970_p2 }
  0x69   : > { %8978 = shalt.err (!%p8975_p8)
}
  0x6a   : > { %s9261_s2 = smov 128   ;;  %s9262_s27 = smov 8  }
  0x6b   : > { %8777 = dma.hbm_to_vmem [thread:$0]  (!%p9531_p12), %s1010_s1, 1024, %s1012_s18, [#allocation6], %s9261_s2, %s9261_s2, %s9262_s27  }
  0x6c   : > { %s9263_s6 = smov [#allocation8]   ;;  %s995_s26 = sshll.u32 %s9365_s4, 4  ;;  %s9553_s26 = int_to_ptr.hbm [resolvable:$true] %s995_s26 }
  0x6d   : > { %s1048_s24 = sshll.u32 %s9263_s6, 4  ;;  %s8994_s22 = sshra.s32 %s9535_s23, 4  ;;  %s1049_s24 = int_to_ptr.vmem [resolvable:$true] %s1048_s24  ;;  %s8995_s22 = int_to_ptr.hbm [resolvable:$true] %s8994_s22 }
  0x6e   : > { %s8996_s10 = scalar_lea.hbm %s8995_s22, 64  ;;  %s9001_s12 = scalar_lea.hbm %s9395_s19, 64 }
  0x6f   : > { %p8997_p11 = scmp.ne.s32.totalorder %s8995_s22, %s8996_s10  ;;  %p9002_p2 = scmp.lt.s32.totalorder %s8995_s22, %s9395_s19 }
  0x70   : > { %p9003_p3 = scmp.lt.s32.totalorder %s9001_s12, %s8996_s10 }
  0x71   : > { %p8999_p13 = pnand %p8997_p11, %p9539_p0 }
  0x72   : > { %p9004_p4 = por %p9003_p3, %p9002_p2 }
  0x73   : > { %p9000_p1 = pneg %p8999_p13 }
  0x75   : > { %p9005_p7 = pnand %p9004_p4, %p9000_p1 }
  0x77   : > { %9008 = shalt.err (!%p9005_p7)
}
  0x78   : > { %8783 = dma.hbm_to_vmem [thread:$0]  (!%p9531_p12), %s9535_s23, 1024, %s1049_s24, [#allocation9], %s9261_s2, %s9261_s2, %s9262_s27  }
  0x79   : > { %s1023_s6 = sshll.u32 %s9375_s20, 4  ;;  %s9264_s18 = smov [#allocation2]   ;;  %s9567_s6 = int_to_ptr.hbm [resolvable:$true] %s1023_s6 }
  0x7a   : > { %s997_s1 = sshll.u32 %s9264_s18, 4  ;;  %s9024_s12 = sshra.s32 %s9553_s26, 4  ;;  %s998_s1 = int_to_ptr.vmem [resolvable:$true] %s997_s1  ;;  %s9025_s12 = int_to_ptr.hbm [resolvable:$true] %s9024_s12 }
  0x7b   : > { %s9026_s22 = scalar_lea.hbm %s9025_s12, 64  ;;  %s9031_s10 = scalar_lea.hbm %s9365_s4, 64 }
  0x7c   : > { %p9027_p8 = scmp.ne.s32.totalorder %s9025_s12, %s9026_s22  ;;  %p9032_p1 = scmp.lt.s32.totalorder %s9025_s12, %s9365_s4 }
  0x7d   : > { %p9033_p2 = scmp.lt.s32.totalorder %s9031_s10, %s9026_s22 }
  0x7e   : > { %p9029_p11 = pnand %p9027_p8, %p9539_p0 }
  0x7f   : > { %p9034_p3 = por %p9033_p2, %p9032_p1 }
  0x80   : > { %p9030_p13 = pneg %p9029_p11 }
  0x82   : > { %p9035_p4 = pnand %p9034_p3, %p9030_p13 }
  0x84   : > { %9038 = shalt.err (!%p9035_p4)
}
  0x85   : > { %8774 = dma.hbm_to_vmem [thread:$0]  (!%p9531_p12), %s9553_s26, 1024, %s998_s1, [#allocation3], %s9261_s2, %s9261_s2, %s9262_s27  }
  0x86   : > { %s9265_s24 = smov [#allocation7]   ;;  %s1069_s18 = sshll.u32 %s9415_s14, 4  ;;  %s1070_s18 = int_to_ptr.hbm [resolvable:$true] %s1069_s18 }
  0x87   : > { %s1025_s23 = sshll.u32 %s9265_s24, 4  ;;  %s9054_s12 = sshra.s32 %s9567_s6, 4  ;;  %s1026_s23 = int_to_ptr.vmem [resolvable:$true] %s1025_s23  ;;  %s9055_s12 = int_to_ptr.hbm [resolvable:$true] %s9054_s12 }
  0x88   : > { %s9056_s22 = scalar_lea.hbm %s9055_s12, 64  ;;  %s9061_s10 = scalar_lea.hbm %s9375_s20, 64 }
  0x89   : > { %p9057_p7 = scmp.ne.s32.totalorder %s9055_s12, %s9056_s22  ;;  %p9062_p13 = scmp.lt.s32.totalorder %s9055_s12, %s9375_s20 }
  0x8a   : > { %p9063_p1 = scmp.lt.s32.totalorder %s9061_s10, %s9056_s22 }
  0x8b   : > { %p9059_p8 = pnand %p9057_p7, %p9539_p0 }
  0x8c   : > { %p9064_p2 = por %p9063_p1, %p9062_p13 }
  0x8d   : > { %p9060_p11 = pneg %p9059_p8 }
  0x8f   : > { %p9065_p3 = pnand %p9064_p2, %p9060_p11 }
  0x91   : > { %9068 = shalt.err (!%p9065_p3)
}
  0x92   : > { %8780 = dma.hbm_to_vmem [thread:$0]  (!%p9531_p12), %s9567_s6, 1024, %s1026_s23, [#allocation6], %s9261_s2, %s9261_s2, %s9262_s27  }
  0x93   : > { %s9266_s26 = smov [#allocation10]   ;;  %s9084_s24 = sshra.s32 %s1070_s18, 4  ;;  %s9085_s24 = int_to_ptr.hbm [resolvable:$true] %s9084_s24 }
  0x94   : > { %s1071_s1 = sshll.u32 %s9266_s26, 4  ;;  %s9086_s12 = scalar_lea.hbm %s9085_s24, 64  ;;  %s1072_s1 = int_to_ptr.vmem [resolvable:$true] %s1071_s1 }
  0x95   : > { %p9087_p4 = scmp.ne.s32.totalorder %s9085_s24, %s9086_s12  ;;  %s9091_s22 = scalar_lea.hbm %s9415_s14, 64 }
  0x96   : > { %p9092_p11 = scmp.lt.s32.totalorder %s9085_s24, %s9415_s14  ;;  %p9093_p13 = scmp.lt.s32.totalorder %s9091_s22, %s9086_s12 }
  0x97   : > { %p9089_p7 = pnand %p9087_p4, %p9539_p0 }
  0x98   : > { %p9094_p1 = por %p9093_p13, %p9092_p11 }
  0x99   : > { %p9090_p8 = pneg %p9089_p7 }
  0x9b   : > { %p9095_p2 = pnand %p9094_p1, %p9090_p8 }
  0x9d   : > { %9098 = shalt.err (!%p9095_p2)
}
  0x9e   : > { %8786 = dma.hbm_to_vmem [thread:$0]  (!%p9531_p12), %s1070_s18, 1024, %s1072_s1, [#allocation9], %s9261_s2, %s9261_s2, %s9262_s27  }
  0x9f   : > { %1121 = sbr.rel (%p9521_p10) target bundleno = 7485 (0x1d3d), region = 168 }
  0xa4   : > { %9187 = dma.done.wait (%p8794_p9), [#allocation3], 1024  }
  0xa5   : > { %9189 = vsyncadd (%p8794_p9), [#allocation3], 4294966272 }
  0xa6   : > { %9191 = dma.done.wait (%p8794_p9), [#allocation6], 2048  }
  0xa7   : > { %9193 = vsyncadd (%p8794_p9), [#allocation6], 4294965248 }
  0xa8   : > { %9195 = dma.done.wait (%p8794_p9), [#allocation9], 2048  }
  0xa9   : > { %9197 = vsyncadd (%p8794_p9), [#allocation9], 4294965248  ;;  %p1240_p10 = scmp.lt.s32.totalorder %s9493_s0, 1  ;;  %v1252_v0 = vld [vmem:[%s9285_s9 + $0x38] sm:$0xff]  ;;  %v1251_v1 = vld [vmem:[%s9285_s9 + $0x30] sm:$0xff]  ;;  %vm1257_vm0 = vcmask 523264  }
  0xaa   : > { %v1250_v2 = vld [vmem:[%s9285_s9 + $0x28] sm:$0xff]  ;;  %v9622_v3 = vand.u32 4294901760, %v1252_v0  ;;  %v9624_v4 = vand.u32 4294901760, %v1251_v1  ;;  %v1249_v6 = vld [vmem:[%s9285_s9 + $0x20] sm:$0xff]  ;;  %v1248_v7 = vld [vmem:[%s9285_s9 + $0x18] sm:$0xff]  ;;  %vm2004_vm1 = vcmask 130048  }
  0xab   : > { %s9617_s27 = scalar_select %p1240_p10, %s9493_s0, 1  ;;  %v9626_v5 = vand.u32 4294901760, %v1250_v2  ;;  %v1247_v8 = vld [vmem:[%s9285_s9 + $0x10] sm:$0xff]  ;;  %v9631_v9 = vand.u32 4294901760, %v1249_v6  ;;  %v9633_v10 = vand.u32 4294901760, %v1248_v7  ;;  %v1246_v12 = vld [vmem:[%s9285_s9 + $0x8] sm:$0xff] }
  0xac   : > { %v9635_v11 = vand.u32 4294901760, %v1247_v8  ;;  %v1245_v13 = vld [vmem:[%s9285_s9] sm:$0xff]  ;;  %v9640_v14 = vsub.f32 %v1252_v0, %v9622_v3  ;;  %1270 = vmatpush.msra.mxu0 %v9622_v3  ;;  %v9644_v15 = vsub.f32 %v1251_v1, %v9624_v4  ;;  %1402 = vmatpush.msra.mxu3 %v9622_v3  ;;  %v9650_v17 = vand.u32 4294901760, %v1246_v12  ;;  %v1505_v22 = vld [vmem:[%s9290_s13 + $0x38] sm:$0xff]  ;;  %v1504_v27 = vld [vmem:[%s9290_s13 + $0x30] sm:$0xff]  ;;  %s9267_s28 = smov 112  }
  0xad   : > { %v9648_v16 = vsub.f32 %v1250_v2, %v9626_v5  ;;  %s8737_s15 = sshll.u32 %s9617_s27, 3  ;;  %v9654_v18 = vsub.f32 %v1249_v6, %v9631_v9  ;;  %v9657_v19 = vsub.f32 %v1248_v7, %v9633_v10  ;;  %v9662_v21 = vand.u32 4294901760, %v1245_v13  ;;  %v1503_v31 = vld [vmem:[%s9290_s13 + $0x28] sm:$0xff]  ;;  %v1502_v36 = vld [vmem:[%s9290_s13 + $0x20] sm:$0xff]  ;;  %v1501_v40 = vld [vmem:[%s9290_s13 + $0x18] sm:$0xff]  ;;  %s9268_s2 = smov 96  }
  0xae   : > { %v9660_v20 = vsub.f32 %v1247_v8, %v9635_v11  ;;  %1365 = vmatpush.msra.mxu2 %v9640_v14  ;;  %1272 = vmatpush.msra.mxu0 %v9624_v4  ;;  %v1304_v23 = vand.u32 4294901760, %v9640_v14  ;;  %v1310_v24 = vand.u32 4294901760, %v9644_v15  ;;  %v9671_v26 = vsub.f32 %v1246_v12, %v9650_v17  ;;  %s9680_s11 = scalar_lea.vmem %s9280_s5, %s8737_s15  ;;  %v1500_v53 = vld [vmem:[%s9290_s13 + $0x10] sm:$0xff]  ;;  %v1499_v58 = vld [vmem:[%s9290_s13 + $0x8] sm:$0xff]  ;;  %s9269_s6 = smov 80  }
  0xaf   : > { %v1316_v25 = vand.u32 4294901760, %v9648_v16  ;;  %1404 = vmatpush.msra.mxu3 %v9624_v4  ;;  %v1322_v28 = vand.u32 4294901760, %v9654_v18  ;;  %v1328_v29 = vand.u32 4294901760, %v9657_v19  ;;  %v9693_v35 = vand.u32 4294901760, %v1505_v22  ;;  %v1244_v44 = vld [vmem:[%s9680_s11] sm:$0xff]  ;;  %s11479_s23 = sld [smem:[#allocation22_spill]] }
  0xb0   : > { %v1334_v30 = vand.u32 4294901760, %v9660_v20  ;;  %1368 = vmatpush.msra.mxu2 %v9644_v15  ;;  %v1305_v32 = vsub.f32 %v9640_v14, %v1304_v23  ;;  %1274 = vmatpush.msra.mxu0 %v9626_v5  ;;  %v1311_v33 = vsub.f32 %v9644_v15, %v1310_v24  ;;  %v9701_v38 = vsub.f32 %v1245_v13, %v9662_v21  ;;  %s11480_s18 = sld [smem:[#allocation20_spill]] }
  0xb1   : > { %v1317_v34 = vsub.f32 %v9648_v16, %v1316_v25  ;;  %1406 = vmatpush.msra.mxu3 %v9626_v5  ;;  %v1323_v37 = vsub.f32 %v9654_v18, %v1322_v28  ;;  %v1340_v39 = vand.u32 4294901760, %v9671_v26  ;;  %v9707_v43 = vand.u32 4294901760, %v1504_v27  ;;  %s11481_s10 = sld [smem:[#allocation21_spill]] }
  0xb2   : > { %v1306_v41 = vand.u32 4294901760, %v1305_v32  ;;  %1371 = vmatpush.msra.mxu2 %v9648_v16  ;;  %v1312_v42 = vand.u32 4294901760, %v1311_v33  ;;  %1276 = vmatpush.msra.mxu0 %v9631_v9  ;;  %v1329_v47 = vsub.f32 %v9657_v19, %v1328_v29  ;;  %v1335_v48 = vsub.f32 %v9660_v20, %v1334_v30  ;;  %s11482_s26 = sld [smem:[#allocation24_spill]] }
  0xb3   : > { %v1318_v45 = vand.u32 4294901760, %v1317_v34  ;;  %1408 = vmatpush.msra.mxu3 %v9631_v9  ;;  %v1324_v46 = vand.u32 4294901760, %v1323_v37  ;;  %v1341_v49 = vsub.f32 %v9671_v26, %v1340_v39  ;;  %v9722_v50 = vsub.f32 %v1505_v22, %v9693_v35  ;;  %s11483_s1 = sld [smem:[#allocation23_spill]] }
  0xb4   : > { %1307 = vmatpush.msra.mxu1 %v1306_v41  ;;  %1374 = vmatpush.msra.mxu2 %v9654_v18  ;;  %v9724_v51 = vand.u32 4294901760, %v1503_v31  ;;  %v9727_v52 = vsub.f32 %v1504_v27, %v9707_v43  ;;  %v1346_v54 = vand.u32 4294901760, %v9701_v38  ;;  %v9733_v55 = vand.u32 4294901760, %v1502_v36  ;;  %s11484_s24 = sld [smem:[#allocation25_spill]] }
  0xb5   : > { %1278 = vmatpush.msra.mxu0 %v9633_v10  ;;  %1410 = vmatpush.msra.mxu3 %v9633_v10  ;;  %v9735_v56 = vand.u32 4294901760, %v1501_v40  ;;  %v1259_v57 = vsel %vm1257_vm0, %v1244_v44, 0  ;;  %v1553_v59 = vand.u32 4294901760, %v9722_v50  ;;  %v9752_v0 = vand.u32 4294901760, %v1500_v53  ;;  %s11485_s12 = sld [smem:[#allocation26_spill]] }
  0xb6   : > { %1313 = vmatpush.msra.mxu1 %v1312_v42  ;;  %1377 = vmatpush.msra.mxu2 %v9657_v19  ;;  %v1559_v60 = vand.u32 4294901760, %v9727_v52  ;;  %v9743_v61 = vsub.f32 %v1503_v31, %v9724_v51  ;;  %v9748_v62 = vsub.f32 %v1502_v36, %v9733_v55  ;;  %v9750_v63 = vand.u32 4294901760, %v1259_v57  ;;  %v1498_v31 = vld [vmem:[%s9290_s13] sm:$0xff]  ;;  %s11486_s22 = sld [smem:[#allocation27_spill]] }
  0xb7   : > { %1280 = vmatpush.msra.mxu0 %v9635_v11  ;;  %1412 = vmatpush.msra.mxu3 %v9635_v11  ;;  %v9755_v1 = vsub.f32 %v1501_v40, %v9735_v56  ;;  %v1330_v2 = vand.u32 4294901760, %v1329_v47  ;;  %v1554_v6 = vsub.f32 %v9722_v50, %v1553_v59  ;;  %v1336_v12 = vand.u32 4294901760, %v1335_v48  ;;  %s11489_s27 = sld [smem:[#allocation29_spill]] }
  0xb8   : > { %1319 = vmatpush.msra.mxu1 %v1318_v45  ;;  %1380 = vmatpush.msra.mxu2 %v9660_v20  ;;  %v1560_v7 = vsub.f32 %v9727_v52, %v1559_v60  ;;  %v1565_v8 = vand.u32 4294901760, %v9743_v61  ;;  %v1342_v13 = vand.u32 4294901760, %v1341_v49  ;;  %v1571_v22 = vand.u32 4294901760, %v9748_v62  ;;  %v1752_v20 = vld [vmem:[%s9295_s17 + $0x28] sm:$0xff]  ;;  %s11490_s15 = sld [smem:[#allocation30_spill]] }
  0xb9   : > { %1282 = vmatpush.msra.mxu0 %v9650_v17  ;;  %1414 = vmatpush.msra.mxu3 %v9650_v17  ;;  %v9769_v27 = vsub.f32 %v1259_v57, %v9750_v63  ;;  %v1555_v32 = vand.u32 4294901760, %v1554_v6  ;;  %v1347_v33 = vsub.f32 %v9701_v38, %v1346_v54  ;;  %v9779_v36 = vand.u32 4294901760, %v1499_v58 }
  0xba   : > { %1325 = vmatpush.msra.mxu1 %v1324_v46  ;;  %1383 = vmatpush.msra.mxu2 %v9671_v26  ;;  %v1566_v34 = vsub.f32 %v9743_v61, %v1565_v8  ;;  %v1561_v37 = vand.u32 4294901760, %v1560_v7  ;;  %v1577_v40 = vand.u32 4294901760, %v9755_v1  ;;  %v9785_v41 = vsub.f32 %v1500_v53, %v9752_v0 }
  0xbb   : > { %1284 = vmatpush.msra.mxu0 %v9662_v21  ;;  %1416 = vmatpush.msra.mxu3 %v9662_v21  ;;  %v1572_v42 = vsub.f32 %v9748_v62, %v1571_v22  ;;  %v9792_v44 = vand.u32 4294901760, %v9769_v27  ;;  %v9794_v45 = vand.u32 4294901760, %v1498_v31  ;;  %v1348_v46 = vand.u32 4294901760, %v1347_v33 }
  0xbc   : > { %1331 = vmatpush.msra.mxu1 %v1330_v2  ;;  %1386 = vmatpush.msra.mxu2 %v9701_v38  ;;  %v1567_v47 = vand.u32 4294901760, %v1566_v34  ;;  %v9800_v48 = vsub.f32 %v1499_v58, %v9779_v36  ;;  %v1583_v49 = vand.u32 4294901760, %v9785_v41  ;;  %v1578_v14 = vsub.f32 %v9755_v1, %v1577_v40 }
  0xbd   : > { %1435 = vmatpush.msrb.mxu0 %v1304_v23  ;;  %1556 = vmatpush.msrb.mxu3 %v1555_v32  ;;  %v1573_v53 = vand.u32 4294901760, %v1572_v42  ;;  %v1288_v23 = vsub.f32 %v9769_v27, %v9792_v44  ;;  %v9812_v57 = vsub.f32 %v1498_v31, %v9794_v45  ;;  %v9882_v26 = vand.u32 4294901760, %v1752_v20 }
  0xbe   : > { %1519 = vmatpush.msrb.mxu2 %v9693_v35  ;;  %1337 = vmatpush.msra.mxu1 %v1336_v12  ;;  %v1589_v15 = vand.u32 4294901760, %v9800_v48  ;;  %v1579_v58 = vand.u32 4294901760, %v1578_v14  ;;  %vm2158_vm2 = vcmask 64512  }
  0xbf   : > { %1439 = vmatpush.msrb.mxu0 %v1310_v24  ;;  %1562 = vmatpush.msrb.mxu3 %v1561_v37  ;;  %v1584_v24 = vsub.f32 %v9785_v41, %v1583_v49  ;;  %v9825_v2 = vand.u32 4294901760, %v1288_v23  ;;  %v1595_v16 = vand.u32 4294901760, %v9812_v57 }
  0xc0   : > { %1521 = vmatpush.msrb.mxu2 %v9707_v43  ;;  %1343 = vmatpush.msra.mxu1 %v1342_v13 }
  0xc1   : > { %1443 = vmatpush.msrb.mxu0 %v1316_v25  ;;  %1568 = vmatpush.msrb.mxu3 %v1567_v47  ;;  %v1585_v18 = vand.u32 4294901760, %v1584_v24  ;;  %v1751_v25 = vld [vmem:[%s9295_s17 + $0x20] sm:$0xff] }
  0xc2   : > { %1523 = vmatpush.msrb.mxu2 %v9724_v51  ;;  %1349 = vmatpush.msra.mxu1 %v1348_v46 }
  0xc3   : > { %1447 = vmatpush.msrb.mxu0 %v1322_v28  ;;  %1574 = vmatpush.msrb.mxu3 %v1573_v53  ;;  %v1750_v28 = vld [vmem:[%s9295_s17 + $0x18] sm:$0xff] }
  0xc4   : > { %1478 = vmatpush.msrb.mxu1 %v9622_v3  ;;  %1525 = vmatpush.msrb.mxu2 %v9733_v55  ;;  %v1590_v3 = vsub.f32 %v9800_v48, %v1589_v15 }
  0xc5   : > { %1389 = vmatmul.f32.vlgmr.msra.gmra.mxu2 %v9769_v27  ;;  %1451 = vmatpush.msrb.mxu0 %v1328_v29 }
  0xc6   : > { %1480 = vmatpush.msrb.mxu1 %v9624_v4  ;;  %1527 = vmatpush.msrb.mxu2 %v9735_v56  ;;  %v1596_v4 = vsub.f32 %v9812_v57, %v1595_v16 }
  0xc7   : > { %1580 = vmatpush.msrb.mxu3 %v1579_v58  ;;  %1290 = vmatmul.f32.vlgmr.msra.gmra.mxu0 %v9825_v2 }
  0xc8   : > { %1482 = vmatpush.msrb.mxu1 %v9626_v5  ;;  %1529 = vmatpush.msrb.mxu2 %v9752_v0  ;;  %v1591_v5 = vand.u32 4294901760, %v1590_v3  ;;  %v1597_v19 = vand.u32 4294901760, %v1596_v4 }
  0xc9   : > { %1420 = vmatmul.f32.vlgmr.msra.gmra.mxu3 %v9792_v44  ;;  %1455 = vmatpush.msrb.mxu0 %v1334_v30  ;;  %v9893_v30 = vand.u32 4294901760, %v1751_v25 }
  0xca   : > { %1484 = vmatpush.msrb.mxu1 %v9631_v9  ;;  %1531 = vmatpush.msrb.mxu2 %v9779_v36  ;;  %v1754_v9 = vld [vmem:[%s9295_s17 + $0x38] sm:$0xff] }
  0xcb   : > { %1586 = vmatpush.msrb.mxu3 %v1585_v18  ;;  %1351 = vmatmul.f32.vlgmr.msra.gmra.mxu1 %v9750_v63 }
  0xcc   : > { %1486 = vmatpush.msrb.mxu1 %v9633_v10  ;;  %1459 = vmatpush.msrb.mxu0 %v1340_v39  ;;  %v1753_v10 = vld [vmem:[%s9295_s17 + $0x30] sm:$0xff]  ;;  %v9903_v39 = vsub.f32 %v1752_v20, %v9882_v26 }
  0xcd   : > { %1533 = vmatpush.msrb.mxu2 %v9794_v45  ;;  %1592 = vmatpush.msrb.mxu3 %v1591_v5  ;;  %v8888_v5 = vld [vmem:[%s9305_s25] ss:$0 sm:$0xff] }
  0xce   : > { %1488 = vmatpush.msrb.mxu1 %v9635_v11  ;;  %1463 = vmatpush.msrb.mxu0 %v1346_v54  ;;  %v9864_v11 = vand.u32 4294901760, %v1754_v9 }
  0xcf   : > { %1684 = vmatpush.msra.mxu2 %v1553_v59  ;;  %1598 = vmatpush.msrb.mxu3 %v1597_v19  ;;  %v1747_v59 = vld [vmem:[%s9295_s17] sm:$0xff] }
  0xd0   : > { %1490 = vmatpush.msrb.mxu1 %v9650_v17  ;;  %1614 = vmatpush.msra.mxu0 %v9722_v50  ;;  %v9872_v17 = vand.u32 4294901760, %v1753_v10  ;;  %v1748_v50 = vld [vmem:[%s9295_s17 + $0x8] sm:$0xff]  ;;  %v9946_v7 = vand.u32 4294901760, %v1747_v59 }
  0xd1   : > { %1688 = vmatpush.msra.mxu2 %v1559_v60  ;;  %1727 = vmatpush.msra.mxu3 %v9693_v35  ;;  %v1814_v60 = vand.u32 4294901760, %v9903_v39 }
  0xd2   : > { %1492 = vmatpush.msrb.mxu1 %v9662_v21  ;;  %1617 = vmatpush.msra.mxu0 %v9727_v52  ;;  %v9880_v21 = vsub.f32 %v1754_v9, %v9864_v11  ;;  %v9891_v29 = vsub.f32 %v1753_v10, %v9872_v17  ;;  %v9915_v52 = vsub.f32 %v1751_v25, %v9893_v30 }
  0xd3   : > { %1692 = vmatpush.msra.mxu2 %v1565_v8  ;;  %1729 = vmatpush.msra.mxu3 %v9707_v43  ;;  %v1815_v8 = vsub.f32 %v9903_v39, %v1814_v60  ;;  %v9968_v33 = vsub.f32 %v1747_v59, %v9946_v7 }
  0xd4   : > { %1651 = vmatpush.msra.mxu1 %v9693_v35  ;;  %1465 = vmatmul.f32.vlgmr.msrb.gmra.mxu0 %v9750_v63  ;;  %v1749_v35 = vld [vmem:[%s9295_s17 + $0x10] sm:$0xff]  ;;  %v1802_v38 = vand.u32 4294901760, %v9880_v21 }
  0xd5   : > { %1620 = vmatpush.msra.mxu0 %v9743_v61  ;;  %1696 = vmatpush.msra.mxu2 %v1571_v22  ;;  %v9917_v54 = vand.u32 4294901760, %v1749_v35  ;;  %v1816_v34 = vand.u32 4294901760, %v1815_v8  ;;  %v1844_v42 = vand.u32 4294901760, %v9968_v33 }
  0xd6   : > { %1653 = vmatpush.msra.mxu1 %v9707_v43  ;;  %1731 = vmatpush.msra.mxu3 %v9724_v51  ;;  %v9905_v43 = vand.u32 4294901760, %v1750_v28 }
  0xd7   : > { %1494 = vmatmul.f32.vlgmr.msrb.gmra.mxu1 %v9750_v63  ;;  %1539 = vmatmul.f32.vlgmr.msrb.gmra.mxu2 %v9825_v2  ;;  %v9944_v6 = vsub.f32 %v1749_v35, %v9917_v54 }
  0xd8   : > { %1623 = vmatpush.msra.mxu0 %v9748_v62  ;;  %1655 = vmatpush.msra.mxu1 %v9724_v51  ;;  %v1808_v51 = vand.u32 4294901760, %v9891_v29  ;;  %v9930_v61 = vsub.f32 %v1750_v28, %v9905_v43  ;;  %v9932_v62 = vand.u32 4294901760, %v1748_v50 }
  0xd9   : > { %1700 = vmatpush.msra.mxu2 %v1577_v40  ;;  %1733 = vmatpush.msra.mxu3 %v9733_v55  ;;  %v1832_v32 = vand.u32 4294901760, %v9944_v6 }
  0xda   : > { %1600 = vmatmul.f32.vlgmr.msrb.gmra.mxu3 %v9750_v63  ;;  %1626 = vmatpush.msra.mxu0 %v9755_v1  ;;  %v1820_v1 = vand.u32 4294901760, %v9915_v52  ;;  %v1826_v12 = vand.u32 4294901760, %v9930_v61  ;;  %v9957_v13 = vsub.f32 %v1748_v50, %v9932_v62 }
  0xdb   : > { %1657 = vmatpush.msra.mxu1 %v9733_v55  ;;  %1704 = vmatpush.msra.mxu2 %v1583_v49  ;;  %v1803_v55 = vsub.f32 %v9880_v21, %v1802_v38 }
  0xdc   : > { %1735 = vmatpush.msra.mxu3 %v9735_v56  ;;  %1629 = vmatpush.msra.mxu0 %v9785_v41  ;;  %v1821_v31 = vsub.f32 %v9915_v52, %v1820_v1  ;;  %v1838_v37 = vand.u32 4294901760, %v9957_v13  ;;  %v1833_v41 = vsub.f32 %v9944_v6, %v1832_v32 }
  0xdd   : > { %1659 = vmatpush.msra.mxu1 %v9735_v56  ;;  %1708 = vmatpush.msra.mxu2 %v1589_v15  ;;  %v1809_v56 = vsub.f32 %v9891_v29, %v1808_v51 }
  0xde   : > { %1737 = vmatpush.msra.mxu3 %v9752_v0  ;;  %1632 = vmatpush.msra.mxu0 %v9800_v48  ;;  %v1822_v40 = vand.u32 4294901760, %v1821_v31  ;;  %v1839_v46 = vsub.f32 %v9957_v13, %v1838_v37  ;;  %v1834_v47 = vand.u32 4294901760, %v1833_v41  ;;  %v1845_v48 = vsub.f32 %v9968_v33, %v1844_v42 }
  0xdf   : > { %1661 = vmatpush.msra.mxu1 %v9752_v0  ;;  %1712 = vmatpush.msra.mxu2 %v1595_v16  ;;  %v1804_v0 = vand.u32 4294901760, %v1803_v55  ;;  %v1810_v22 = vand.u32 4294901760, %v1809_v56 }
  0xe0   : > { %1739 = vmatpush.msra.mxu3 %v9779_v36  ;;  %1714 = vmatmul.f32.vlgmr.msra.gmra.mxu2 %v9750_v63  ;;  %v1840_v49 = vand.u32 4294901760, %v1839_v46  ;;  %v1846_v53 = vand.u32 4294901760, %v1845_v48 }
  0xe1   : > { %1635 = vmatpush.msra.mxu0 %v9812_v57  ;;  %1663 = vmatpush.msra.mxu1 %v9779_v36  ;;  %v1827_v36 = vsub.f32 %v9930_v61, %v1826_v12 }
  0xe2   : > { %1741 = vmatpush.msra.mxu3 %v9794_v45  ;;  %1638 = vmatmul.f32.vlgmr.msra.gmra.mxu0 %v9769_v27 }
  0xe3   : > { %1743 = vmatmul.f32.vlgmr.msra.gmra.mxu3 %v9750_v63  ;;  %1665 = vmatpush.msra.mxu1 %v9794_v45  ;;  %v1828_v45 = vand.u32 4294901760, %v1827_v36 }
  0xe4   : > { %1669 = vmatmul.f32.vlgmr.msra.gmra.mxu1 %v9792_v44  ;;  %1768 = vmatpush.msrb.mxu0 %v9864_v11 }
  0xe5   : > { %1805 = vmatpush.msrb.mxu1 %v1804_v0  ;;  %1863 = vmatpush.msrb.mxu2 %v9880_v21 }
  0xe6   : > { %1770 = vmatpush.msrb.mxu0 %v9872_v17  ;;  %1900 = vmatpush.msrb.mxu3 %v9864_v11 }
  0xe7   : > { %1811 = vmatpush.msrb.mxu1 %v1810_v22  ;;  %1866 = vmatpush.msrb.mxu2 %v9891_v29 }
  0xe8   : > { %1772 = vmatpush.msrb.mxu0 %v9882_v26  ;;  %1902 = vmatpush.msrb.mxu3 %v9872_v17 }
  0xe9   : > { %1817 = vmatpush.msrb.mxu1 %v1816_v34  ;;  %1869 = vmatpush.msrb.mxu2 %v9903_v39 }
  0xea   : > { %1774 = vmatpush.msrb.mxu0 %v9893_v30  ;;  %1904 = vmatpush.msrb.mxu3 %v9882_v26 }
  0xeb   : > { %1823 = vmatpush.msrb.mxu1 %v1822_v40  ;;  %1872 = vmatpush.msrb.mxu2 %v9915_v52 }
  0xec   : > { %1776 = vmatpush.msrb.mxu0 %v9905_v43  ;;  %1906 = vmatpush.msrb.mxu3 %v9893_v30 }
  0xed   : > { %1829 = vmatpush.msrb.mxu1 %v1828_v45  ;;  %1875 = vmatpush.msrb.mxu2 %v9930_v61  ;;  %v8889_v61 = vld [vmem:[%s9310_s29] ss:$0 sm:$0xff] }
  0xee   : > { %1778 = vmatpush.msrb.mxu0 %v9917_v54  ;;  %1908 = vmatpush.msrb.mxu3 %v9905_v43 }
  0xef   : > { %1835 = vmatpush.msrb.mxu1 %v1834_v47  ;;  %1878 = vmatpush.msrb.mxu2 %v9944_v6 }
  0xf0   : > { %1780 = vmatpush.msrb.mxu0 %v9932_v62  ;;  %1910 = vmatpush.msrb.mxu3 %v9917_v54 }
  0xf1   : > { %1841 = vmatpush.msrb.mxu1 %v1840_v49  ;;  %1881 = vmatpush.msrb.mxu2 %v9957_v13 }
  0xf2   : > { %1782 = vmatpush.msrb.mxu0 %v9946_v7  ;;  %1912 = vmatpush.msrb.mxu3 %v9932_v62 }
  0xf3   : > { %1847 = vmatpush.msrb.mxu1 %v1846_v53  ;;  %1884 = vmatpush.msrb.mxu2 %v9968_v33 }
  0xf4   : > { %1933 = vmatpush.msra.mxu0 %v1802_v38  ;;  %1887 = vmatmul.f32.vlgmr.msrb.gmra.mxu2 %v9769_v27  ;;  %v8887_v27 = vld [vmem:[%s9300_s21] ss:$0 sm:$0xff] }
  0xf5   : > { %1976 = vmatpush.msra.mxu1 %v9864_v11  ;;  %1914 = vmatpush.msrb.mxu3 %v9946_v7 }
  0xf6   : > { %1937 = vmatpush.msra.mxu0 %v1808_v51  ;;  %1918 = vmatmul.f32.vlgmr.msrb.gmra.mxu3 %v9792_v44 }
  0xf7   : > { %1978 = vmatpush.msra.mxu1 %v9872_v17  ;;  %1788 = vmatmul.f32.vlgmr.msrb.gmra.mxu0 %v9825_v2 }
  0xf8   : > { %1941 = vmatpush.msra.mxu0 %v1814_v60  ;;  %1849 = vmatmul.f32.vlgmr.msrb.gmra.mxu1 %v9750_v63 }
  0xf9   : > { %1980 = vmatpush.msra.mxu1 %v9882_v26 }
  0xfa   : > { %1945 = vmatpush.msra.mxu0 %v1820_v1 }
  0xfb   : > { %1982 = vmatpush.msra.mxu1 %v9893_v30 }
  0xfc   : > { %1949 = vmatpush.msra.mxu0 %v1826_v12 }
  0xfd   : > { %1984 = vmatpush.msra.mxu1 %v9905_v43 }
  0xfe   : > { %1953 = vmatpush.msra.mxu0 %v1832_v32 }
  0xff   : > { %1986 = vmatpush.msra.mxu1 %v9917_v54 }
 0x100   : > { %1957 = vmatpush.msra.mxu0 %v1838_v37 }
 0x101   : > { %1988 = vmatpush.msra.mxu1 %v9932_v62 }
 0x102   : > { %1961 = vmatpush.msra.mxu0 %v1844_v42 }
 0x103   : > { %1963 = vmatmul.f32.vlgmr.msra.gmra.mxu0 %v9750_v63  ;;  %1990 = vmatpush.msra.mxu1 %v9946_v7 }
 0x104   : > { %1992 = vmatmul.f32.vlgmr.msra.gmra.mxu1 %v9750_v63 }
 0x144   : > { %v1291_v44 = vpop.f32.mrf.mxu0 }
 0x145   : > { %v1292_v14 = vadd.f32 %v8887_v27, %v1291_v44 }
 0x148   : > { %v1352_v23 = vpop.f32.mrf.mxu1  ;;  %v1390_v57 = vpop.f32.mrf.mxu2 }
 0x149   : > { %v1353_v15 = vadd.f32 %v1352_v23, %v1292_v14 }
 0x14b   : > { %v1391_v24 = vadd.f32 %v1390_v57, %v1353_v15 }
 0x14c   : > { %v1421_v58 = vpop.f32.mrf.mxu3 }
 0x14d   : > { %v1422_v2 = vadd.f32 %v1421_v58, %v1391_v24 }
 0x151   : > { %v1466_v16 = vpop.f32.mrf.mxu0 }
 0x152   : > { %v1467_v3 = vadd.f32 %v1466_v16, %v1422_v2 }
 0x154   : > { %v1495_v18 = vpop.f32.mrf.mxu1 }
 0x155   : > { %v10028_v4 = vadd.f32 %v1495_v18, %v1467_v3 }
 0x157   : > { %v2006_v19 = vsel %vm2004_vm1, %v10028_v4, 0 }
 0x158   : > { %v2028_v10 = vand.u32 4294901760, %v2006_v19 }
 0x15a   : > { %v1540_v63 = vpop.f32.mrf.mxu2  ;;  %v2029_v21 = vsub.f32 %v2006_v19, %v2028_v10 }
 0x15b   : > { %v1541_v9 = vadd.f32 %v8888_v5, %v1540_v63 }
 0x15c   : > { %v2030_v35 = vand.u32 4294901760, %v2029_v21 }
 0x15d   : > { %v1601_v11 = vpop.f32.mrf.mxu3 }
 0x15e   : > { %v1602_v20 = vadd.f32 %v1601_v11, %v1541_v9  ;;  %v2031_v50 = vsub.f32 %v2029_v21, %v2030_v35 }
 0x15f   : > { %v1639_v17 = vpop.f32.mrf.mxu0 }
 0x160   : > { %v1640_v25 = vadd.f32 %v1639_v17, %v1602_v20  ;;  %v2032_v54 = vand.u32 4294901760, %v2031_v50 }
 0x161   : > { %v1670_v26 = vpop.f32.mrf.mxu1 }
 0x162   : > { %v1671_v28 = vadd.f32 %v1670_v26, %v1640_v25 }
 0x163   : > { %v1715_v29 = vpop.f32.mrf.mxu2 }
 0x164   : > { %v1716_v30 = vadd.f32 %v1715_v29, %v1671_v28 }
 0x166   : > { %v1744_v38 = vpop.f32.mrf.mxu3 }
 0x167   : > { %v10033_v39 = vadd.f32 %v1744_v38, %v1716_v30 }
 0x169   : > { %2334 = vrot.lane.b32.xlu1 %v10033_v39, %s9267_s28  ;;  %v2009_v43 = vsel %vm2004_vm1, %v10033_v39, 0 }
 0x16a   : > { %v2026_v51 = vand.u32 4294901760, %v2009_v43 }
 0x16c   : > { %2027 = vmatpush.xpose.msra.mxu2 %v2026_v51  ;;  %2151 = vmatpush.xpose.msrb.mxu1 %v2026_v51  ;;  %v2053_v52 = vsub.f32 %v2009_v43, %v2026_v51 }
 0x16e   : > { %v2054_v59 = vand.u32 4294901760, %v2053_v52 }
 0x16f   : > { %2033 = vmatmul.f32.vlgmr.msra.gmra.mxu2 %v2032_v54  ;;  %2153 = vmatmul.f32.vlgmr.msrb.gmra.mxu1 %v2028_v10 }
 0x170   : > { %2080 = vmatpush.xpose.msrb.mxu2 %v2053_v52  ;;  %2129 = vmatpush.xpose.msrb.mxu0 %v2054_v59  ;;  %v2055_v55 = vsub.f32 %v2053_v52, %v2054_v59 }
 0x171   : > { %2332 = vrot.lane.b32.xlu1 %v10028_v4, %s9267_s28 }
 0x172   : > { %v2056_v60 = vand.u32 4294901760, %v2055_v55 }
 0x173   : > { %2131 = vmatmul.f32.vlgmr.msrb.gmra.mxu0 %v2028_v10 }
 0x174   : > { %2057 = vmatpush.xpose.msra.mxu3 %v2056_v60  ;;  %v1789_v62 = vpop.f32.mrf.mxu0 }
 0x175   : > { %v1790_v56 = vadd.f32 %v8889_v61, %v1789_v62  ;;  %v1850_v1 = vpop.f32.mrf.mxu1 }
 0x177   : > { %2059 = vmatmul.f32.vlgmr.msra.gmra.mxu3 %v2028_v10  ;;  %2083 = vmatmul.f32.vlgmr.msrb.gmra.mxu2 %v2029_v21  ;;  %v1851_v6 = vadd.f32 %v1850_v1, %v1790_v56  ;;  %v1888_v7 = vpop.f32.mrf.mxu2 }
 0x178   : > { %2103 = vmatpush.xpose.msrb.mxu3 %v2026_v51 }
 0x179   : > { %2990 = vrot.lane.b32.xlu1 %v10033_v39, %s9268_s2  ;;  %v1889_v0 = vadd.f32 %v1888_v7, %v1851_v6  ;;  %v1919_v8 = vpop.f32.mrf.mxu3 }
 0x17b   : > { %v1920_v12 = vadd.f32 %v1919_v8, %v1889_v0 }
 0x17f   : > { %2107 = vmatmul.f32.vlgmr.msrb.gmra.mxu3 %v2030_v35 }
 0x180   : > { %v1964_v13 = vpop.f32.mrf.mxu0 }
 0x181   : > { %v1965_v22 = vadd.f32 %v1964_v13, %v1920_v12  ;;  %v1993_v31 = vpop.f32.mrf.mxu1 }
 0x183   : > { %v10044_v32 = vadd.f32 %v1993_v31, %v1965_v22 }
 0x185   : > { %v2201_v33 = vand.u32 4294901760, %v10044_v32 }
 0x187   : > { %2278 = vmatpush.msra.mxu1 %v2201_v33  ;;  %2202 = vmatpush.msra.mxu2 %v2201_v33  ;;  %v2228_v34 = vsub.f32 %v10044_v32, %v2201_v33 }
 0x189   : > { %2255 = vmatpush.msra.mxu0 %v2228_v34  ;;  %v2229_v36 = vand.u32 4294901760, %v2228_v34 }
 0x18b   : > { %v2230_v37 = vsub.f32 %v2228_v34, %v2229_v36  ;;  %2304 = vmatpush.msrb.mxu2 %v2229_v36 }
 0x18d   : > { %v2231_v40 = vand.u32 4294901760, %v2230_v37 }
 0x18f   : > { %2232 = vmatpush.msra.mxu3 %v2231_v40 }
 0x191   : > { %2326 = vmatpush.msrb.mxu3 %v2201_v33 }
 0x1db   : > { %v2335_v41 = vpop.permute.xlu1 %2334 }
 0x1dc   : > { %v2338_v42 = vsel %vm2004_vm1, %v2335_v41, 0 }
 0x1dd   : > { %v10049_v45 = vand.u32 4294901760, %v2338_v42 }
 0x1df   : > { %v10052_v46 = vsub.f32 %v2338_v42, %v10049_v45  ;;  %2356 = vmatpush.xpose.msrb.mxu0 %v10049_v45 }
 0x1e1   : > { %v2383_v47 = vand.u32 4294901760, %v10052_v46 }
 0x1e3   : > { %v2384_v48 = vsub.f32 %v10052_v46, %v2383_v47  ;;  %v2333_v25 = vpop.permute.xlu1 %2332 }
 0x1e4   : > { %v2336_v28 = vsel %vm2004_vm1, %v2333_v25, 0 }
 0x1e5   : > { %v2385_v49 = vand.u32 4294901760, %v2384_v48  ;;  %v2357_v38 = vand.u32 4294901760, %v2336_v28 }
 0x1e7   : > { %2386 = vmatpush.xpose.msrb.mxu1 %v2385_v49  ;;  %v2358_v54 = vsub.f32 %v2336_v28, %v2357_v38 }
 0x1e9   : > { %v2359_v56 = vand.u32 4294901760, %v2358_v54 }
 0x1eb   : > { %v2360_v8 = vsub.f32 %v2358_v54, %v2359_v56 }
 0x1ec   : > { %v2154_v2 = vpop.f32.mrf.mxu1 }
 0x1ed   : > { %v2361_v31 = vand.u32 4294901760, %v2360_v8 }
 0x1f0   : > { %v2132_v24 = vpop.f32.mrf.mxu0 }
 0x1f2   : > { %v2034_v53 = vpop.f32.mrf.mxu2 }
 0x1fa   : > { %v2060_v27 = vpop.f32.mrf.mxu3  ;;  %v2084_v14 = vpop.f32.mrf.mxu2 }
 0x1fb   : > { %v2061_v44 = vadd.f32 %v2060_v27, %v2034_v53 }
 0x1fd   : > { %v2085_v23 = vadd.f32 %v2084_v14, %v2061_v44 }
 0x202   : > { %v2108_v57 = vpop.f32.mrf.mxu3 }
 0x203   : > { %v2109_v15 = vadd.f32 %v2108_v57, %v2085_v23 }
 0x205   : > { %v2133_v58 = vadd.f32 %v2132_v24, %v2109_v15 }
 0x207   : > { %v2155_v16 = vadd.f32 %v2154_v2, %v2133_v58 }
 0x209   : > { %v2157_v3 = vmul.f32 0.25, %v2155_v16 }
 0x20b   : > { %v2159_v18 = vsel %vm2158_vm2, %v2157_v3, -inf }
 0x20c   : > { %2160 = vmax.xlane.f32.xlu0 %v2159_v18 }
 0x27f   : > { %v2161_v5 = vpop.xlane.xlu0 %2160 }
 0x280   : > { %v2162_v19 = vsub.f32 %v2157_v3, %v2161_v5 }
 0x282   : > { %v2163_v63 = vmul.f32 1.442695, %v2162_v19 }
 0x284   : > { %8910 = vpow2.f32 %v2163_v63 }
 0x28a   : > { %v8911_v9 = vpop.eup %8910 }
 0x28b   : > { %v2165_v10 = vsel %vm2158_vm2, %v8911_v9, 0.0 }
 0x28c   : > { %2166 = vadd.xlane.f32.xlu0 %v2165_v10 }
 0x2a0   : > { %2512 = vrot.lane.b32.xlu0 %v10044_v32, %s9267_s28 }
 0x2ff   : > { %v2167_v11 = vpop.xlane.xlu0 %2166 }
 0x300   : > { %8912 = vrcp.f32 %v2167_v11  ;;  %v2179_v26 = vand.u32 2147483648, %v2167_v11  ;;  %v2177_v30 = vand.u32 2147483647, %v2167_v11  ;;  %vm2173_vm4 = vweird.f32 %v2167_v11 }
 0x302   : > { %v2180_v43 = vor.u32 1.1754944e-38, %v2179_v26  ;;  %vm2178_vm6 = vcmp.eq.f32.partialorder %v2177_v30, 8.507059e+37 }
 0x306   : > { %v8913_v20 = vpop.eup %8912 }
 0x307   : > { %v2169_v17 = vmul.f32 %v8913_v20, %v2167_v11  ;;  %vm2174_vm3 = vweird.f32 %v8913_v20 }
 0x308   : > { %vm2175_vm5 = vmor %vm2173_vm4, %vm2174_vm3 }
 0x309   : > { %v2170_v21 = vsub.f32 1.0, %v2169_v17 }
 0x30b   : > { %v2171_v29 = vmul.f32 %v8913_v20, %v2170_v21 }
 0x30d   : > { %v2172_v35 = vadd.f32 %v8913_v20, %v2171_v29 }
 0x30f   : > { %v2176_v50 = vsel %vm2175_vm5, %v8913_v20, %v2172_v35 }
 0x310   : > { %v2181_v51 = vsel %vm2178_vm6, %v2180_v43, %v2176_v50  ;;  %v1998_v50 = vld [vmem:[%s11466_s3 + $0x10] sm:$0xff] }
 0x311   : > { %v2182_v52 = vmul.f32 %v8911_v9, %v2181_v51 }
 0x312   : > { %v2513_v59 = vpop.permute.xlu0 %2512 }
 0x313   : > { %v2533_v55 = vand.u32 4294901760, %v2513_v59  ;;  %v2184_v60 = vsel %vm2158_vm2, %v2182_v52, 0  ;;  %v2683_v52 = vand.u32 4294901760, %v1998_v50 }
 0x314   : > { %v2203_v61 = vand.u32 4294901760, %v2184_v60 }
 0x315   : > { %v2560_v62 = vsub.f32 %v2513_v59, %v2533_v55  ;;  %v2715_v59 = vsub.f32 %v1998_v50, %v2683_v52 }
 0x316   : > { %2234 = vmatmul.f32.vlgmr.msra.gmra.mxu3 %v2203_v61  ;;  %v2204_v1 = vsub.f32 %v2184_v60, %v2203_v61 }
 0x317   : > { %v2561_v6 = vand.u32 4294901760, %v2560_v62  ;;  %2432 = vmatpush.xpose.msra.mxu3 %v10049_v45  ;;  %v2716_v60 = vand.u32 4294901760, %v2715_v59 }
 0x318   : > { %2258 = vmatmul.f32.vlgmr.msra.gmra.mxu0 %v2204_v1  ;;  %v2205_v7 = vand.u32 4294901760, %v2204_v1 }
 0x319   : > { %v2562_v0 = vsub.f32 %v2560_v62, %v2561_v6  ;;  %2458 = vmatpush.xpose.msra.mxu0 %v2383_v47 }
 0x31a   : > { %2282 = vmatmul.f32.vlgmr.msra.gmra.mxu1 %v2205_v7  ;;  %v2206_v12 = vsub.f32 %v2204_v1, %v2205_v7  ;;  %v1996_v7 = vld [vmem:[%s11466_s3] sm:$0xff] }
 0x31b   : > { %v2563_v13 = vand.u32 4294901760, %v2562_v0  ;;  %2480 = vmatpush.xpose.msra.mxu1 %v10049_v45  ;;  %v2845_v8 = vand.u32 4294901760, %v1996_v7 }
 0x31c   : > { %v2207_v22 = vand.u32 4294901760, %v2206_v12 }
 0x31e   : > { %2208 = vmatmul.f32.vlgmr.msra.gmra.mxu2 %v2207_v22  ;;  %2328 = vmatmul.f32.vlgmr.msrb.gmra.mxu3 %v2203_v61 }
 0x31f   : > { %2409 = vmatpush.xpose.msra.mxu2 %v10052_v46  ;;  %2564 = vmatpush.msrb.mxu3 %v2563_v13  ;;  %v10096_v13 = vsub.f32 %v1996_v7, %v2845_v8 }
 0x320   : > { %2362 = vmatmul.f32.vlgmr.msrb.gmra.mxu0 %v2361_v31 }
 0x321   : > { %2587 = vmatpush.msrb.mxu0 %v2560_v62  ;;  %v2717_v62 = vsub.f32 %v2715_v59, %v2716_v60 }
 0x322   : > { %2388 = vmatmul.f32.vlgmr.msrb.gmra.mxu1 %v2357_v38 }
 0x323   : > { %2610 = vmatpush.msrb.mxu1 %v2533_v55 }
 0x326   : > { %2306 = vmatmul.f32.vlgmr.msrb.gmra.mxu2 %v2203_v61  ;;  %2436 = vmatmul.f32.vlgmr.msra.gmra.mxu3 %v2359_v56  ;;  %v1997_v56 = vld [vmem:[%s11466_s3 + $0x8] sm:$0xff] }
 0x327   : > { %2534 = vmatpush.msrb.mxu2 %v2533_v55  ;;  %2658 = vmatpush.msra.mxu3 %v2533_v55  ;;  %v2843_v1 = vand.u32 4294901760, %v1997_v56 }
 0x328   : > { %2460 = vmatmul.f32.vlgmr.msra.gmra.mxu0 %v2357_v38 }
 0x329   : > { %v10093_v0 = vsub.f32 %v1997_v56, %v2843_v1 }
 0x32a   : > { %2482 = vmatmul.f32.vlgmr.msra.gmra.mxu1 %v2357_v38  ;;  %v1999_v38 = vld [vmem:[%s11466_s3 + $0x18] sm:$0xff] }
 0x32b   : > { %v2681_v43 = vand.u32 4294901760, %v1999_v38  ;;  %v2872_v12 = vand.u32 4294901760, %v10093_v0 }
 0x32d   : > { %v2709_v51 = vsub.f32 %v1999_v38, %v2681_v43  ;;  %2682 = vmatpush.msra.mxu0 %v2681_v43  ;;  %v2873_v31 = vsub.f32 %v10093_v0, %v2872_v12 }
 0x32e   : > { %2412 = vmatmul.f32.vlgmr.msra.gmra.mxu2 %v2358_v54 }
 0x32f   : > { %2636 = vmatpush.msra.mxu2 %v2561_v6  ;;  %v2710_v54 = vand.u32 4294901760, %v2709_v51  ;;  %2684 = vmatpush.msra.mxu0 %v2683_v52  ;;  %v2718_v6 = vand.u32 4294901760, %v2717_v62 }
 0x331   : > { %v2711_v55 = vsub.f32 %v2709_v51, %v2710_v54 }
 0x333   : > { %v2712_v61 = vand.u32 4294901760, %v2711_v55 }
 0x335   : > { %2713 = vmatpush.msra.mxu1 %v2712_v61 }
 0x337   : > { %2719 = vmatpush.msra.mxu1 %v2718_v6 }
 0x395   : > { %v10068_v34 = vpop.f32.mrf.mxu0 }
 0x397   : > { %v10072_v37 = vpop.f32.mrf.mxu1 }
 0x399   : > { %v10066_v33 = vpop.f32.mrf.mxu3 }
 0x39d   : > { %v2363_v42 = vpop.f32.mrf.mxu0 }
 0x39f   : > { %v2389_v45 = vpop.f32.mrf.mxu1 }
 0x3a0   : > { %v2390_v46 = vadd.f32 %v2389_v45, %v2363_v42  ;;  %v2878_v42 = vand.u32 4294901760, %v10096_v13  ;;  %v2874_v45 = vand.u32 4294901760, %v2873_v31 }
 0x3a1   : > { %v10070_v36 = vpop.f32.mrf.mxu2  ;;  %v10074_v40 = vpop.f32.mrf.mxu3 }
 0x3a2   : > { %v2236_v22 = vadd.f32 %v10066_v33, %v10070_v36  ;;  %v2991_v33 = vpop.permute.xlu1 %2990 }
 0x3a5   : > { %v2461_v27 = vpop.f32.mrf.mxu0 }
 0x3a7   : > { %v2483_v14 = vpop.f32.mrf.mxu1 }
 0x3a9   : > { %v10076_v41 = vpop.f32.mrf.mxu2  ;;  %v2437_v49 = vpop.f32.mrf.mxu3 }
 0x3b1   : > { %v2413_v47 = vpop.f32.mrf.mxu2 }
 0x3b2   : > { %v2414_v48 = vadd.f32 %v2413_v47, %v2390_v46  ;;  %v2879_v46 = vsub.f32 %v10096_v13, %v2878_v42  ;;  %v2260_v47 = vadd.f32 %v10068_v34, %v2236_v22 }
 0x3b4   : > { %v2438_v53 = vadd.f32 %v2437_v49, %v2414_v48  ;;  %v2880_v48 = vand.u32 4294901760, %v2879_v46  ;;  %v2284_v49 = vadd.f32 %v10072_v37, %v2260_v47 }
 0x3b6   : > { %v2462_v44 = vadd.f32 %v2461_v27, %v2438_v53  ;;  %v2308_v53 = vadd.f32 %v10076_v41, %v2284_v49 }
 0x3b8   : > { %v2484_v23 = vadd.f32 %v2483_v14, %v2462_v44  ;;  %v2330_v36 = vadd.f32 %v10074_v40, %v2308_v53 }
 0x3ba   : > { %v2486_v57 = vmul.f32 0.25, %v2484_v23 }
 0x3bc   : > { %v2487_v15 = vsel %vm2158_vm2, %v2486_v57, -inf }
 0x3bd   : > { %2488 = vmax.xlane.f32.xlu2 %v2487_v15  ;;  %v2994_v15 = vsel %vm2004_vm1, %v2991_v33, 0 }
 0x430   : > { %v2489_v24 = vpop.xlane.xlu2 %2488 }
 0x431   : > { %v2490_v58 = vsub.f32 %v2486_v57, %v2489_v24  ;;  %v2827_v24 = vsel %vm2004_vm1, %v2330_v36, 0 }
 0x433   : > { %v2491_v2 = vmul.f32 1.442695, %v2490_v58 }
 0x435   : > { %8914 = vpow2.f32 %v2491_v2  ;;  %v3011_v2 = vand.u32 4294901760, %v2994_v15 }
 0x43b   : > { %v8915_v16 = vpop.eup %8914 }
 0x43c   : > { %v2493_v3 = vsel %vm2158_vm2, %v8915_v16, 0.0 }
 0x43d   : > { %2494 = vadd.xlane.f32.xlu2 %v2493_v3  ;;  %v2847_v3 = vand.u32 4294901760, %v2827_v24 }
 0x455   : > { %2988 = vrot.lane.b32.xlu2 %v10028_v4, %s9268_s2 }
 0x45d   : > { %3167 = vrot.lane.b32.xlu2 %v10044_v32, %s9268_s2 }
 0x465   : > { %3484 = vrot.lane.b32.xlu2 %v10033_v39, %s9269_s6 }
 0x46d   : > { %3482 = vrot.lane.b32.xlu2 %v10028_v4, %s9269_s6 }
 0x4b0   : > { %v2495_v18 = vpop.xlane.xlu2 %2494 }
 0x4b1   : > { %8916 = vrcp.f32 %v2495_v18  ;;  %v2507_v9 = vand.u32 2147483648, %v2495_v18  ;;  %v2505_v11 = vand.u32 2147483647, %v2495_v18  ;;  %vm2501_vm8 = vweird.f32 %v2495_v18 }
 0x4b3   : > { %v2508_v17 = vor.u32 1.1754944e-38, %v2507_v9  ;;  %vm2506_vm10 = vcmp.eq.f32.partialorder %v2505_v11, 8.507059e+37 }
 0x4b7   : > { %v8917_v5 = vpop.eup %8916 }
 0x4b8   : > { %v2497_v19 = vmul.f32 %v8917_v5, %v2495_v18  ;;  %vm2502_vm7 = vweird.f32 %v8917_v5  ;;  %v2989_v34 = vpop.permute.xlu2 %2988 }
 0x4b9   : > { %vm2503_vm9 = vmor %vm2501_vm8, %vm2502_vm7  ;;  %v2992_v38 = vsel %vm2004_vm1, %v2989_v34, 0 }
 0x4ba   : > { %v2498_v63 = vsub.f32 1.0, %v2497_v19  ;;  %v3013_v50 = vand.u32 4294901760, %v2992_v38 }
 0x4bc   : > { %v2499_v10 = vmul.f32 %v8917_v5, %v2498_v63  ;;  %v2848_v63 = vsub.f32 %v2827_v24, %v2847_v3 }
 0x4be   : > { %v2500_v20 = vadd.f32 %v8917_v5, %v2499_v10 }
 0x4c0   : > { %v2504_v25 = vsel %vm2503_vm9, %v8917_v5, %v2500_v20  ;;  %v3038_v5 = vsub.f32 %v2994_v15, %v3011_v2  ;;  %v3168_v11 = vpop.permute.xlu2 %3167 }
 0x4c1   : > { %v2509_v39 = vsel %vm2506_vm10, %v2508_v17, %v2504_v25  ;;  %v2849_v17 = vand.u32 4294901760, %v2848_v63 }
 0x4c2   : > { %v2510_v21 = vmul.f32 %v8915_v16, %v2509_v39  ;;  %v3039_v10 = vand.u32 4294901760, %v3038_v5 }
 0x4c4   : > { %v2516_v4 = vsel %vm2158_vm2, %v2510_v21, 0  ;;  %v3040_v39 = vsub.f32 %v3038_v5, %v3039_v10  ;;  %v3188_v21 = vand.u32 4294901760, %v3168_v11 }
 0x4c5   : > { %v2535_v26 = vand.u32 4294901760, %v2516_v4 }
 0x4c7   : > { %2566 = vmatmul.f32.vlgmr.msrb.gmra.mxu3 %v2535_v26  ;;  %v2536_v28 = vsub.f32 %v2516_v4, %v2535_v26 }
 0x4c8   : > { %2766 = vmatpush.msrb.mxu3 %v2681_v43 }
 0x4c9   : > { %2590 = vmatmul.f32.vlgmr.msrb.gmra.mxu0 %v2536_v28  ;;  %v2537_v29 = vand.u32 4294901760, %v2536_v28 }
 0x4ca   : > { %2768 = vmatpush.msrb.mxu3 %v2683_v52  ;;  %2793 = vmatpush.msrb.mxu0 %v2710_v54 }
 0x4cb   : > { %2614 = vmatmul.f32.vlgmr.msrb.gmra.mxu1 %v2537_v29  ;;  %v2538_v30 = vsub.f32 %v2536_v28, %v2537_v29  ;;  %v3041_v29 = vand.u32 4294901760, %v3040_v39 }
 0x4cc   : > { %2797 = vmatpush.msrb.mxu0 %v2716_v60  ;;  %2818 = vmatpush.msrb.mxu1 %v2681_v43 }
 0x4cd   : > { %v2539_v35 = vand.u32 4294901760, %v2538_v30  ;;  %v3215_v30 = vsub.f32 %v3168_v11, %v3188_v21 }
 0x4ce   : > { %2820 = vmatpush.msrb.mxu1 %v2683_v52  ;;  %v3014_v52 = vsub.f32 %v2992_v38, %v3013_v50 }
 0x4cf   : > { %2540 = vmatmul.f32.vlgmr.msrb.gmra.mxu2 %v2539_v35  ;;  %2660 = vmatmul.f32.vlgmr.msra.gmra.mxu3 %v2535_v26  ;;  %v3216_v43 = vand.u32 4294901760, %v3215_v30 }
 0x4d0   : > { %2741 = vmatpush.msrb.mxu2 %v2709_v51  ;;  %2875 = vmatpush.msra.mxu3 %v2874_v45 }
 0x4d1   : > { %v3217_v51 = vsub.f32 %v3215_v30, %v3216_v43 }
 0x4d2   : > { %2744 = vmatpush.msrb.mxu2 %v2715_v59  ;;  %2881 = vmatpush.msra.mxu3 %v2880_v48  ;;  %v3015_v59 = vand.u32 4294901760, %v3014_v52 }
 0x4d3   : > { %v3218_v54 = vand.u32 4294901760, %v3217_v51 }
 0x4d4   : > { %v3016_v55 = vsub.f32 %v3014_v52, %v3015_v59 }
 0x4d6   : > { %v3017_v60 = vand.u32 4294901760, %v3016_v55 }
 0x4d7   : > { %2638 = vmatmul.f32.vlgmr.msra.gmra.mxu2 %v2535_v26  ;;  %v2850_v26 = vsub.f32 %v2848_v63, %v2849_v17 }
 0x4d8   : > { %2844 = vmatpush.msra.mxu2 %v2843_v1 }
 0x4d9   : > { %v2851_v35 = vand.u32 4294901760, %v2850_v26 }
 0x4da   : > { %2846 = vmatpush.msra.mxu2 %v2845_v8 }
 0x546   : > { %v2591_v23 = vpop.f32.mrf.mxu0 }
 0x548   : > { %v2615_v58 = vpop.f32.mrf.mxu1 }
 0x54a   : > { %v2567_v27 = vpop.f32.mrf.mxu3 }
 0x552   : > { %v2541_v44 = vpop.f32.mrf.mxu2  ;;  %v2661_v41 = vpop.f32.mrf.mxu3 }
 0x553   : > { %v2568_v14 = vadd.f32 %v2567_v27, %v2541_v44 }
 0x555   : > { %v2592_v57 = vadd.f32 %v2591_v23, %v2568_v14 }
 0x557   : > { %v2616_v16 = vadd.f32 %v2615_v58, %v2592_v57 }
 0x55a   : > { %v2639_v37 = vpop.f32.mrf.mxu2 }
 0x55b   : > { %v2640_v18 = vadd.f32 %v2639_v37, %v2616_v16 }
 0x55d   : > { %v2662_v19 = vadd.f32 %v2661_v41, %v2640_v18 }
 0x55f   : > { %v2665_v40 = vsel %vm2004_vm1, %v2662_v19, 0 }
 0x560   : > { %v2685_v9 = vand.u32 4294901760, %v2665_v40 }
 0x562   : > { %v2686_v20 = vsub.f32 %v2665_v40, %v2685_v9  ;;  %2721 = vmatmul.f32.vlgmr.msra.gmra.mxu1 %v2685_v9 }
 0x563   : > { %2928 = vmatpush.msra.mxu1 %v2843_v1 }
 0x564   : > { %2747 = vmatmul.f32.vlgmr.msrb.gmra.mxu2 %v2686_v20  ;;  %v2687_v25 = vand.u32 4294901760, %v2686_v20 }
 0x565   : > { %2930 = vmatpush.msra.mxu1 %v2845_v8  ;;  %2955 = vmatpush.msrb.mxu2 %v2872_v12 }
 0x566   : > { %2772 = vmatmul.f32.vlgmr.msrb.gmra.mxu3 %v2687_v25  ;;  %v2688_v4 = vsub.f32 %v2686_v20, %v2687_v25 }
 0x567   : > { %2959 = vmatpush.msrb.mxu2 %v2878_v42  ;;  %2980 = vmatpush.msrb.mxu3 %v2843_v1 }
 0x568   : > { %v2689_v28 = vand.u32 4294901760, %v2688_v4 }
 0x569   : > { %2982 = vmatpush.msrb.mxu3 %v2845_v8 }
 0x56a   : > { %2690 = vmatmul.f32.vlgmr.msra.gmra.mxu0 %v2689_v28  ;;  %2822 = vmatmul.f32.vlgmr.msrb.gmra.mxu1 %v2685_v9 }
 0x56b   : > { %3042 = vmatpush.xpose.msrb.mxu1 %v3041_v29  ;;  %2903 = vmatpush.msra.mxu0 %v10093_v0 }
 0x56c   : > { %2852 = vmatmul.f32.vlgmr.msra.gmra.mxu2 %v2851_v35 }
 0x56d   : > { %3065 = vmatpush.xpose.msra.mxu2 %v3038_v5  ;;  %2906 = vmatpush.msra.mxu0 %v10096_v13  ;;  %v3485_v5 = vpop.permute.xlu2 %3484 }
 0x56e   : > { %2883 = vmatmul.f32.vlgmr.msra.gmra.mxu3 %v2847_v3  ;;  %v3488_v40 = vsel %vm2004_vm1, %v3485_v5, 0 }
 0x56f   : > { %3088 = vmatpush.xpose.msra.mxu3 %v3011_v2  ;;  %v10142_v20 = vand.u32 4294901760, %v3488_v40 }
 0x571   : > { %v10145_v4 = vsub.f32 %v3488_v40, %v10142_v20 }
 0x572   : > { %2799 = vmatmul.f32.vlgmr.msrb.gmra.mxu0 %v2685_v9  ;;  %2934 = vmatmul.f32.vlgmr.msra.gmra.mxu1 %v2849_v17 }
 0x573   : > { %3012 = vmatpush.xpose.msrb.mxu0 %v3011_v2  ;;  %3136 = vmatpush.xpose.msra.mxu1 %v3011_v2  ;;  %v2001_v2 = vld [vmem:[%s11466_s3 + $0x28] sm:$0xff] }
 0x574   : > { %2961 = vmatmul.f32.vlgmr.msrb.gmra.mxu2 %v2847_v3  ;;  %v3336_v16 = vand.u32 4294901760, %v2001_v2 }
 0x575   : > { %3189 = vmatpush.msrb.mxu2 %v3188_v21 }
 0x576   : > { %2984 = vmatmul.f32.vlgmr.msrb.gmra.mxu3 %v2847_v3  ;;  %v2000_v3 = vld [vmem:[%s11466_s3 + $0x20] sm:$0xff]  ;;  %v3364_v51 = vsub.f32 %v2001_v2, %v3336_v16 }
 0x577   : > { %3219 = vmatpush.msrb.mxu3 %v3218_v54  ;;  %v3338_v37 = vand.u32 4294901760, %v2000_v3 }
 0x578   : > { %v3365_v55 = vand.u32 4294901760, %v3364_v51 }
 0x57a   : > { %2909 = vmatmul.f32.vlgmr.msra.gmra.mxu0 %v2848_v63  ;;  %3044 = vmatmul.f32.vlgmr.msrb.gmra.mxu1 %v3013_v50 }
 0x57b   : > { %3114 = vmatpush.xpose.msra.mxu0 %v3039_v10  ;;  %3265 = vmatpush.msrb.mxu1 %v3188_v21 }
 0x57c   : > { %3068 = vmatmul.f32.vlgmr.msra.gmra.mxu2 %v3014_v52 }
 0x57d   : > { %3291 = vmatpush.msra.mxu2 %v3216_v43 }
 0x57e   : > { %3092 = vmatmul.f32.vlgmr.msra.gmra.mxu3 %v3015_v59  ;;  %v3370_v59 = vsub.f32 %v2000_v3, %v3338_v37 }
 0x57f   : > { %3313 = vmatpush.msra.mxu3 %v3188_v21 }
 0x582   : > { %3018 = vmatmul.f32.vlgmr.msrb.gmra.mxu0 %v3017_v60  ;;  %3138 = vmatmul.f32.vlgmr.msra.gmra.mxu1 %v3013_v50  ;;  %v3366_v60 = vsub.f32 %v3364_v51, %v3365_v55 }
 0x583   : > { %3242 = vmatpush.msrb.mxu0 %v3215_v30  ;;  %v3533_v30 = vand.u32 4294901760, %v10145_v4 }
 0x585   : > { %v3534_v43 = vsub.f32 %v10145_v4, %v3533_v30 }
 0x587   : > { %v3535_v54 = vand.u32 4294901760, %v3534_v43 }
 0x58a   : > { %3116 = vmatmul.f32.vlgmr.msra.gmra.mxu0 %v3013_v50 }
 0x58b   : > { %3337 = vmatpush.msra.mxu0 %v3336_v16 }
 0x58d   : > { %3339 = vmatpush.msra.mxu0 %v3338_v37 }
 0x5df   : > { %v10113_v61 = vpop.f32.mrf.mxu1 }
 0x5e7   : > { %v10115_v62 = vpop.f32.mrf.mxu0  ;;  %v10117_v56 = vpop.f32.mrf.mxu2 }
 0x5e8   : > { %v10121_v6 = vpop.f32.mrf.mxu1 }
 0x5e9   : > { %v10119_v1 = vpop.f32.mrf.mxu3 }
 0x5ef   : > { %v10123_v7 = vpop.f32.mrf.mxu0  ;;  %v10125_v0 = vpop.f32.mrf.mxu2 }
 0x5f0   : > { %v10129_v12 = vpop.f32.mrf.mxu1 }
 0x5f1   : > { %v10127_v8 = vpop.f32.mrf.mxu3 }
 0x5f7   : > { %v10131_v13 = vpop.f32.mrf.mxu0  ;;  %v10133_v22 = vpop.f32.mrf.mxu2 }
 0x5f8   : > { %v3045_v42 = vpop.f32.mrf.mxu1 }
 0x5f9   : > { %v10135_v31 = vpop.f32.mrf.mxu3 }
 0x5ff   : > { %v3019_v45 = vpop.f32.mrf.mxu0  ;;  %v3069_v47 = vpop.f32.mrf.mxu2 }
 0x600   : > { %v3046_v46 = vadd.f32 %v3045_v42, %v3019_v45  ;;  %v3139_v33 = vpop.f32.mrf.mxu1  ;;  %v3371_v42 = vand.u32 4294901760, %v3370_v59  ;;  %v3367_v45 = vand.u32 4294901760, %v3366_v60 }
 0x601   : > { %v3093_v49 = vpop.f32.mrf.mxu3 }
 0x602   : > { %v3070_v48 = vadd.f32 %v3069_v47, %v3046_v46  ;;  %v3372_v46 = vsub.f32 %v3370_v59, %v3371_v42  ;;  %3368 = vmatpush.msra.mxu1 %v3367_v45 }
 0x604   : > { %v3094_v53 = vadd.f32 %v3093_v49, %v3070_v48  ;;  %v3373_v47 = vand.u32 4294901760, %v3372_v46 }
 0x606   : > { %3374 = vmatpush.msra.mxu1 %v3373_v47 }
 0x607   : > { %v3117_v27 = vpop.f32.mrf.mxu0 }
 0x608   : > { %v3118_v44 = vadd.f32 %v3117_v27, %v3094_v53  ;;  %v3483_v27 = vpop.permute.xlu2 %3482 }
 0x60a   : > { %v3140_v36 = vadd.f32 %v3139_v33, %v3118_v44 }
 0x60c   : > { %v3142_v14 = vmul.f32 0.25, %v3140_v36  ;;  %v3486_v36 = vsel %vm2004_vm1, %v3483_v27, 0 }
 0x60e   : > { %v3143_v23 = vsel %vm2158_vm2, %v3142_v14, -inf }
 0x60f   : > { %3144 = vmax.xlane.f32.xlu1 %v3143_v23 }
 0x682   : > { %v3145_v57 = vpop.xlane.xlu1 %3144 }
 0x683   : > { %v3146_v15 = vsub.f32 %v3142_v14, %v3145_v57  ;;  %v3507_v57 = vand.u32 4294901760, %v3486_v36 }
 0x685   : > { %v3147_v24 = vmul.f32 1.442695, %v3146_v15  ;;  %v3508_v2 = vsub.f32 %v3486_v36, %v3507_v57 }
 0x687   : > { %8918 = vpow2.f32 %v3147_v24 }
 0x68d   : > { %v8919_v34 = vpop.eup %8918 }
 0x68e   : > { %v3149_v58 = vsel %vm2158_vm2, %v8919_v34, 0.0 }
 0x68f   : > { %3150 = vadd.xlane.f32.xlu0 %v3149_v58 }
 0x702   : > { %v3151_v18 = vpop.xlane.xlu0 %3150 }
 0x703   : > { %8920 = vrcp.f32 %v3151_v18  ;;  %v3163_v9 = vand.u32 2147483648, %v3151_v18  ;;  %v3161_v11 = vand.u32 2147483647, %v3151_v18  ;;  %vm3157_vm12 = vweird.f32 %v3151_v18 }
 0x705   : > { %v3164_v25 = vor.u32 1.1754944e-38, %v3163_v9  ;;  %vm3162_vm14 = vcmp.eq.f32.partialorder %v3161_v11, 8.507059e+37 }
 0x709   : > { %v8921_v41 = vpop.eup %8920 }
 0x70a   : > { %v3153_v19 = vmul.f32 %v8921_v41, %v3151_v18  ;;  %vm3158_vm11 = vweird.f32 %v8921_v41 }
 0x70b   : > { %vm3159_vm13 = vmor %vm3157_vm12, %vm3158_vm11 }
 0x70c   : > { %v3154_v63 = vsub.f32 1.0, %v3153_v19 }
 0x70e   : > { %v3155_v10 = vmul.f32 %v8921_v41, %v3154_v63 }
 0x710   : > { %v3156_v17 = vadd.f32 %v8921_v41, %v3155_v10 }
 0x712   : > { %v3160_v39 = vsel %vm3159_vm13, %v8921_v41, %v3156_v17 }
 0x713   : > { %v3165_v21 = vsel %vm3162_vm14, %v3164_v25, %v3160_v39 }
 0x714   : > { %v3166_v26 = vmul.f32 %v8919_v34, %v3165_v21 }
 0x716   : > { %v3171_v28 = vsel %vm2158_vm2, %v3166_v26, 0 }
 0x717   : > { %v3190_v29 = vand.u32 4294901760, %v3171_v28 }
 0x719   : > { %3221 = vmatmul.f32.vlgmr.msrb.gmra.mxu3 %v3190_v29  ;;  %v3191_v35 = vsub.f32 %v3171_v28, %v3190_v29 }
 0x71a   : > { %3421 = vmatpush.msrb.mxu3 %v3336_v16 }
 0x71b   : > { %3245 = vmatmul.f32.vlgmr.msrb.gmra.mxu0 %v3191_v35  ;;  %v3192_v38 = vand.u32 4294901760, %v3191_v35 }
 0x71c   : > { %3423 = vmatpush.msrb.mxu3 %v3338_v37  ;;  %3448 = vmatpush.msrb.mxu0 %v3365_v55 }
 0x71d   : > { %3269 = vmatmul.f32.vlgmr.msrb.gmra.mxu1 %v3192_v38  ;;  %v3193_v50 = vsub.f32 %v3191_v35, %v3192_v38 }
 0x71e   : > { %3452 = vmatpush.msrb.mxu0 %v3371_v42  ;;  %3473 = vmatpush.msrb.mxu1 %v3336_v16 }
 0x71f   : > { %v3194_v52 = vand.u32 4294901760, %v3193_v50 }
 0x720   : > { %3475 = vmatpush.msrb.mxu1 %v3338_v37  ;;  %v3509_v37 = vand.u32 4294901760, %v3508_v2 }
 0x721   : > { %3195 = vmatmul.f32.vlgmr.msrb.gmra.mxu2 %v3194_v52  ;;  %3315 = vmatmul.f32.vlgmr.msra.gmra.mxu3 %v3190_v29 }
 0x722   : > { %3536 = vmatpush.xpose.msra.mxu3 %v3535_v54  ;;  %3396 = vmatpush.msrb.mxu2 %v3364_v51  ;;  %v3510_v5 = vsub.f32 %v3508_v2, %v3509_v37 }
 0x724   : > { %3399 = vmatpush.msrb.mxu2 %v3370_v59  ;;  %v3511_v40 = vand.u32 4294901760, %v3510_v5  ;;  %v2003_v5 = vld [vmem:[%s11466_s3 + $0x38] sm:$0xff] }
 0x729   : > { %3293 = vmatmul.f32.vlgmr.msra.gmra.mxu2 %v3190_v29 }
 0x72a   : > { %3506 = vmatpush.xpose.msra.mxu2 %v10142_v20 }
 0x798   : > { %v3246_v44 = vpop.f32.mrf.mxu0 }
 0x79a   : > { %v3270_v14 = vpop.f32.mrf.mxu1 }
 0x79c   : > { %v3222_v48 = vpop.f32.mrf.mxu3 }
 0x7a4   : > { %v3196_v49 = vpop.f32.mrf.mxu2  ;;  %v3316_v34 = vpop.f32.mrf.mxu3 }
 0x7a5   : > { %v3223_v53 = vadd.f32 %v3222_v48, %v3196_v49 }
 0x7a7   : > { %v3247_v33 = vadd.f32 %v3246_v44, %v3223_v53 }
 0x7a9   : > { %v3271_v23 = vadd.f32 %v3270_v14, %v3247_v33 }
 0x7ac   : > { %v3294_v15 = vpop.f32.mrf.mxu2 }
 0x7ad   : > { %v3295_v24 = vadd.f32 %v3294_v15, %v3271_v23 }
 0x7af   : > { %v3317_v58 = vadd.f32 %v3316_v34, %v3295_v24 }
 0x7b1   : > { %v3320_v3 = vsel %vm2004_vm1, %v3317_v58, 0 }
 0x7b2   : > { %v3340_v16 = vand.u32 4294901760, %v3320_v3 }
 0x7b4   : > { %v3341_v18 = vsub.f32 %v3320_v3, %v3340_v16  ;;  %3376 = vmatmul.f32.vlgmr.msra.gmra.mxu1 %v3340_v16 }
 0x7b5   : > { %3582 = vmatpush.xpose.msra.mxu1 %v10142_v20 }
 0x7b6   : > { %3402 = vmatmul.f32.vlgmr.msrb.gmra.mxu2 %v3341_v18  ;;  %v3342_v41 = vand.u32 4294901760, %v3341_v18 }
 0x7b7   : > { %3608 = vmatpush.xpose.msrb.mxu2 %v3533_v30 }
 0x7b8   : > { %3427 = vmatmul.f32.vlgmr.msrb.gmra.mxu3 %v3342_v41  ;;  %v3343_v19 = vsub.f32 %v3341_v18, %v3342_v41 }
 0x7b9   : > { %3630 = vmatpush.xpose.msrb.mxu3 %v10142_v20 }
 0x7ba   : > { %v3344_v63 = vand.u32 4294901760, %v3343_v19  ;;  %v3830_v19 = vand.u32 4294901760, %v2003_v5 }
 0x7bc   : > { %3345 = vmatmul.f32.vlgmr.msra.gmra.mxu0 %v3344_v63  ;;  %3477 = vmatmul.f32.vlgmr.msrb.gmra.mxu1 %v3340_v16  ;;  %v2002_v63 = vld [vmem:[%s11466_s3 + $0x30] sm:$0xff] }
 0x7bd   : > { %3559 = vmatpush.xpose.msra.mxu0 %v10145_v4 }
 0x7be   : > { %3512 = vmatmul.f32.vlgmr.msra.gmra.mxu2 %v3511_v40  ;;  %v3858_v40 = vsub.f32 %v2003_v5, %v3830_v19  ;;  %v8962_v5 = vld [vmem:[%s9680_s11] sm:$0xff] }
 0x7c0   : > { %3538 = vmatmul.f32.vlgmr.msra.gmra.mxu3 %v3507_v57 }
 0x7c4   : > { %3454 = vmatmul.f32.vlgmr.msrb.gmra.mxu0 %v3340_v16  ;;  %3586 = vmatmul.f32.vlgmr.msra.gmra.mxu1 %v3509_v37 }
 0x7c6   : > { %3610 = vmatmul.f32.vlgmr.msrb.gmra.mxu2 %v3507_v57 }
 0x7c8   : > { %3632 = vmatmul.f32.vlgmr.msrb.gmra.mxu3 %v3507_v57 }
 0x7cc   : > { %3562 = vmatmul.f32.vlgmr.msra.gmra.mxu0 %v3508_v2 }
 0x831   : > { %v10156_v9 = vpop.f32.mrf.mxu1 }
 0x839   : > { %v10158_v10 = vpop.f32.mrf.mxu0  ;;  %v10160_v11 = vpop.f32.mrf.mxu2 }
 0x83a   : > { %v10164_v17 = vpop.f32.mrf.mxu1 }
 0x83b   : > { %v10162_v20 = vpop.f32.mrf.mxu3 }
 0x841   : > { %v10166_v25 = vpop.f32.mrf.mxu0  ;;  %v3513_v39 = vpop.f32.mrf.mxu2 }
 0x842   : > { %v3587_v29 = vpop.f32.mrf.mxu1 }
 0x843   : > { %v3539_v21 = vpop.f32.mrf.mxu3 }
 0x844   : > { %v3540_v4 = vadd.f32 %v3539_v21, %v3513_v39  ;;  %v3832_v39 = vand.u32 4294901760, %v2002_v63  ;;  %v3859_v21 = vand.u32 4294901760, %v3858_v40 }
 0x849   : > { %v3563_v26 = vpop.f32.mrf.mxu0  ;;  %v3611_v35 = vpop.f32.mrf.mxu2 }
 0x84a   : > { %v3564_v28 = vadd.f32 %v3563_v26, %v3540_v4  ;;  %v3864_v4 = vsub.f32 %v2002_v63, %v3832_v39  ;;  %v3860_v26 = vsub.f32 %v3858_v40, %v3859_v21 }
 0x84b   : > { %v3633_v43 = vpop.f32.mrf.mxu3 }
 0x84c   : > { %v3588_v30 = vadd.f32 %v3587_v29, %v3564_v28  ;;  %v3865_v28 = vand.u32 4294901760, %v3864_v4  ;;  %v3861_v29 = vand.u32 4294901760, %v3860_v26 }
 0x84e   : > { %v3612_v38 = vadd.f32 %v3611_v35, %v3588_v30  ;;  %v3866_v30 = vsub.f32 %v3864_v4, %v3865_v28 }
 0x850   : > { %v3634_v50 = vadd.f32 %v3633_v43, %v3612_v38  ;;  %v3867_v35 = vand.u32 4294901760, %v3866_v30 }
 0x852   : > { %v3636_v51 = vmul.f32 0.25, %v3634_v50 }
 0x854   : > { %v3637_v52 = vsel %vm2158_vm2, %v3636_v51, -inf }
 0x855   : > { %3638 = vmax.xlane.f32.xlu2 %v3637_v52 }
 0x8c8   : > { %v3639_v54 = vpop.xlane.xlu2 %3638 }
 0x8c9   : > { %v3640_v59 = vsub.f32 %v3636_v51, %v3639_v54 }
 0x8cb   : > { %v3641_v55 = vmul.f32 1.442695, %v3640_v59 }
 0x8cd   : > { %8922 = vpow2.f32 %v3641_v55 }
 0x8d3   : > { %v8923_v60 = vpop.eup %8922 }
 0x8d4   : > { %v3643_v42 = vsel %vm2158_vm2, %v8923_v60, 0.0 }
 0x8d5   : > { %3644 = vadd.xlane.f32.xlu1 %v3643_v42 }
 0x8ee   : > { %3661 = vrot.lane.b32.xlu1 %v10044_v32, %s9269_s6 }
 0x948   : > { %v3645_v45 = vpop.xlane.xlu1 %3644 }
 0x949   : > { %8924 = vrcp.f32 %v3645_v45  ;;  %v3657_v49 = vand.u32 2147483648, %v3645_v45  ;;  %v3655_v27 = vand.u32 2147483647, %v3645_v45  ;;  %vm3651_vm3 = vweird.f32 %v3645_v45 }
 0x94b   : > { %v3658_v33 = vor.u32 1.1754944e-38, %v3657_v49  ;;  %vm3656_vm5 = vcmp.eq.f32.partialorder %v3655_v27, 8.507059e+37 }
 0x94f   : > { %v8925_v46 = vpop.eup %8924 }
 0x950   : > { %v3647_v47 = vmul.f32 %v8925_v46, %v3645_v45  ;;  %vm3652_vm15 = vweird.f32 %v8925_v46 }
 0x951   : > { %vm3653_vm4 = vmor %vm3651_vm3, %vm3652_vm15 }
 0x952   : > { %v3648_v48 = vsub.f32 1.0, %v3647_v47 }
 0x954   : > { %v3649_v53 = vmul.f32 %v8925_v46, %v3648_v48 }
 0x956   : > { %v3650_v44 = vadd.f32 %v8925_v46, %v3649_v53 }
 0x958   : > { %v3654_v36 = vsel %vm3653_vm4, %v8925_v46, %v3650_v44  ;;  %v2723_v44 = vadd.f32 %v10113_v61, %v10115_v62 }
 0x959   : > { %v3659_v14 = vsel %vm3656_vm5, %v3658_v33, %v3654_v36 }
 0x95a   : > { %v3660_v23 = vmul.f32 %v8923_v60, %v3659_v14  ;;  %v2749_v33 = vadd.f32 %v10117_v56, %v2723_v44 }
 0x95c   : > { %v3665_v57 = vsel %vm2158_vm2, %v3660_v23, 0  ;;  %v2774_v36 = vadd.f32 %v10119_v1, %v2749_v33 }
 0x95d   : > { %v3684_v32 = vand.u32 4294901760, %v3665_v57 }
 0x95e   : > { %v2801_v14 = vadd.f32 %v10123_v7, %v2774_v36  ;;  %v4023_v36 = vld [vmem:[%s11479_s23 + $0x10] sm:$0xff] }
 0x95f   : > { %v3685_v15 = vsub.f32 %v3665_v57, %v3684_v32 }
 0x960   : > { %v3662_v24 = vpop.permute.xlu1 %3661  ;;  %v2824_v23 = vadd.f32 %v10121_v6, %v2801_v14 }
 0x961   : > { %v3682_v34 = vand.u32 4294901760, %v3662_v24  ;;  %v3686_v58 = vand.u32 4294901760, %v3685_v15 }
 0x962   : > { %v2854_v57 = vadd.f32 %v10125_v0, %v2824_v23 }
 0x963   : > { %v3709_v2 = vsub.f32 %v3662_v24, %v3682_v34  ;;  %3683 = vmatpush.msrb.mxu0 %v3682_v34  ;;  %3759 = vmatpush.msra.mxu3 %v3682_v34  ;;  %v3687_v3 = vsub.f32 %v3685_v15, %v3686_v58 }
 0x964   : > { %3763 = vmatmul.f32.vlgmr.msra.gmra.mxu3 %v3686_v58 }
 0x965   : > { %v3710_v16 = vand.u32 4294901760, %v3709_v2  ;;  %3736 = vmatpush.msra.mxu2 %v3709_v2  ;;  %v3688_v37 = vand.u32 4294901760, %v3687_v3  ;;  %3862 = vmatpush.msrb.mxu3 %v3861_v29 }
 0x966   : > { %3739 = vmatmul.f32.vlgmr.msra.gmra.mxu2 %v3685_v15  ;;  %v3378_v15 = vadd.f32 %v10156_v9, %v10158_v10 }
 0x967   : > { %v3711_v18 = vsub.f32 %v3709_v2, %v3710_v16  ;;  %3689 = vmatmul.f32.vlgmr.msrb.gmra.mxu0 %v3688_v37  ;;  %3831 = vmatpush.msrb.mxu2 %v3830_v19 }
 0x968   : > { %3785 = vmatpush.msra.mxu0 %v3710_v16  ;;  %3868 = vmatpush.msrb.mxu3 %v3867_v35  ;;  %v4028_v35 = vld [vmem:[%s11479_s23 + $0x38] sm:$0xff] }
 0x969   : > { %v3712_v41 = vand.u32 4294901760, %v3711_v18  ;;  %3833 = vmatpush.msrb.mxu2 %v3832_v39 }
 0x96a   : > { %3890 = vmatpush.msrb.mxu0 %v3858_v40  ;;  %3967 = vmatpush.msra.mxu3 %v3830_v19 }
 0x96b   : > { %3713 = vmatpush.msrb.mxu1 %v3712_v41  ;;  %3942 = vmatpush.msra.mxu2 %v3859_v21 }
 0x96c   : > { %3715 = vmatmul.f32.vlgmr.msrb.gmra.mxu1 %v3684_v32  ;;  %3893 = vmatpush.msrb.mxu0 %v3864_v4 }
 0x96d   : > { %3807 = vmatpush.msra.mxu1 %v3682_v34  ;;  %3946 = vmatpush.msra.mxu2 %v3865_v28  ;;  %v3404_v34 = vadd.f32 %v10160_v11, %v3378_v15 }
 0x96e   : > { %3969 = vmatpush.msra.mxu3 %v3832_v39 }
 0x96f   : > { %3787 = vmatmul.f32.vlgmr.msra.gmra.mxu0 %v3684_v32  ;;  %3915 = vmatpush.msrb.mxu1 %v3830_v19  ;;  %v3429_v1 = vadd.f32 %v10162_v20, %v3404_v34  ;;  %v8890_v20 = vld [vmem:[%s9320_s8] ss:$0 sm:$0xff] }
 0x971   : > { %3917 = vmatpush.msrb.mxu1 %v3832_v39  ;;  %v3456_v0 = vadd.f32 %v10166_v25, %v3429_v1 }
 0x974   : > { %3809 = vmatmul.f32.vlgmr.msra.gmra.mxu1 %v3684_v32  ;;  %v2885_v32 = vadd.f32 %v10127_v8, %v2854_v57 }
 0x976   : > { %v2911_v24 = vadd.f32 %v10131_v13, %v2885_v32  ;;  %v3479_v13 = vadd.f32 %v10164_v17, %v3456_v0  ;;  %v4054_v32 = vand.u32 4294901760, %v4023_v36 }
 0x978   : > { %v2936_v56 = vadd.f32 %v10129_v12, %v2911_v24  ;;  %v4022_v24 = vld [vmem:[%s11479_s23 + $0x8] sm:$0xff] }
 0x97a   : > { %v2963_v58 = vadd.f32 %v10133_v22, %v2936_v56  ;;  %v9270_v22 = vmov 64.0   ;;  %v4056_v56 = vand.u32 4294901760, %v4022_v24 }
 0x97b   : > { %8926 = vrcp.f32 %v9270_v22 }
 0x97c   : > { %v2986_v2 = vadd.f32 %v10135_v31, %v2963_v58 }
 0x97e   : > { %v3481_v16 = vadd.f32 %v3479_v13, %v2986_v2 }
 0x981   : > { %v8927_v17 = vpop.eup %8926 }
 0x982   : > { %v3988_v63 = vmul.f32 64.0, %v8927_v17  ;;  %vm3992_vm6 = vweird.f32 %v8927_v17 }
 0x984   : > { %v3989_v40 = vsub.f32 1.0, %v3988_v63 }
 0x986   : > { %v3990_v31 = vmul.f32 %v8927_v17, %v3989_v40 }
 0x988   : > { %v3991_v39 = vadd.f32 %v8927_v17, %v3990_v31 }
 0x98a   : > { %v10197_v21 = vsel %vm3992_vm6, %v8927_v17, %v3991_v39  ;;  %v8891_v39 = vld [vmem:[%s11480_s18] ss:$0 sm:$0xff]  ;;  %s11491_s18 = sld [smem:[#allocation31_spill]] }
 0x9e4   : > { %v3690_v38 = vpop.f32.mrf.mxu0 }
 0x9e7   : > { %v3764_v54 = vpop.f32.mrf.mxu3 }
 0x9e9   : > { %v3716_v43 = vpop.f32.mrf.mxu1  ;;  %v3740_v51 = vpop.f32.mrf.mxu2 }
 0x9ea   : > { %v3717_v50 = vadd.f32 %v3716_v43, %v3690_v38  ;;  %v10206_v38 = vand.u32 4294901760, %v4028_v35  ;;  %v4027_v43 = vld [vmem:[%s11479_s23 + $0x30] sm:$0xff] }
 0x9ec   : > { %v3741_v52 = vadd.f32 %v3740_v51, %v3717_v50  ;;  %v3788_v55 = vpop.f32.mrf.mxu0  ;;  %v10210_v50 = vsub.f32 %v4028_v35, %v10206_v38  ;;  %v10212_v51 = vand.u32 4294901760, %v4027_v43  ;;  %4045 = vmatpush.msra.mxu0 %v10206_v38 }
 0x9ee   : > { %v3765_v59 = vadd.f32 %v3764_v54, %v3741_v52  ;;  %v4026_v52 = vld [vmem:[%s11479_s23 + $0x28] sm:$0xff]  ;;  %v4079_v54 = vand.u32 4294901760, %v10210_v50  ;;  %4047 = vmatpush.msra.mxu0 %v10212_v51 }
 0x9f0   : > { %v3789_v60 = vadd.f32 %v3788_v55, %v3765_v59  ;;  %v10219_v59 = vsub.f32 %v4027_v43, %v10212_v51  ;;  %v10221_v55 = vand.u32 4294901760, %v4026_v52 }
 0x9f1   : > { %v3810_v42 = vpop.f32.mrf.mxu1 }
 0x9f2   : > { %v3811_v45 = vadd.f32 %v3810_v42, %v3789_v60  ;;  %v4025_v60 = vld [vmem:[%s11479_s23 + $0x20] sm:$0xff]  ;;  %v4080_v42 = vsub.f32 %v10210_v50, %v4079_v54  ;;  %4049 = vmatpush.msra.mxu0 %v10221_v55 }
 0x9f4   : > { %v3814_v46 = vsel %vm2004_vm1, %v3811_v45, 0  ;;  %v4085_v45 = vand.u32 4294901760, %v10219_v59 }
 0x9f5   : > { %v3834_v47 = vand.u32 4294901760, %v3814_v46 }
 0x9f7   : > { %v3835_v48 = vsub.f32 %v3814_v46, %v3834_v47  ;;  %3870 = vmatmul.f32.vlgmr.msrb.gmra.mxu3 %v3834_v47  ;;  %v10230_v46 = vsub.f32 %v4026_v52, %v10221_v55 }
 0x9f8   : > { %4177 = vmatpush.msrb.mxu3 %v10206_v38 }
 0x9f9   : > { %3896 = vmatmul.f32.vlgmr.msrb.gmra.mxu0 %v3835_v48  ;;  %v3836_v49 = vand.u32 4294901760, %v3835_v48 }
 0x9fa   : > { %4179 = vmatpush.msrb.mxu3 %v10212_v51 }
 0x9fb   : > { %3921 = vmatmul.f32.vlgmr.msrb.gmra.mxu1 %v3836_v49  ;;  %v3837_v53 = vsub.f32 %v3835_v48, %v3836_v49  ;;  %v4024_v48 = vld [vmem:[%s11479_s23 + $0x18] sm:$0xff]  ;;  %v4081_v49 = vand.u32 4294901760, %v4080_v42 }
 0x9fc   : > { %4181 = vmatpush.msrb.mxu3 %v10221_v55  ;;  %v10243_v33 = vand.u32 4294901760, %v4024_v48 }
 0x9fd   : > { %v3838_v27 = vand.u32 4294901760, %v3837_v53  ;;  %v4086_v53 = vsub.f32 %v10219_v59, %v4085_v45  ;;  %4082 = vmatpush.msra.mxu1 %v4081_v49  ;;  %v4329_v49 = vld [vmem:[%s11482_s26 + $0x60] sm:$0xff] }
 0x9fe   : > { %v4102_v15 = vsub.f32 %v4024_v48, %v10243_v33 }
 0x9ff   : > { %3839 = vmatmul.f32.vlgmr.msrb.gmra.mxu2 %v3838_v27  ;;  %3971 = vmatmul.f32.vlgmr.msra.gmra.mxu3 %v3834_v47  ;;  %v4091_v27 = vand.u32 4294901760, %v10230_v46  ;;  %v4087_v14 = vand.u32 4294901760, %v4086_v53 }
 0xa00   : > { %4140 = vmatpush.msrb.mxu2 %v10210_v50  ;;  %v4103_v1 = vand.u32 4294901760, %v4102_v15 }
 0xa01   : > { %v4092_v23 = vsub.f32 %v10230_v46, %v4091_v27  ;;  %4088 = vmatpush.msra.mxu1 %v4087_v14 }
 0xa02   : > { %4143 = vmatpush.msrb.mxu2 %v10219_v59 }
 0xa03   : > { %v4093_v34 = vand.u32 4294901760, %v4092_v23 }
 0xa04   : > { %4146 = vmatpush.msrb.mxu2 %v10230_v46 }
 0xa05   : > { %4094 = vmatpush.msra.mxu1 %v4093_v34 }
 0xa07   : > { %3948 = vmatmul.f32.vlgmr.msra.gmra.mxu2 %v3834_v47  ;;  %v10232_v47 = vand.u32 4294901760, %v4025_v60 }
 0xa09   : > { %v4096_v44 = vsub.f32 %v4025_v60, %v10232_v47  ;;  %4051 = vmatpush.msra.mxu0 %v10232_v47  ;;  %4183 = vmatpush.msrb.mxu3 %v10232_v47 }
 0xa0b   : > { %v4097_v57 = vand.u32 4294901760, %v4096_v44  ;;  %4149 = vmatpush.msrb.mxu2 %v4096_v44  ;;  %4053 = vmatpush.msra.mxu0 %v10243_v33 }
 0xa0c   : > { %4185 = vmatpush.msrb.mxu3 %v10243_v33 }
 0xa0d   : > { %4152 = vmatpush.msrb.mxu2 %v4102_v15  ;;  %4055 = vmatpush.msra.mxu0 %v4054_v32 }
 0xa0e   : > { %4187 = vmatpush.msrb.mxu3 %v4054_v32 }
 0xa0f   : > { %4057 = vmatpush.msra.mxu0 %v4056_v56 }
 0xa10   : > { %4189 = vmatpush.msrb.mxu3 %v4056_v56 }
 0xa76   : > { %v3897_v6 = vpop.f32.mrf.mxu0 }
 0xa78   : > { %v3922_v9 = vpop.f32.mrf.mxu1 }
 0xa7a   : > { %v3871_v61 = vpop.f32.mrf.mxu3 }
 0xa82   : > { %v3840_v62 = vpop.f32.mrf.mxu2  ;;  %v3972_v12 = vpop.f32.mrf.mxu3 }
 0xa83   : > { %v3872_v7 = vadd.f32 %v3871_v61, %v3840_v62  ;;  %v4098_v61 = vsub.f32 %v4096_v44, %v4097_v57  ;;  %v4108_v62 = vsub.f32 %v4023_v36, %v4054_v32  ;;  %v4328_v36 = vld [vmem:[%s11482_s26 + $0x58] sm:$0xff] }
 0xa85   : > { %v3898_v8 = vadd.f32 %v3897_v6, %v3872_v7  ;;  %v4021_v7 = vld [vmem:[%s11479_s23] sm:$0xff]  ;;  %v4099_v6 = vand.u32 4294901760, %v4098_v61  ;;  %v4109_v0 = vand.u32 4294901760, %v4108_v62  ;;  %4155 = vmatpush.msrb.mxu2 %v4108_v62 }
 0xa86   : > { %v4058_v58 = vand.u32 4294901760, %v4021_v7 }
 0xa87   : > { %v3923_v10 = vadd.f32 %v3922_v9, %v3898_v8  ;;  %v4114_v8 = vsub.f32 %v4022_v24, %v4056_v56  ;;  %v4104_v9 = vsub.f32 %v4102_v15, %v4103_v1  ;;  %4100 = vmatpush.msra.mxu1 %v4099_v6  ;;  %v4110_v13 = vsub.f32 %v4108_v62, %v4109_v0  ;;  %v4327_v24 = vld [vmem:[%s11482_s26 + $0x50] sm:$0xff] }
 0xa88   : > { %4059 = vmatpush.msra.mxu0 %v4058_v58  ;;  %4191 = vmatpush.msrb.mxu3 %v4058_v58  ;;  %v10310_v15 = vand.u32 4294901760, %v4328_v36 }
 0xa89   : > { %v4105_v2 = vand.u32 4294901760, %v4104_v9  ;;  %4158 = vmatpush.msrb.mxu2 %v4114_v8 }
 0xa8a   : > { %v3949_v11 = vpop.f32.mrf.mxu2  ;;  %4210 = vmatpush.msrb.mxu0 %v4079_v54 }
 0xa8b   : > { %v3950_v3 = vadd.f32 %v3949_v11, %v3923_v10  ;;  %v4115_v10 = vand.u32 4294901760, %v4114_v8  ;;  %v4120_v11 = vsub.f32 %v4021_v7, %v4058_v58  ;;  %4106 = vmatpush.msra.mxu1 %v4105_v2  ;;  %v4326_v7 = vld [vmem:[%s11482_s26 + $0x48] sm:$0xff] }
 0xa8c   : > { %4214 = vmatpush.msrb.mxu0 %v4085_v45  ;;  %v4330_v45 = vld [vmem:[%s11482_s26 + $0x68] sm:$0xff] }
 0xa8d   : > { %v3973_v37 = vadd.f32 %v3972_v12, %v3950_v3  ;;  %v4111_v3 = vand.u32 4294901760, %v4110_v13  ;;  %v4116_v12 = vsub.f32 %v4114_v8, %v4115_v10  ;;  %4161 = vmatpush.msrb.mxu2 %v4120_v11  ;;  %v10282_v48 = vand.u32 4294901760, %v4330_v45  ;;  %v4325_v13 = vld [vmem:[%s11482_s26 + $0x40] sm:$0xff] }
 0xa8e   : > { %4218 = vmatpush.msrb.mxu0 %v4091_v27 }
 0xa8f   : > { %v3975_v18 = vadd.f32 %v3973_v37, %v3481_v16  ;;  %v4121_v16 = vand.u32 4294901760, %v4120_v11  ;;  %v4117_v37 = vand.u32 4294901760, %v4116_v12  ;;  %4112 = vmatpush.msra.mxu1 %v4111_v3  ;;  %v10293_v44 = vsub.f32 %v4330_v45, %v10282_v48 }
 0xa90   : > { %4222 = vmatpush.msrb.mxu0 %v4097_v57  ;;  %v10343_v3 = vand.u32 4294901760, %v4325_v13 }
 0xa91   : > { %v3980_v41 = vadd.f32 %v8890_v20, %v3975_v18  ;;  %v4122_v20 = vsub.f32 %v4120_v11, %v4121_v16  ;;  %4118 = vmatpush.msra.mxu1 %v4117_v37  ;;  %v4392_v57 = vand.u32 4294901760, %v10293_v44 }
 0xa92   : > { %4226 = vmatpush.msrb.mxu0 %v4103_v1  ;;  %v10322_v1 = vsub.f32 %v4328_v36, %v10310_v15 }
 0xa93   : > { %v3981_v19 = vadd.f32 %v8962_v5, %v3980_v41  ;;  %v4123_v18 = vand.u32 4294901760, %v4122_v20  ;;  %v4393_v61 = vsub.f32 %v10293_v44, %v4392_v57 }
 0xa94   : > { %4230 = vmatpush.msrb.mxu0 %v4109_v0  ;;  %v4404_v9 = vand.u32 4294901760, %v10322_v1 }
 0xa95   : > { %v3984_v25 = vsel %vm1257_vm0, %v3981_v19, 0.0  ;;  %4124 = vmatpush.msra.mxu1 %v4123_v18  ;;  %v4394_v6 = vand.u32 4294901760, %v4393_v61  ;;  %v10357_v18 = vsub.f32 %v4325_v13, %v10343_v3 }
 0xa96   : > { %3985 = vadd.xlane.f32.xlu0 %v3984_v25  ;;  %4234 = vmatpush.msrb.mxu0 %v4115_v10  ;;  %v4405_v12 = vsub.f32 %v10322_v1, %v4404_v9 }
 0xa97   : > { %4253 = vmatpush.msrb.mxu1 %v10206_v38 }
 0xa98   : > { %4238 = vmatpush.msrb.mxu0 %v4121_v16  ;;  %v4324_v16 = vld [vmem:[%s11482_s26 + $0x38] sm:$0xff] }
 0xa99   : > { %4255 = vmatpush.msrb.mxu1 %v10212_v51 }
 0xa9b   : > { %4257 = vmatpush.msrb.mxu1 %v10221_v55  ;;  %v4331_v55 = vld [vmem:[%s11482_s26 + $0x70] sm:$0xff] }
 0xa9c   : > { %v10273_v42 = vand.u32 4294901760, %v4331_v55 }
 0xa9d   : > { %4259 = vmatpush.msrb.mxu1 %v10232_v47 }
 0xa9e   : > { %v10280_v47 = vsub.f32 %v4331_v55, %v10273_v42 }
 0xa9f   : > { %4261 = vmatpush.msrb.mxu1 %v10243_v33  ;;  %v10295_v33 = vand.u32 4294901760, %v4329_v49 }
 0xaa0   : > { %v4386_v27 = vand.u32 4294901760, %v10280_v47 }
 0xaa1   : > { %4263 = vmatpush.msrb.mxu1 %v4054_v32  ;;  %v10306_v32 = vsub.f32 %v4329_v49, %v10295_v33 }
 0xaa2   : > { %v4387_v23 = vsub.f32 %v10280_v47, %v4386_v27 }
 0xaa3   : > { %4265 = vmatpush.msrb.mxu1 %v4056_v56  ;;  %v4398_v62 = vand.u32 4294901760, %v10306_v32  ;;  %v10318_v56 = vand.u32 4294901760, %v4327_v24 }
 0xaa4   : > { %v4388_v34 = vand.u32 4294901760, %v4387_v23  ;;  %v8893_v23 = vld [vmem:[%s11483_s1] ss:$0 sm:$0xff]  ;;  %s11496_s1 = sld [smem:[#allocation35_spill]] }
 0xaa5   : > { %4267 = vmatpush.msrb.mxu1 %v4058_v58  ;;  %v4399_v0 = vsub.f32 %v10306_v32, %v4398_v62  ;;  %v10331_v8 = vsub.f32 %v4327_v24, %v10318_v56  ;;  %v10333_v58 = vand.u32 4294901760, %v4326_v7 }
 0xaa7   : > { %v4400_v10 = vand.u32 4294901760, %v4399_v0  ;;  %v4410_v11 = vand.u32 4294901760, %v10331_v8  ;;  %v10341_v2 = vsub.f32 %v4326_v7, %v10333_v58  ;;  %v4318_v0 = vld [vmem:[%s11482_s26 + $0x8] sm:$0xff] }
 0xaa9   : > { %v4411_v37 = vsub.f32 %v10331_v8, %v4410_v11  ;;  %v4416_v20 = vand.u32 4294901760, %v10341_v2 }
 0xb09   : > { %v3986_v4 = vpop.xlane.xlu0 %3985 }
 0xb0a   : > { %v3994_v26 = vmul.f32 %v10197_v21, %v3986_v4 }
 0xb0c   : > { %v10200_v28 = vsub.f32 %v3981_v19, %v3994_v26 }
 0xb0e   : > { %v3996_v29 = vmul.f32 %v10200_v28, %v10200_v28 }
 0xb10   : > { %v3997_v30 = vsel %vm1257_vm0, %v3996_v29, 0.0  ;;  %v8892_v29 = vld [vmem:[%s11481_s10] ss:$0 sm:$0xff]  ;;  %s11495_s10 = sld [smem:[#allocation36_spill]] }
 0xb11   : > { %3998 = vadd.xlane.f32.xlu0 %v3997_v30 }
 0xb84   : > { %v3999_v41 = vpop.xlane.xlu0 %3998 }
 0xb85   : > { %v4000_v5 = vmul.f32 %v3999_v41, %v10197_v21  ;;  %v10359_v41 = vand.u32 4294901760, %v4324_v16 }
 0xb87   : > { %v4001_v19 = vadd.f32 1e-05, %v4000_v5  ;;  %v4406_v5 = vand.u32 4294901760, %v4405_v12 }
 0xb89   : > { %8928 = vrsqrt.f32 %v4001_v19  ;;  %vm4008_vm8 = vweird.f32 %v4001_v19 }
 0xb8f   : > { %v8929_v25 = vpop.eup %8928 }
 0xb90   : > { %v4003_v22 = vmul.f32 %v8929_v25, %v4001_v19  ;;  %vm4009_vm7 = vweird.f32 %v8929_v25  ;;  %v4323_v19 = vld [vmem:[%s11482_s26 + $0x30] sm:$0xff] }
 0xb91   : > { %vm4010_vm9 = vmor %vm4008_vm8, %vm4009_vm7 }
 0xb92   : > { %v4004_v17 = vmul.f32 %v8929_v25, %v4003_v22  ;;  %v4417_v22 = vsub.f32 %v10341_v2, %v4416_v20 }
 0xb94   : > { %v4005_v63 = vmul.f32 0.5, %v4004_v17  ;;  %v4422_v17 = vand.u32 4294901760, %v10357_v18 }
 0xb96   : > { %v4006_v40 = vsub.f32 1.5, %v4005_v63  ;;  %v10370_v63 = vsub.f32 %v4324_v16, %v10359_v41 }
 0xb98   : > { %v4007_v31 = vmul.f32 %v8929_v25, %v4006_v40  ;;  %v10373_v40 = vand.u32 4294901760, %v4323_v19 }
 0xb9a   : > { %v4011_v4 = vsel %vm4010_vm9, %v8929_v25, %v4007_v31  ;;  %v4412_v25 = vand.u32 4294901760, %v4411_v37  ;;  %v4322_v31 = vld [vmem:[%s11482_s26 + $0x28] sm:$0xff] }
 0xb9b   : > { %v4012_v26 = vmul.f32 %v4011_v4, %v10200_v28  ;;  %v4332_v28 = vld [vmem:[%s11482_s26 + $0x78] sm:$0xff]  ;;  %v4423_v4 = vsub.f32 %v10357_v18, %v4422_v17 }
 0xb9c   : > { %v10267_v59 = vand.u32 4294901760, %v4332_v28 }
 0xb9d   : > { %v4016_v30 = vmul.f32 %v8891_v39, %v4012_v26  ;;  %v4418_v39 = vand.u32 4294901760, %v4417_v22  ;;  %v4428_v26 = vand.u32 4294901760, %v10370_v63 }
 0xb9e   : > { %v10271_v60 = vsub.f32 %v4332_v28, %v10267_v59  ;;  %4338 = vmatpush.msra.mxu2 %v10267_v59  ;;  %v4320_v28 = vld [vmem:[%s11482_s26 + $0x18] sm:$0xff] }
 0xb9f   : > { %v10262_v35 = vadd.f32 %v8892_v29, %v4016_v30  ;;  %v10381_v29 = vand.u32 4294901760, %v4322_v31  ;;  %v10386_v30 = vsub.f32 %v4323_v19, %v10373_v40  ;;  %v10439_v19 = vand.u32 4294901760, %v4318_v0 }
 0xba0   : > { %v4380_v46 = vand.u32 4294901760, %v10271_v60  ;;  %4340 = vmatpush.msra.mxu2 %v10273_v42 }
 0xba1   : > { %v4034_v38 = vsel %vm1257_vm0, %v10262_v35, 0 }
 0xba2   : > { %v4060_v43 = vand.u32 4294901760, %v4034_v38  ;;  %v4381_v53 = vsub.f32 %v10271_v60, %v4380_v46  ;;  %4342 = vmatpush.msra.mxu2 %v10282_v48 }
 0xba4   : > { %4126 = vmatmul.f32.vlgmr.msra.gmra.mxu1 %v4060_v43  ;;  %v4061_v50 = vsub.f32 %v4034_v38, %v4060_v43  ;;  %v4382_v14 = vand.u32 4294901760, %v4381_v53  ;;  %4344 = vmatpush.msra.mxu2 %v10295_v33  ;;  %v4321_v38 = vld [vmem:[%s11482_s26 + $0x20] sm:$0xff]  ;;  %v10407_v53 = vand.u32 4294901760, %v4320_v28 }
 0xba5   : > { %4534 = vmatpush.msra.mxu1 %v10267_v59 }
 0xba6   : > { %4164 = vmatmul.f32.vlgmr.msrb.gmra.mxu2 %v4061_v50  ;;  %v4062_v51 = vand.u32 4294901760, %v4061_v50  ;;  %4383 = vmatpush.msra.mxu3 %v4382_v14  ;;  %v4319_v14 = vld [vmem:[%s11482_s26 + $0x10] sm:$0xff]  ;;  %v10422_v61 = vsub.f32 %v4320_v28, %v10407_v53 }
 0xba7   : > { %4536 = vmatpush.msra.mxu1 %v10273_v42  ;;  %4346 = vmatpush.msra.mxu2 %v10310_v15  ;;  %v10424_v7 = vand.u32 4294901760, %v4319_v14 }
 0xba8   : > { %4195 = vmatmul.f32.vlgmr.msrb.gmra.mxu3 %v4062_v51  ;;  %v4063_v52 = vsub.f32 %v4061_v50, %v4062_v51  ;;  %v4429_v50 = vsub.f32 %v10370_v63, %v4428_v26  ;;  %v10394_v51 = vsub.f32 %v4322_v31, %v10381_v29  ;;  %v4452_v12 = vand.u32 4294901760, %v10422_v61 }
 0xba9   : > { %4538 = vmatpush.msra.mxu1 %v10282_v48  ;;  %4389 = vmatpush.msra.mxu3 %v4388_v34  ;;  %v10435_v16 = vsub.f32 %v4319_v14, %v10424_v7 }
 0xbaa   : > { %v4064_v54 = vand.u32 4294901760, %v4063_v52  ;;  %4348 = vmatpush.msra.mxu2 %v10318_v56  ;;  %v10396_v52 = vand.u32 4294901760, %v4321_v38  ;;  %v4430_v55 = vand.u32 4294901760, %v4429_v50  ;;  %v4440_v45 = vand.u32 4294901760, %v10394_v51 }
 0xbab   : > { %4540 = vmatpush.msra.mxu1 %v10295_v33  ;;  %4395 = vmatpush.msra.mxu3 %v4394_v6 }
 0xbac   : > { %4065 = vmatmul.f32.vlgmr.msra.gmra.mxu0 %v4064_v54  ;;  %4269 = vmatmul.f32.vlgmr.msrb.gmra.mxu1 %v4060_v43  ;;  %v4434_v54 = vand.u32 4294901760, %v10386_v30  ;;  %v10405_v49 = vsub.f32 %v4321_v38, %v10396_v52  ;;  %v4441_v24 = vsub.f32 %v10394_v51, %v4440_v45  ;;  %v10450_v38 = vsub.f32 %v4318_v0, %v10439_v19 }
 0xbad   : > { %4481 = vmatpush.msra.mxu0 %v10271_v60  ;;  %4542 = vmatpush.msra.mxu1 %v10310_v15 }
 0xbae   : > { %4350 = vmatpush.msra.mxu2 %v10333_v58  ;;  %4401 = vmatpush.msra.mxu3 %v4400_v10  ;;  %v4435_v36 = vsub.f32 %v10386_v30, %v4434_v54  ;;  %v4446_v34 = vand.u32 4294901760, %v10405_v49  ;;  %v4442_v13 = vand.u32 4294901760, %v4441_v24  ;;  %v4464_v14 = vand.u32 4294901760, %v10450_v38 }
 0xbaf   : > { %4484 = vmatpush.msra.mxu0 %v10280_v47  ;;  %4544 = vmatpush.msra.mxu1 %v10318_v56 }
 0xbb0   : > { %4352 = vmatpush.msra.mxu2 %v10343_v3  ;;  %4407 = vmatpush.msra.mxu3 %v4406_v5  ;;  %v4436_v6 = vand.u32 4294901760, %v4435_v36  ;;  %v4447_v10 = vsub.f32 %v10405_v49, %v4446_v34 }
 0xbb1   : > { %4487 = vmatpush.msra.mxu0 %v10293_v44  ;;  %4546 = vmatpush.msra.mxu1 %v10333_v58 }
 0xbb2   : > { %4354 = vmatpush.msra.mxu2 %v10359_v41  ;;  %4413 = vmatpush.msra.mxu3 %v4412_v25  ;;  %v4317_v25 = vld [vmem:[%s11482_s26] sm:$0xff]  ;;  %v4448_v31 = vand.u32 4294901760, %v4447_v10 }
 0xbb3   : > { %4490 = vmatpush.msra.mxu0 %v10306_v32  ;;  %4548 = vmatpush.msra.mxu1 %v10343_v3 }
 0xbb4   : > { %4240 = vmatmul.f32.vlgmr.msrb.gmra.mxu0 %v4060_v43  ;;  %4356 = vmatpush.msra.mxu2 %v10373_v40  ;;  %v4424_v43 = vand.u32 4294901760, %v4423_v4  ;;  %v4458_v4 = vand.u32 4294901760, %v10435_v16 }
 0xbb5   : > { %4493 = vmatpush.msra.mxu0 %v10322_v1  ;;  %4550 = vmatpush.msra.mxu1 %v10359_v41 }
 0xbb6   : > { %4419 = vmatpush.msra.mxu3 %v4418_v39  ;;  %4358 = vmatpush.msra.mxu2 %v10381_v29  ;;  %v4453_v39 = vsub.f32 %v10422_v61, %v4452_v12 }
 0xbb7   : > { %4496 = vmatpush.msra.mxu0 %v10331_v8  ;;  %4552 = vmatpush.msra.mxu1 %v10373_v40 }
 0xbb8   : > { %4425 = vmatpush.msra.mxu3 %v4424_v43  ;;  %4360 = vmatpush.msra.mxu2 %v10396_v52  ;;  %v10452_v43 = vand.u32 4294901760, %v4317_v25  ;;  %v4454_v28 = vand.u32 4294901760, %v4453_v39 }
 0xbb9   : > { %4499 = vmatpush.msra.mxu0 %v10341_v2  ;;  %4554 = vmatpush.msra.mxu1 %v10381_v29 }
 0xbba   : > { %4431 = vmatpush.msra.mxu3 %v4430_v55  ;;  %4362 = vmatpush.msra.mxu2 %v10407_v53  ;;  %v4459_v55 = vsub.f32 %v10435_v16, %v4458_v4 }
 0xbbb   : > { %4502 = vmatpush.msra.mxu0 %v10357_v18  ;;  %4556 = vmatpush.msra.mxu1 %v10396_v52 }
 0xbbc   : > { %4437 = vmatpush.msra.mxu3 %v4436_v6  ;;  %4364 = vmatpush.msra.mxu2 %v10424_v7  ;;  %v4460_v6 = vand.u32 4294901760, %v4459_v55 }
 0xbbd   : > { %4505 = vmatpush.msra.mxu0 %v10370_v63  ;;  %4558 = vmatpush.msra.mxu1 %v10407_v53 }
 0xbbe   : > { %4443 = vmatpush.msra.mxu3 %v4442_v13  ;;  %4366 = vmatpush.msra.mxu2 %v10439_v19  ;;  %v4465_v13 = vsub.f32 %v10450_v38, %v4464_v14 }
 0xbbf   : > { %4508 = vmatpush.msra.mxu0 %v10386_v30  ;;  %4560 = vmatpush.msra.mxu1 %v10424_v7 }
 0xbc0   : > { %4449 = vmatpush.msra.mxu3 %v4448_v31  ;;  %4368 = vmatpush.msra.mxu2 %v10452_v43 }
 0xbc1   : > { %4511 = vmatpush.msra.mxu0 %v10394_v51  ;;  %4562 = vmatpush.msra.mxu1 %v10439_v19 }
 0xbc2   : > { %4575 = vmatpush.msrb.mxu2 %v4380_v46  ;;  %4455 = vmatpush.msra.mxu3 %v4454_v28  ;;  %v4466_v46 = vand.u32 4294901760, %v4465_v13  ;;  %v8894_v28 = vld [vmem:[%s11484_s24] ss:$0 sm:$0xff]  ;;  %s11497_s24 = sld [smem:[#allocation37_spill]] }
 0xbc3   : > { %4514 = vmatpush.msra.mxu0 %v10405_v49  ;;  %4564 = vmatpush.msra.mxu1 %v10452_v43 }
 0xbc4   : > { %4579 = vmatpush.msrb.mxu2 %v4386_v27  ;;  %4461 = vmatpush.msra.mxu3 %v4460_v6 }
 0xbc5   : > { %4517 = vmatpush.msra.mxu0 %v10422_v61 }
 0xbc6   : > { %4583 = vmatpush.msrb.mxu2 %v4392_v57  ;;  %4467 = vmatpush.msra.mxu3 %v4466_v46 }
 0xbc7   : > { %4520 = vmatpush.msra.mxu0 %v10435_v16 }
 0xbc8   : > { %4587 = vmatpush.msrb.mxu2 %v4398_v62 }
 0xbc9   : > { %4523 = vmatpush.msra.mxu0 %v10450_v38 }
 0xbca   : > { %4591 = vmatpush.msrb.mxu2 %v4404_v9 }
 0xbcc   : > { %4595 = vmatpush.msrb.mxu2 %v4410_v11 }
 0xbce   : > { %4599 = vmatpush.msrb.mxu2 %v4416_v20 }
 0xbd0   : > { %4603 = vmatpush.msrb.mxu2 %v4422_v17 }
 0xbd2   : > { %4607 = vmatpush.msrb.mxu2 %v4428_v26 }
 0xbd4   : > { %4611 = vmatpush.msrb.mxu2 %v4434_v54 }
 0xbd6   : > { %4615 = vmatpush.msrb.mxu2 %v4440_v45 }
 0xbd8   : > { %4619 = vmatpush.msrb.mxu2 %v4446_v34 }
 0xbda   : > { %4623 = vmatpush.msrb.mxu2 %v4452_v12 }
 0xbdc   : > { %4627 = vmatpush.msrb.mxu2 %v4458_v4 }
 0xbde   : > { %4631 = vmatpush.msrb.mxu2 %v4464_v14 }
 0xc21   : > { %v4127_v37 = vpop.f32.mrf.mxu1 }
 0xc29   : > { %v4066_v5 = vpop.f32.mrf.mxu0  ;;  %v4165_v36 = vpop.f32.mrf.mxu2 }
 0xc2a   : > { %v4067_v22 = vadd.f32 %v8893_v23, %v4066_v5  ;;  %v10462_v23 = vsub.f32 %v4317_v25, %v10452_v43 }
 0xc2b   : > { %v4196_v0 = vpop.f32.mrf.mxu3 }
 0xc2c   : > { %v4128_v50 = vadd.f32 %v4127_v37, %v4067_v22  ;;  %v4470_v10 = vand.u32 4294901760, %v10462_v23  ;;  %4526 = vmatpush.msra.mxu0 %v10462_v23  ;;  %v4270_v22 = vpop.f32.mrf.mxu1 }
 0xc2e   : > { %v4166_v24 = vadd.f32 %v4165_v36, %v4128_v50  ;;  %v4471_v5 = vsub.f32 %v10462_v23, %v4470_v10  ;;  %4635 = vmatpush.msrb.mxu2 %v4470_v10 }
 0xc30   : > { %v4197_v37 = vadd.f32 %v4196_v0, %v4166_v24  ;;  %v4472_v31 = vand.u32 4294901760, %v4471_v5 }
 0xc31   : > { %v4241_v60 = vpop.f32.mrf.mxu0 }
 0xc32   : > { %v4242_v25 = vadd.f32 %v4241_v60, %v4197_v37  ;;  %4473 = vmatpush.msra.mxu3 %v4472_v31 }
 0xc34   : > { %v10479_v39 = vadd.f32 %v4270_v22, %v4242_v25  ;;  %4642 = vmatpush.msrb.mxu3 %v10267_v59 }
 0xc36   : > { %v10484_v47 = vmul.f32 0.70710677, %v10479_v39  ;;  %4644 = vmatpush.msrb.mxu3 %v10273_v42 }
 0xc38   : > { %v4275_v27 = vmul.f32 %v10484_v47, %v10484_v47  ;;  %4646 = vmatpush.msrb.mxu3 %v10282_v48 }
 0xc3a   : > { %v4276_v44 = vmin.f32 %v4275_v27, 16.0  ;;  %4648 = vmatpush.msrb.mxu3 %v10295_v33 }
 0xc3c   : > { %v4277_v57 = vmul.f32 2.1237322e-06, %v4276_v44  ;;  %v4288_v32 = vmul.f32 3.8918573e-05, %v4276_v44  ;;  %4650 = vmatpush.msrb.mxu3 %v10310_v15 }
 0xc3e   : > { %v4278_v59 = vadd.f32 0.00028619796, %v4277_v57  ;;  %v4289_v62 = vadd.f32 0.001143296, %v4288_v32  ;;  %4652 = vmatpush.msrb.mxu3 %v10318_v56  ;;  %v4717_v32 = vld [vmem:[#allocation2 + $0x30] sm:$0xff] }
 0xc40   : > { %v4279_v42 = vmul.f32 %v4278_v59, %v4276_v44  ;;  %v4290_v1 = vmul.f32 %v4289_v62, %v4276_v44  ;;  %4654 = vmatpush.msrb.mxu3 %v10333_v58  ;;  %v10543_v59 = vand.u32 4294901760, %v4717_v32  ;;  %v4716_v62 = vld [vmem:[#allocation2 + $0x28] sm:$0xff] }
 0xc42   : > { %v4291_v48 = vadd.f32 0.014752088, %v4290_v1  ;;  %v4280_v33 = vadd.f32 0.0036580483, %v4279_v42  ;;  %4656 = vmatpush.msrb.mxu3 %v10343_v3  ;;  %v10548_v1 = vsub.f32 %v4717_v32, %v10543_v59 }
 0xc44   : > { %v4292_v8 = vmul.f32 %v4291_v48, %v4276_v44  ;;  %4658 = vmatpush.msrb.mxu3 %v10359_v41  ;;  %v4281_v56 = vmul.f32 %v4280_v33, %v4276_v44  ;;  %v10551_v48 = vand.u32 4294901760, %v4716_v62  ;;  %v4715_v33 = vld [vmem:[#allocation2 + $0x20] sm:$0xff] }
 0xc46   : > { %v4293_v15 = vadd.f32 0.112945676, %v4292_v8  ;;  %4660 = vmatpush.msrb.mxu3 %v10373_v40  ;;  %v4282_v11 = vadd.f32 0.05243302, %v4281_v56  ;;  %v10557_v56 = vsub.f32 %v4716_v62, %v10551_v48 }
 0xc48   : > { %v4294_v9 = vmul.f32 %v4293_v15, %v4276_v44  ;;  %4662 = vmatpush.msrb.mxu3 %v10381_v29  ;;  %v4283_v20 = vmul.f32 %v4282_v11, %v4276_v44  ;;  %v4775_v15 = vand.u32 4294901760, %v10548_v1 }
 0xc4a   : > { %v4295_v58 = vadd.f32 0.4994258, %v4294_v9  ;;  %4664 = vmatpush.msrb.mxu3 %v10396_v52  ;;  %v4284_v18 = vadd.f32 0.18741608, %v4283_v20  ;;  %v10560_v9 = vand.u32 4294901760, %v4715_v33 }
 0xc4c   : > { %v4296_v2 = vmul.f32 %v4295_v58, %v4276_v44  ;;  %4666 = vmatpush.msrb.mxu3 %v10407_v53  ;;  %v4285_v17 = vmul.f32 %v4284_v18, %v4276_v44  ;;  %v4718_v44 = vld [vmem:[#allocation2 + $0x38] sm:$0xff]  ;;  %v10566_v20 = vsub.f32 %v4715_v33, %v10560_v9 }
 0xc4d   : > { %v10537_v57 = vand.u32 4294901760, %v4718_v44  ;;  %v4714_v58 = vld [vmem:[#allocation2 + $0x18] sm:$0xff] }
 0xc4e   : > { %v4297_v3 = vadd.f32 1.0, %v4296_v2  ;;  %4668 = vmatpush.msrb.mxu3 %v10424_v7  ;;  %v4286_v29 = vadd.f32 1.1283791, %v4285_v17  ;;  %v4273_v7 = vmul.f32 0.5, %v10479_v39  ;;  %v4776_v2 = vsub.f32 %v10548_v1, %v4775_v15 }
 0xc4f   : > { %4735 = vmatpush.msrb.mxu0 %v10537_v57  ;;  %v10569_v18 = vand.u32 4294901760, %v4714_v58 }
 0xc50   : > { %8930 = vrcp.f32 %v4297_v3  ;;  %4670 = vmatpush.msrb.mxu3 %v10439_v19  ;;  %v4309_v26 = vand.u32 2147483648, %v4297_v3  ;;  %v4307_v51 = vand.u32 2147483647, %v4297_v3  ;;  %vm4303_vm11 = vweird.f32 %v4297_v3 }
 0xc51   : > { %v4287_v45 = vmul.f32 %v4286_v29, %v10484_v47  ;;  %4737 = vmatpush.msrb.mxu0 %v10543_v59  ;;  %v4777_v17 = vand.u32 4294901760, %v4776_v2  ;;  %v10577_v29 = vsub.f32 %v4714_v58, %v10569_v18  ;;  %v5218_v2 = vld [vmem:[#allocation7 + $0x30] sm:$0xff] }
 0xc52   : > { %4672 = vmatpush.msrb.mxu3 %v10452_v43  ;;  %v4310_v54 = vor.u32 1.1754944e-38, %v4309_v26  ;;  %vm4308_vm13 = vcmp.eq.f32.partialorder %v4307_v51, 8.507059e+37 }
 0xc53   : > { %4739 = vmatpush.msrb.mxu0 %v10551_v48 }
 0xc55   : > { %4741 = vmatpush.msrb.mxu0 %v10560_v9 }
 0xc56   : > { %v8931_v41 = vpop.eup %8930 }
 0xc57   : > { %v4299_v63 = vmul.f32 %v8931_v41, %v4297_v3  ;;  %vm4304_vm10 = vweird.f32 %v8931_v41  ;;  %v4781_v3 = vand.u32 4294901760, %v10557_v56  ;;  %4743 = vmatpush.msrb.mxu0 %v10569_v18 }
 0xc58   : > { %vm4305_vm12 = vmor %vm4303_vm11, %vm4304_vm10 }
 0xc59   : > { %v4300_v40 = vsub.f32 1.0, %v4299_v63  ;;  %v4782_v63 = vsub.f32 %v10557_v56, %v4781_v3 }
 0xc5b   : > { %v4301_v30 = vmul.f32 %v8931_v41, %v4300_v40  ;;  %v4787_v40 = vand.u32 4294901760, %v10566_v20  ;;  %v4783_v51 = vand.u32 4294901760, %v4782_v63 }
 0xc5d   : > { %v4302_v52 = vadd.f32 %v8931_v41, %v4301_v30  ;;  %v4712_v30 = vld [vmem:[#allocation2 + $0x8] sm:$0xff] }
 0xc5f   : > { %v4306_v49 = vsel %vm4305_vm12, %v8931_v41, %v4302_v52  ;;  %v4713_v41 = vld [vmem:[#allocation2 + $0x10] sm:$0xff]  ;;  %v4788_v52 = vsub.f32 %v10566_v20, %v4787_v40 }
 0xc60   : > { %v4311_v53 = vsel %vm4308_vm13, %v4310_v54, %v4306_v49  ;;  %v10574_v26 = vand.u32 4294901760, %v4713_v41  ;;  %v4793_v49 = vand.u32 4294901760, %v10577_v29 }
 0xc61   : > { %v4312_v34 = vmul.f32 %v4311_v53, %v4287_v45  ;;  %v10585_v45 = vand.u32 4294901760, %v4712_v30  ;;  %v4711_v53 = vld [vmem:[#allocation2] sm:$0xff] }
 0xc62   : > { %v10583_v54 = vsub.f32 %v4713_v41, %v10574_v26  ;;  %4745 = vmatpush.msrb.mxu0 %v10574_v26  ;;  %v10684_v41 = vand.u32 4294901760, %v5218_v2 }
 0xc63   : > { %v8738_v61 = vclamps-f32 %v4312_v34, 1.0  ;;  %v4789_v34 = vand.u32 4294901760, %v4788_v52 }
 0xc64   : > { %4747 = vmatpush.msrb.mxu0 %v10585_v45 }
 0xc65   : > { %v4315_v12 = vadd.f32 1.0, %v8738_v61  ;;  %v4799_v61 = vand.u32 4294901760, %v10583_v54 }
 0xc67   : > { %v4316_v16 = vmul.f32 %v4315_v12, %v4273_v7  ;;  %v10592_v7 = vsub.f32 %v4712_v30, %v10585_v45  ;;  %v10594_v12 = vand.u32 4294901760, %v4711_v53  ;;  %v10692_v30 = vsub.f32 %v5218_v2, %v10684_v41 }
 0xc69   : > { %v4369_v19 = vand.u32 4294901760, %v4316_v16  ;;  %4749 = vmatpush.msrb.mxu0 %v10594_v12 }
 0xc6b   : > { %v4370_v4 = vsub.f32 %v4316_v16, %v4369_v19  ;;  %4475 = vmatmul.f32.vlgmr.msra.gmra.mxu3 %v4369_v19  ;;  %v4794_v16 = vsub.f32 %v10577_v29, %v4793_v49 }
 0xc6c   : > { %4943 = vmatpush.msra.mxu3 %v10537_v57 }
 0xc6d   : > { %4529 = vmatmul.f32.vlgmr.msra.gmra.mxu0 %v4370_v4  ;;  %v4371_v38 = vand.u32 4294901760, %v4370_v4 }
 0xc6e   : > { %4945 = vmatpush.msra.mxu3 %v10543_v59 }
 0xc6f   : > { %4568 = vmatmul.f32.vlgmr.msra.gmra.mxu1 %v4371_v38  ;;  %v4372_v43 = vsub.f32 %v4370_v4, %v4371_v38  ;;  %v4805_v4 = vand.u32 4294901760, %v10592_v7  ;;  %v10601_v38 = vsub.f32 %v4711_v53, %v10594_v12 }
 0xc70   : > { %4947 = vmatpush.msra.mxu3 %v10551_v48 }
 0xc71   : > { %v4373_v50 = vand.u32 4294901760, %v4372_v43  ;;  %v4795_v43 = vand.u32 4294901760, %v4794_v16 }
 0xc72   : > { %4949 = vmatpush.msra.mxu3 %v10560_v9 }
 0xc73   : > { %4374 = vmatmul.f32.vlgmr.msra.gmra.mxu2 %v4373_v50  ;;  %4674 = vmatmul.f32.vlgmr.msrb.gmra.mxu3 %v4369_v19 }
 0xc74   : > { %4951 = vmatpush.msra.mxu3 %v10569_v18 }
 0xc76   : > { %4953 = vmatpush.msra.mxu3 %v10574_v26 }
 0xc78   : > { %4955 = vmatpush.msra.mxu3 %v10585_v45 }
 0xc7a   : > { %4957 = vmatpush.msra.mxu3 %v10594_v12 }
 0xc7b   : > { %4637 = vmatmul.f32.vlgmr.msrb.gmra.mxu2 %v4369_v19  ;;  %v4800_v19 = vsub.f32 %v10583_v54, %v4799_v61 }
 0xc7d   : > { %v4801_v50 = vand.u32 4294901760, %v4800_v19  ;;  %v5273_v19 = vand.u32 4294901760, %v10692_v30 }
 0xcea   : > { %v4530_v24 = vpop.f32.mrf.mxu0 }
 0xcec   : > { %v4569_v0 = vpop.f32.mrf.mxu1 }
 0xcee   : > { %v4476_v55 = vpop.f32.mrf.mxu3 }
 0xcf6   : > { %v4375_v36 = vpop.f32.mrf.mxu2  ;;  %v4675_v60 = vpop.f32.mrf.mxu3 }
 0xcf7   : > { %v4376_v14 = vadd.f32 %v8894_v28, %v4375_v36  ;;  %v4806_v28 = vsub.f32 %v10592_v7, %v4805_v4 }
 0xcf9   : > { %v4477_v23 = vadd.f32 %v4476_v55, %v4376_v14  ;;  %v4811_v55 = vand.u32 4294901760, %v10601_v38  ;;  %v4807_v36 = vand.u32 4294901760, %v4806_v28 }
 0xcfb   : > { %v4531_v6 = vadd.f32 %v4530_v24, %v4477_v23  ;;  %v4812_v14 = vsub.f32 %v10601_v38, %v4811_v55  ;;  %v4970_v23 = vld [vmem:[#allocation5 + $0x38] sm:$0xff] }
 0xcfc   : > { %v10610_v24 = vand.u32 4294901760, %v4970_v23 }
 0xcfd   : > { %v4570_v13 = vadd.f32 %v4569_v0, %v4531_v6  ;;  %v4813_v6 = vand.u32 4294901760, %v4812_v14  ;;  %v4969_v0 = vld [vmem:[#allocation5 + $0x30] sm:$0xff]  ;;  %v5213_v14 = vld [vmem:[#allocation7 + $0x8] sm:$0xff] }
 0xcfe   : > { %v4638_v10 = vpop.f32.mrf.mxu2  ;;  %5116 = vmatpush.msrb.mxu3 %v10610_v24 }
 0xcff   : > { %v4639_v37 = vadd.f32 %v4638_v10, %v4570_v13  ;;  %v10614_v13 = vsub.f32 %v4970_v23, %v10610_v24  ;;  %v10617_v10 = vand.u32 4294901760, %v4969_v0 }
 0xd01   : > { %v4676_v46 = vadd.f32 %v4675_v60, %v4639_v37  ;;  %v4968_v37 = vld [vmem:[#allocation5 + $0x28] sm:$0xff]  ;;  %v10622_v60 = vsub.f32 %v4969_v0, %v10617_v10  ;;  %5118 = vmatpush.msrb.mxu3 %v10617_v10  ;;  %v5018_v52 = vand.u32 4294901760, %v10614_v13 }
 0xd03   : > { %v4678_v5 = vadd.f32 %v4676_v46, %v10262_v35  ;;  %v10540_v35 = vsub.f32 %v4718_v44, %v10537_v57  ;;  %v10624_v46 = vand.u32 4294901760, %v4968_v37  ;;  %v4965_v44 = vld [vmem:[#allocation5 + $0x10] sm:$0xff]  ;;  %v5024_v16 = vand.u32 4294901760, %v10622_v60 }
 0xd04   : > { %v10650_v32 = vand.u32 4294901760, %v4965_v44 }
 0xd05   : > { %v4681_v25 = vsel %vm1257_vm0, %v4678_v5, 0.0  ;;  %v4769_v42 = vand.u32 4294901760, %v10540_v35  ;;  %4830 = vmatpush.msra.mxu0 %v10540_v35  ;;  %5120 = vmatpush.msrb.mxu3 %v10624_v46  ;;  %v5025_v0 = vsub.f32 %v10622_v60, %v5024_v16 }
 0xd06   : > { %4682 = vadd.xlane.f32.xlu0 %v4681_v25  ;;  %v10630_v25 = vsub.f32 %v4968_v37, %v10624_v46  ;;  %v5274_v37 = vsub.f32 %v10692_v30, %v5273_v19 }
 0xd07   : > { %v4770_v8 = vsub.f32 %v10540_v35, %v4769_v42  ;;  %4900 = vmatpush.msra.mxu2 %v4769_v42  ;;  %4833 = vmatpush.msra.mxu0 %v10548_v1  ;;  %v4964_v35 = vld [vmem:[#allocation5 + $0x8] sm:$0xff]  ;;  %v4963_v42 = vld [vmem:[#allocation5] sm:$0xff] }
 0xd08   : > { %v10659_v62 = vand.u32 4294901760, %v4964_v35 }
 0xd09   : > { %v4771_v11 = vand.u32 4294901760, %v4770_v8  ;;  %4904 = vmatpush.msra.mxu2 %v4775_v15  ;;  %4836 = vmatpush.msra.mxu0 %v10557_v56 }
 0xd0a   : > { %v10666_v1 = vsub.f32 %v4964_v35, %v10659_v62 }
 0xd0b   : > { %4772 = vmatpush.msrb.mxu1 %v4771_v11  ;;  %4908 = vmatpush.msra.mxu2 %v4781_v3 }
 0xd0c   : > { %4839 = vmatpush.msra.mxu0 %v10566_v20 }
 0xd0d   : > { %4778 = vmatpush.msrb.mxu1 %v4777_v17  ;;  %4912 = vmatpush.msra.mxu2 %v4787_v40 }
 0xd0e   : > { %4842 = vmatpush.msra.mxu0 %v10577_v29 }
 0xd0f   : > { %4784 = vmatpush.msrb.mxu1 %v4783_v51  ;;  %4916 = vmatpush.msra.mxu2 %v4793_v49 }
 0xd10   : > { %4845 = vmatpush.msra.mxu0 %v10583_v54 }
 0xd11   : > { %4790 = vmatpush.msrb.mxu1 %v4789_v34  ;;  %4920 = vmatpush.msra.mxu2 %v4799_v61  ;;  %v5215_v34 = vld [vmem:[#allocation7 + $0x18] sm:$0xff] }
 0xd12   : > { %4848 = vmatpush.msra.mxu0 %v10592_v7  ;;  %v8896_v7 = vld [vmem:[%s11486_s22] ss:$0 sm:$0xff]  ;;  %s11499_s22 = sld [smem:[#allocation38_spill]] }
 0xd13   : > { %4796 = vmatpush.msrb.mxu1 %v4795_v43  ;;  %4924 = vmatpush.msra.mxu2 %v4805_v4  ;;  %v5214_v4 = vld [vmem:[#allocation7 + $0x10] sm:$0xff] }
 0xd14   : > { %4851 = vmatpush.msra.mxu0 %v10601_v38  ;;  %v5019_v38 = vsub.f32 %v10614_v13, %v5018_v52  ;;  %v10719_v23 = vand.u32 4294901760, %v5214_v4 }
 0xd15   : > { %4802 = vmatpush.msrb.mxu1 %v4801_v50  ;;  %4928 = vmatpush.msra.mxu2 %v4811_v55  ;;  %v10712_v50 = vand.u32 4294901760, %v5215_v34 }
 0xd17   : > { %4808 = vmatpush.msrb.mxu1 %v4807_v36  ;;  %5079 = vmatpush.msrb.mxu2 %v10614_v13 }
 0xd19   : > { %4814 = vmatpush.msrb.mxu1 %v4813_v6  ;;  %5082 = vmatpush.msrb.mxu2 %v10622_v60  ;;  %v8897_v60 = vld [vmem:[%s11489_s27] ss:$0 sm:$0xff]  ;;  %s11500_s27 = sld [smem:[#allocation39_spill]] }
 0xd1b   : > { %4867 = vmatpush.msra.mxu1 %v10537_v57  ;;  %5085 = vmatpush.msrb.mxu2 %v10630_v25 }
 0xd1d   : > { %4869 = vmatpush.msra.mxu1 %v10543_v59  ;;  %v10657_v59 = vsub.f32 %v4965_v44, %v10650_v32  ;;  %v5020_v44 = vand.u32 4294901760, %v5019_v38 }
 0xd1f   : > { %4871 = vmatpush.msra.mxu1 %v10551_v48  ;;  %v10668_v48 = vand.u32 4294901760, %v4963_v42 }
 0xd21   : > { %4873 = vmatpush.msra.mxu1 %v10560_v9  ;;  %v10675_v33 = vsub.f32 %v4963_v42, %v10668_v48  ;;  %v5219_v9 = vld [vmem:[#allocation7 + $0x38] sm:$0xff]  ;;  %v10732_v42 = vsub.f32 %v5215_v34, %v10712_v50 }
 0xd22   : > { %v10682_v3 = vand.u32 4294901760, %v5219_v9 }
 0xd23   : > { %4875 = vmatpush.msra.mxu1 %v10569_v18  ;;  %v5217_v18 = vld [vmem:[#allocation7 + $0x28] sm:$0xff]  ;;  %v5291_v34 = vand.u32 4294901760, %v10732_v42  ;;  %v11488_v13 = vand.u32 4294901760, %v10675_v33 }
 0xd24   : > { %v10687_v63 = vsub.f32 %v5219_v9, %v10682_v3  ;;  %v10689_v40 = vand.u32 4294901760, %v5217_v18 }
 0xd25   : > { %4877 = vmatpush.msra.mxu1 %v10574_v26  ;;  %v5216_v26 = vld [vmem:[#allocation7 + $0x20] sm:$0xff] }
 0xd26   : > { %v10695_v54 = vand.u32 4294901760, %v5216_v26  ;;  %v5267_v49 = vand.u32 4294901760, %v10687_v63  ;;  %v10700_v53 = vsub.f32 %v5217_v18, %v10689_v40 }
 0xd27   : > { %4879 = vmatpush.msra.mxu1 %v10585_v45  ;;  %v8895_v45 = vld [vmem:[%s11485_s12] ss:$0 sm:$0xff]  ;;  %s11498_s12 = sld [smem:[#allocation40_spill]] }
 0xd28   : > { %v10710_v43 = vsub.f32 %v5216_v26, %v10695_v54  ;;  %v5268_v55 = vsub.f32 %v10687_v63, %v5267_v49  ;;  %v5279_v36 = vand.u32 4294901760, %v10700_v53  ;;  %v5275_v26 = vand.u32 4294901760, %v5274_v37 }
 0xd29   : > { %4881 = vmatpush.msra.mxu1 %v10594_v12  ;;  %v5054_v37 = vand.u32 4294901760, %v10666_v1 }
 0xd2a   : > { %v5285_v35 = vand.u32 4294901760, %v10710_v43 }
 0xd79   : > { %v4683_v22 = vpop.xlane.xlu0 %4682 }
 0xd7a   : > { %v4684_v31 = vmul.f32 %v4683_v22, %v10197_v21 }
 0xd7c   : > { %v10532_v39 = vsub.f32 %v4678_v5, %v4684_v31  ;;  %v4967_v5 = vld [vmem:[#allocation5 + $0x20] sm:$0xff]  ;;  %v4966_v31 = vld [vmem:[#allocation5 + $0x18] sm:$0xff] }
 0xd7d   : > { %v10632_v22 = vand.u32 4294901760, %v4967_v5 }
 0xd7e   : > { %v4686_v47 = vmul.f32 %v10532_v39, %v10532_v39 }
 0xd7f   : > { %5122 = vmatpush.msrb.mxu3 %v10632_v22 }
 0xd80   : > { %v4687_v27 = vsel %vm1257_vm0, %v4686_v47, 0.0  ;;  %v10639_v47 = vsub.f32 %v4967_v5, %v10632_v22 }
 0xd81   : > { %4688 = vadd.xlane.f32.xlu1 %v4687_v27  ;;  %v10641_v27 = vand.u32 4294901760, %v4966_v31 }
 0xd82   : > { %5088 = vmatpush.msrb.mxu2 %v10639_v47  ;;  %v5036_v5 = vand.u32 4294901760, %v10639_v47 }
 0xd83   : > { %v10648_v57 = vsub.f32 %v4966_v31, %v10641_v27  ;;  %5124 = vmatpush.msrb.mxu3 %v10641_v27  ;;  %v5212_v31 = vld [vmem:[#allocation7] sm:$0xff] }
 0xd84   : > { %v10750_v18 = vand.u32 4294901760, %v5212_v31 }
 0xd85   : > { %5091 = vmatpush.msrb.mxu2 %v10648_v57  ;;  %5126 = vmatpush.msrb.mxu3 %v10650_v32  ;;  %v5042_v2 = vand.u32 4294901760, %v10648_v57 }
 0xd87   : > { %5094 = vmatpush.msrb.mxu2 %v10657_v59  ;;  %5128 = vmatpush.msrb.mxu3 %v10659_v62 }
 0xd89   : > { %5097 = vmatpush.msrb.mxu2 %v10666_v1  ;;  %5130 = vmatpush.msrb.mxu3 %v10668_v48 }
 0xd8b   : > { %5100 = vmatpush.msrb.mxu2 %v10675_v33 }
 0xdf4   : > { %v4689_v8 = vpop.xlane.xlu1 %4688 }
 0xdf5   : > { %v4690_v15 = vmul.f32 %v4689_v8, %v10197_v21  ;;  %v10734_v8 = vand.u32 4294901760, %v5213_v14 }
 0xdf7   : > { %v4691_v56 = vadd.f32 1e-05, %v4690_v15 }
 0xdf9   : > { %8932 = vrsqrt.f32 %v4691_v56  ;;  %vm4698_vm15 = vweird.f32 %v4691_v56 }
 0xdff   : > { %v8933_v58 = vpop.eup %8932 }
 0xe00   : > { %v4693_v11 = vmul.f32 %v8933_v58, %v4691_v56  ;;  %vm4699_vm14 = vweird.f32 %v8933_v58  ;;  %v5269_v56 = vand.u32 4294901760, %v5268_v55 }
 0xe01   : > { %vm4700_vm3 = vmor %vm4698_vm15, %vm4699_vm14 }
 0xe02   : > { %v4694_v20 = vmul.f32 %v8933_v58, %v4693_v11 }
 0xe04   : > { %v4695_v17 = vmul.f32 0.5, %v4694_v20  ;;  %v10748_v20 = vsub.f32 %v5214_v4, %v10719_v23  ;;  %v11435_v4 = vand.u32 4294901760, %v10657_v59 }
 0xe06   : > { %v4696_v29 = vsub.f32 1.5, %v4695_v17  ;;  %v5026_v17 = vand.u32 4294901760, %v5025_v0  ;;  %v5297_v55 = vand.u32 4294901760, %v10748_v20 }
 0xe08   : > { %v4697_v51 = vmul.f32 %v8933_v58, %v4696_v29  ;;  %v5037_v29 = vsub.f32 %v10639_v47, %v5036_v5 }
 0xe0a   : > { %v4701_v61 = vsel %vm4700_vm3, %v8933_v58, %v4697_v51  ;;  %v5280_v58 = vsub.f32 %v10700_v53, %v5279_v36  ;;  %v5038_v0 = vand.u32 4294901760, %v5037_v29  ;;  %v5298_v29 = vsub.f32 %v10748_v20, %v5297_v55 }
 0xe0b   : > { %v4702_v12 = vmul.f32 %v4701_v61, %v10532_v39  ;;  %v5030_v39 = vand.u32 4294901760, %v10630_v25  ;;  %v10765_v61 = vsub.f32 %v5213_v14, %v10734_v8  ;;  %v10778_v14 = vsub.f32 %v5212_v31, %v10750_v18 }
 0xe0c   : > { %v5049_v31 = vsub.f32 %v10657_v59, %v11435_v4 }
 0xe0d   : > { %v4706_v28 = vmul.f32 %v8895_v45, %v4702_v12  ;;  %v5031_v9 = vsub.f32 %v10630_v25, %v5030_v39  ;;  %v5286_v45 = vsub.f32 %v10710_v43, %v5285_v35  ;;  %v5281_v12 = vand.u32 4294901760, %v5280_v58 }
 0xe0e   : > { %v11436_v58 = vand.u32 4294901760, %v10675_v33 }
 0xe0f   : > { %v10721_v6 = vadd.f32 %v8896_v7, %v4706_v28  ;;  %v5032_v7 = vand.u32 4294901760, %v5031_v9  ;;  %v5043_v28 = vsub.f32 %v10648_v57, %v5042_v2  ;;  %v5303_v9 = vand.u32 4294901760, %v10765_v61 }
 0xe11   : > { %v4724_v15 = vsel %vm1257_vm0, %v10721_v6, 0 }
 0xe12   : > { %v10744_v11 = vand.u32 4294901760, %v4724_v15 }
 0xe14   : > { %v10756_v51 = vsub.f32 %v4724_v15, %v10744_v11  ;;  %4816 = vmatmul.f32.vlgmr.msrb.gmra.mxu1 %v10744_v11  ;;  %4930 = vmatmul.f32.vlgmr.msra.gmra.mxu2 %v10744_v11 }
 0xe15   : > { %4959 = vmatmul.f32.vlgmr.msra.gmra.mxu3 %v10744_v11  ;;  %5021 = vmatpush.msrb.mxu1 %v5020_v44  ;;  %v5287_v44 = vand.u32 4294901760, %v5286_v45  ;;  %v5309_v45 = vand.u32 4294901760, %v10778_v14 }
 0xe16   : > { %5233 = vmatpush.msra.mxu2 %v10682_v3  ;;  %5270 = vmatpush.msra.mxu3 %v5269_v56  ;;  %v10771_v38 = vand.u32 4294901760, %v10756_v51  ;;  %v5292_v56 = vsub.f32 %v10732_v42, %v5291_v34 }
 0xe17   : > { %5027 = vmatpush.msrb.mxu1 %v5026_v17 }
 0xe18   : > { %5235 = vmatpush.msra.mxu2 %v10684_v41  ;;  %5276 = vmatpush.msra.mxu3 %v5275_v26  ;;  %v4753_v15 = vsub.f32 %v10756_v51, %v10771_v38  ;;  %v5044_v26 = vand.u32 4294901760, %v5043_v28  ;;  %v5293_v4 = vand.u32 4294901760, %v5292_v56  ;;  %v5050_v28 = vand.u32 4294901760, %v5049_v31 }
 0xe19   : > { %5033 = vmatpush.msrb.mxu1 %v5032_v7  ;;  %v5055_v7 = vsub.f32 %v10666_v1, %v5054_v37  ;;  %v8899_v1 = vld [vmem:[%s11490_s15] ss:$0 sm:$0xff]  ;;  %s11362_s15 = sand.u32 1, %s9212_s16  }
 0xe1a   : > { %5237 = vmatpush.msra.mxu2 %v10689_v40  ;;  %5282 = vmatpush.msra.mxu3 %v5281_v12  ;;  %v4754_v17 = vand.u32 4294901760, %v4753_v15  ;;  %v5304_v12 = vsub.f32 %v10765_v61, %v5303_v9  ;;  %v5299_v15 = vand.u32 4294901760, %v5298_v29 }
 0xe1b   : > { %5039 = vmatpush.msrb.mxu1 %v5038_v0  ;;  %v5061_v0 = vsub.f32 %v10675_v33, %v11436_v58  ;;  %v5056_v56 = vand.u32 4294901760, %v5055_v7 }
 0xe1c   : > { %5239 = vmatpush.msra.mxu2 %v10695_v54  ;;  %5288 = vmatpush.msra.mxu3 %v5287_v44  ;;  %v5310_v44 = vsub.f32 %v10778_v14, %v5309_v45  ;;  %v5305_v31 = vand.u32 4294901760, %v5304_v12 }
 0xe1d   : > { %4755 = vmatmul.f32.vlgmr.msrb.gmra.mxu0 %v4754_v17  ;;  %4885 = vmatmul.f32.vlgmr.msra.gmra.mxu1 %v10771_v38  ;;  %v5062_v58 = vand.u32 4294901760, %v5061_v0 }
 0xe1e   : > { %4984 = vmatpush.msrb.mxu0 %v10610_v24  ;;  %5045 = vmatpush.msrb.mxu1 %v5044_v26  ;;  %v5311_v26 = vand.u32 4294901760, %v5310_v44 }
 0xe1f   : > { %5103 = vmatmul.f32.vlgmr.msrb.gmra.mxu2 %v10756_v51  ;;  %5134 = vmatmul.f32.vlgmr.msrb.gmra.mxu3 %v10771_v38 }
 0xe20   : > { %5241 = vmatpush.msra.mxu2 %v10712_v50  ;;  %5294 = vmatpush.msra.mxu3 %v5293_v4 }
 0xe21   : > { %4986 = vmatpush.msrb.mxu0 %v10617_v10  ;;  %5051 = vmatpush.msrb.mxu1 %v5050_v28 }
 0xe22   : > { %5243 = vmatpush.msra.mxu2 %v10719_v23  ;;  %5300 = vmatpush.msra.mxu3 %v5299_v15 }
 0xe23   : > { %4988 = vmatpush.msrb.mxu0 %v10624_v46  ;;  %5057 = vmatpush.msrb.mxu1 %v5056_v56 }
 0xe24   : > { %5245 = vmatpush.msra.mxu2 %v10734_v8  ;;  %5306 = vmatpush.msra.mxu3 %v5305_v31 }
 0xe25   : > { %4990 = vmatpush.msrb.mxu0 %v10632_v22  ;;  %5063 = vmatpush.msrb.mxu1 %v5062_v58 }
 0xe26   : > { %5247 = vmatpush.msra.mxu2 %v10750_v18  ;;  %5312 = vmatpush.msra.mxu3 %v5311_v26 }
 0xe27   : > { %5192 = vmatpush.msra.mxu1 %v10610_v24  ;;  %4854 = vmatmul.f32.vlgmr.msra.gmra.mxu0 %v10756_v51  ;;  %v11487_v24 = vand.u32 4294901760, %v10657_v59 }
 0xe28   : > { %5398 = vmatpush.msrb.mxu2 %v5267_v49  ;;  %5441 = vmatpush.msrb.mxu3 %v10682_v3 }
 0xe29   : > { %4992 = vmatpush.msrb.mxu0 %v10641_v27  ;;  %5065 = vmatmul.f32.vlgmr.msrb.gmra.mxu1 %v10744_v11 }
 0xe2a   : > { %5253 = vmatmul.f32.vlgmr.msra.gmra.mxu2 %v4754_v17  ;;  %5314 = vmatmul.f32.vlgmr.msra.gmra.mxu3 %v10744_v11 }
 0xe2b   : > { %5194 = vmatpush.msra.mxu1 %v10617_v10  ;;  %5402 = vmatpush.msrb.mxu2 %v5273_v19 }
 0xe2c   : > { %5443 = vmatpush.msrb.mxu3 %v10684_v41  ;;  %4994 = vmatpush.msrb.mxu0 %v10650_v32 }
 0xe2d   : > { %5196 = vmatpush.msra.mxu1 %v10624_v46  ;;  %5406 = vmatpush.msrb.mxu2 %v5279_v36 }
 0xe2e   : > { %5445 = vmatpush.msrb.mxu3 %v10689_v40  ;;  %4996 = vmatpush.msrb.mxu0 %v10659_v62 }
 0xe2f   : > { %5198 = vmatpush.msra.mxu1 %v10632_v22  ;;  %5410 = vmatpush.msrb.mxu2 %v5285_v35 }
 0xe30   : > { %5447 = vmatpush.msrb.mxu3 %v10695_v54  ;;  %4998 = vmatpush.msrb.mxu0 %v10668_v48 }
 0xe31   : > { %5200 = vmatpush.msra.mxu1 %v10641_v27  ;;  %5414 = vmatpush.msrb.mxu2 %v5291_v34 }
 0xe32   : > { %5149 = vmatpush.msra.mxu0 %v5018_v52  ;;  %5449 = vmatpush.msrb.mxu3 %v10712_v50 }
 0xe33   : > { %5004 = vmatmul.f32.vlgmr.msrb.gmra.mxu0 %v4754_v17  ;;  %5202 = vmatpush.msra.mxu1 %v10650_v32 }
 0xe34   : > { %5153 = vmatpush.msra.mxu0 %v5024_v16  ;;  %5418 = vmatpush.msrb.mxu2 %v5297_v55 }
 0xe35   : > { %5451 = vmatpush.msrb.mxu3 %v10719_v23  ;;  %5204 = vmatpush.msra.mxu1 %v10659_v62 }
 0xe36   : > { %5157 = vmatpush.msra.mxu0 %v5030_v39  ;;  %5422 = vmatpush.msrb.mxu2 %v5303_v9 }
 0xe37   : > { %5453 = vmatpush.msrb.mxu3 %v10734_v8  ;;  %5206 = vmatpush.msra.mxu1 %v10668_v48 }
 0xe38   : > { %5161 = vmatpush.msra.mxu0 %v5036_v5  ;;  %5426 = vmatpush.msrb.mxu2 %v5309_v45 }
 0xe39   : > { %5455 = vmatpush.msrb.mxu3 %v10750_v18  ;;  %5208 = vmatmul.f32.vlgmr.msra.gmra.mxu1 %v10744_v11 }
 0xe3a   : > { %5365 = vmatpush.msrb.mxu1 %v10682_v3  ;;  %5428 = vmatmul.f32.vlgmr.msrb.gmra.mxu2 %v10744_v11 }
 0xe3b   : > { %5457 = vmatmul.f32.vlgmr.msrb.gmra.mxu3 %v10744_v11  ;;  %5165 = vmatpush.msra.mxu0 %v5042_v2 }
 0xe3c   : > { %5367 = vmatpush.msrb.mxu1 %v10684_v41 }
 0xe3d   : > { %5169 = vmatpush.msra.mxu0 %v11487_v24 }
 0xe3e   : > { %5369 = vmatpush.msrb.mxu1 %v10689_v40 }
 0xe3f   : > { %5173 = vmatpush.msra.mxu0 %v5054_v37 }
 0xe40   : > { %5371 = vmatpush.msrb.mxu1 %v10695_v54 }
 0xe41   : > { %5177 = vmatpush.msra.mxu0 %v11488_v13 }
 0xe42   : > { %5179 = vmatmul.f32.vlgmr.msra.gmra.mxu0 %v10744_v11  ;;  %5373 = vmatpush.msrb.mxu1 %v10712_v50 }
 0xe43   : > { %5328 = vmatpush.msrb.mxu0 %v10687_v63 }
 0xe44   : > { %5375 = vmatpush.msrb.mxu1 %v10719_v23 }
 0xe45   : > { %5331 = vmatpush.msrb.mxu0 %v10692_v30 }
 0xe46   : > { %5377 = vmatpush.msrb.mxu1 %v10734_v8  ;;  %v8898_v8 = vld [vmem:[%s11491_s18] ss:$0 sm:$0xff]  ;;  %s11437_s18 = sshll.u32 %s11362_s15, 3 }
 0xe47   : > { %5334 = vmatpush.msrb.mxu0 %v10700_v53 }
 0xe48   : > { %5379 = vmatpush.msrb.mxu1 %v10750_v18 }
 0xe49   : > { %5337 = vmatpush.msrb.mxu0 %v10710_v43  ;;  %5383 = vmatmul.f32.vlgmr.msrb.gmra.mxu1 %v10771_v38 }
 0xe4b   : > { %5340 = vmatpush.msrb.mxu0 %v10732_v42 }
 0xe4d   : > { %5343 = vmatpush.msrb.mxu0 %v10748_v20 }
 0xe4f   : > { %5346 = vmatpush.msrb.mxu0 %v10765_v61 }
 0xe51   : > { %5349 = vmatpush.msrb.mxu0 %v10778_v14 }
 0xe52   : > { %5352 = vmatmul.f32.vlgmr.msrb.gmra.mxu0 %v10756_v51 }
 0xe91   : > { %v4817_v46 = vpop.f32.mrf.mxu1 }
 0xe97   : > { %v4931_v59 = vpop.f32.mrf.mxu2 }
 0xe98   : > { %v4960_v48 = vpop.f32.mrf.mxu3 }
 0xe9a   : > { %v4756_v10 = vpop.f32.mrf.mxu0  ;;  %v4886_v57 = vpop.f32.mrf.mxu1 }
 0xe9b   : > { %v4757_v25 = vadd.f32 %v8897_v60, %v4756_v10 }
 0xe9d   : > { %v4818_v22 = vadd.f32 %v4817_v46, %v4757_v25 }
 0xea2   : > { %v5104_v54 = vpop.f32.mrf.mxu2  ;;  %v5135_v16 = vpop.f32.mrf.mxu3 }
 0xea4   : > { %v4855_v47 = vpop.f32.mrf.mxu0 }
 0xea5   : > { %v4856_v27 = vadd.f32 %v4855_v47, %v4818_v22 }
 0xea6   : > { %v5066_v40 = vpop.f32.mrf.mxu1 }
 0xea7   : > { %v4887_v32 = vadd.f32 %v4886_v57, %v4856_v27 }
 0xea9   : > { %v4932_v62 = vadd.f32 %v4931_v59, %v4887_v32 }
 0xeab   : > { %v10900_v3 = vadd.f32 %v4960_v48, %v4932_v62 }
 0xead   : > { %v5470_v63 = vsel %vm2004_vm1, %v10900_v3, 0  ;;  %v5254_v11 = vpop.f32.mrf.mxu2  ;;  %v5315_v61 = vpop.f32.mrf.mxu3 }
 0xeae   : > { %v5492_v52 = vand.u32 4294901760, %v5470_v63  ;;  %v5255_v51 = vadd.f32 %v8898_v8, %v5254_v11 }
 0xeb0   : > { %v5005_v33 = vpop.f32.mrf.mxu0  ;;  %v5493_v53 = vsub.f32 %v5470_v63, %v5492_v52  ;;  %v5316_v38 = vadd.f32 %v5315_v61, %v5255_v51 }
 0xeb1   : > { %v5006_v41 = vadd.f32 %v8899_v1, %v5005_v33 }
 0xeb2   : > { %v5494_v39 = vand.u32 4294901760, %v5493_v53 }
 0xeb3   : > { %v5067_v30 = vadd.f32 %v5066_v40, %v5006_v41 }
 0xeb4   : > { %v5495_v35 = vsub.f32 %v5493_v53, %v5494_v39 }
 0xeb5   : > { %v5105_v49 = vadd.f32 %v5104_v54, %v5067_v30 }
 0xeb6   : > { %v5209_v36 = vpop.f32.mrf.mxu1  ;;  %v5496_v20 = vand.u32 4294901760, %v5495_v35 }
 0xeb7   : > { %v5136_v19 = vadd.f32 %v5135_v16, %v5105_v49 }
 0xebd   : > { %v5429_v58 = vpop.f32.mrf.mxu2 }
 0xebe   : > { %v5458_v29 = vpop.f32.mrf.mxu3 }
 0xebf   : > { %v5180_v43 = vpop.f32.mrf.mxu0 }
 0xec0   : > { %v5181_v50 = vadd.f32 %v5180_v43, %v5136_v19 }
 0xec2   : > { %v10904_v23 = vadd.f32 %v5209_v36, %v5181_v50 }
 0xec4   : > { %v5473_v5 = vsel %vm2004_vm1, %v10904_v23, 0 }
 0xec5   : > { %v5490_v42 = vand.u32 4294901760, %v5473_v5 }
 0xec6   : > { %v5384_v37 = vpop.f32.mrf.mxu1 }
 0xec7   : > { %5491 = vmatpush.xpose.msra.mxu0 %v5490_v42  ;;  %5567 = vmatpush.xpose.msra.mxu3 %v5490_v42  ;;  %v5517_v2 = vsub.f32 %v5473_v5, %v5490_v42 }
 0xec9   : > { %5544 = vmatpush.xpose.msra.mxu2 %v5517_v2  ;;  %v5518_v18 = vand.u32 4294901760, %v5517_v2 }
 0xeca   : > { %5497 = vmatmul.f32.vlgmr.msra.gmra.mxu0 %v5496_v20  ;;  %5571 = vmatmul.f32.vlgmr.msra.gmra.mxu3 %v5494_v39 }
 0xecb   : > { %5593 = vmatpush.xpose.msrb.mxu0 %v5518_v18  ;;  %v5519_v34 = vsub.f32 %v5517_v2, %v5518_v18 }
 0xecc   : > { %5547 = vmatmul.f32.vlgmr.msra.gmra.mxu2 %v5493_v53 }
 0xecd   : > { %v5520_v4 = vand.u32 4294901760, %v5519_v34 }
 0xecf   : > { %v5353_v55 = vpop.f32.mrf.mxu0  ;;  %5521 = vmatpush.xpose.msra.mxu1 %v5520_v4 }
 0xed0   : > { %v5354_v14 = vadd.f32 %v5353_v55, %v5316_v38 }
 0xed2   : > { %v5385_v9 = vadd.f32 %v5384_v37, %v5354_v14  ;;  %5523 = vmatmul.f32.vlgmr.msra.gmra.mxu1 %v5492_v52  ;;  %5595 = vmatmul.f32.vlgmr.msrb.gmra.mxu0 %v5492_v52 }
 0xed3   : > { %5615 = vmatpush.xpose.msrb.mxu1 %v5490_v42 }
 0xed4   : > { %v5430_v17 = vadd.f32 %v5429_v58, %v5385_v9 }
 0xed6   : > { %v10909_v45 = vadd.f32 %v5458_v29, %v5430_v17 }
 0xed8   : > { %5975 = vrot.lane.b32.xlu1 %v10909_v45, %s9267_s28  ;;  %v5664_v7 = vand.u32 4294901760, %v10909_v45 }
 0xeda   : > { %5665 = vmatpush.msrb.mxu2 %v5664_v7  ;;  %5741 = vmatpush.msra.mxu1 %v5664_v7  ;;  %v5691_v12 = vsub.f32 %v10909_v45, %v5664_v7 }
 0xedb   : > { %5617 = vmatmul.f32.vlgmr.msrb.gmra.mxu1 %v5492_v52 }
 0xedc   : > { %5718 = vmatpush.msra.mxu0 %v5691_v12  ;;  %v5692_v28 = vand.u32 4294901760, %v5691_v12 }
 0xede   : > { %5767 = vmatpush.msra.mxu2 %v5692_v28  ;;  %v5693_v0 = vsub.f32 %v5691_v12, %v5692_v28 }
 0xee0   : > { %6453 = vrot.lane.b32.xlu1 %v10904_v23, %s9268_s2  ;;  %v5694_v15 = vand.u32 4294901760, %v5693_v0 }
 0xee2   : > { %5695 = vmatpush.msrb.mxu3 %v5694_v15 }
 0xee4   : > { %5789 = vmatpush.msra.mxu3 %v5664_v7 }
 0xf47   : > { %v5498_v44 = vpop.f32.mrf.mxu0 }
 0xf4a   : > { %v5976_v43 = vpop.permute.xlu1 %5975 }
 0xf4b   : > { %v5996_v35 = vand.u32 4294901760, %v5976_v43 }
 0xf4d   : > { %v5572_v13 = vpop.f32.mrf.mxu3  ;;  %v6023_v18 = vsub.f32 %v5976_v43, %v5996_v35 }
 0xf4f   : > { %v5524_v56 = vpop.f32.mrf.mxu1  ;;  %v5548_v26 = vpop.f32.mrf.mxu2  ;;  %v6024_v38 = vand.u32 4294901760, %v6023_v18 }
 0xf50   : > { %v5525_v31 = vadd.f32 %v5524_v56, %v5498_v44  ;;  %v5596_v60 = vpop.f32.mrf.mxu0 }
 0xf51   : > { %v6025_v9 = vsub.f32 %v6023_v18, %v6024_v38 }
 0xf52   : > { %v5549_v24 = vadd.f32 %v5548_v26, %v5525_v31 }
 0xf53   : > { %v6026_v7 = vand.u32 4294901760, %v6025_v9 }
 0xf54   : > { %v5573_v10 = vadd.f32 %v5572_v13, %v5549_v24 }
 0xf56   : > { %v5597_v46 = vadd.f32 %v5596_v60, %v5573_v10 }
 0xf58   : > { %v5618_v25 = vpop.f32.mrf.mxu1 }
 0xf59   : > { %v5619_v22 = vadd.f32 %v5618_v25, %v5597_v46 }
 0xf5b   : > { %v5621_v47 = vmul.f32 0.25, %v5619_v22 }
 0xf5d   : > { %v5622_v27 = vsel %vm2158_vm2, %v5621_v47, -inf }
 0xf5e   : > { %5623 = vmax.xlane.f32.xlu0 %v5622_v27 }
 0xf72   : > { %5797 = vrot.lane.b32.xlu0 %v10904_v23, %s9267_s28 }
 0xfd1   : > { %v5624_v57 = vpop.xlane.xlu0 %5623 }
 0xfd2   : > { %v5625_v32 = vsub.f32 %v5621_v47, %v5624_v57 }
 0xfd4   : > { %v5626_v59 = vmul.f32 1.442695, %v5625_v32 }
 0xfd6   : > { %8934 = vpow2.f32 %v5626_v59 }
 0xfdc   : > { %v8935_v62 = vpop.eup %8934 }
 0xfdd   : > { %v5628_v1 = vsel %vm2158_vm2, %v8935_v62, 0.0 }
 0xfde   : > { %5629 = vadd.xlane.f32.xlu2 %v5628_v1 }
 0xfe4   : > { %v5798_v48 = vpop.permute.xlu0 %5797 }
 0xfe5   : > { %v5801_v33 = vsel %vm2004_vm1, %v5798_v48, 0 }
 0xfe6   : > { %v5818_v41 = vand.u32 4294901760, %v5801_v33 }
 0xfe8   : > { %v5845_v63 = vsub.f32 %v5801_v33, %v5818_v41  ;;  %5819 = vmatpush.xpose.msrb.mxu0 %v5818_v41 }
 0xfea   : > { %v5846_v40 = vand.u32 4294901760, %v5845_v63 }
 0xfec   : > { %v5847_v30 = vsub.f32 %v5845_v63, %v5846_v40 }
 0xfee   : > { %v5848_v52 = vand.u32 4294901760, %v5847_v30 }
 0xff0   : > { %5849 = vmatpush.xpose.msrb.mxu1 %v5848_v52 }
 0xff6   : > { %5795 = vrot.lane.b32.xlu2 %v10900_v3, %s9267_s28  ;;  %s11492_s28 = sld [smem:[#allocation32_spill]] }
0x1051   : > { %v5630_v54 = vpop.xlane.xlu2 %5629 }
0x1052   : > { %8936 = vrcp.f32 %v5630_v54  ;;  %v5642_v50 = vand.u32 2147483648, %v5630_v54  ;;  %v5640_v36 = vand.u32 2147483647, %v5630_v54  ;;  %vm5636_vm5 = vweird.f32 %v5630_v54 }
0x1054   : > { %v5643_v8 = vor.u32 1.1754944e-38, %v5642_v50  ;;  %vm5641_vm7 = vcmp.eq.f32.partialorder %v5640_v36, 8.507059e+37 }
0x1058   : > { %v8937_v49 = vpop.eup %8936 }
0x1059   : > { %v5632_v53 = vmul.f32 %v8937_v49, %v5630_v54  ;;  %v5796_v16 = vpop.permute.xlu2 %5795  ;;  %vm5637_vm4 = vweird.f32 %v8937_v49 }
0x105a   : > { %v5799_v5 = vsel %vm2004_vm1, %v5796_v16, 0  ;;  %vm5638_vm6 = vmor %vm5636_vm5, %vm5637_vm4 }
0x105b   : > { %v5633_v19 = vsub.f32 1.0, %v5632_v53  ;;  %v5820_v11 = vand.u32 4294901760, %v5799_v5 }
0x105d   : > { %v5634_v39 = vmul.f32 %v8937_v49, %v5633_v19  ;;  %v5821_v34 = vsub.f32 %v5799_v5, %v5820_v11 }
0x105f   : > { %v5635_v42 = vadd.f32 %v8937_v49, %v5634_v39  ;;  %v5822_v55 = vand.u32 4294901760, %v5821_v34 }
0x1061   : > { %v5639_v2 = vsel %vm5638_vm6, %v8937_v49, %v5635_v42  ;;  %v5823_v58 = vsub.f32 %v5821_v34, %v5822_v55 }
0x1062   : > { %v5644_v20 = vsel %vm5641_vm7, %v5643_v8, %v5639_v2 }
0x1063   : > { %v5645_v51 = vmul.f32 %v8935_v62, %v5644_v20  ;;  %v5824_v12 = vand.u32 4294901760, %v5823_v58 }
0x1065   : > { %v5647_v61 = vsel %vm2158_vm2, %v5645_v51, 0  ;;  %v5464_v51 = vld [vmem:[#allocation8 + $0x18] sm:$0xff] }
0x1066   : > { %v5666_v4 = vand.u32 4294901760, %v5647_v61 }
0x1068   : > { %5697 = vmatmul.f32.vlgmr.msrb.gmra.mxu3 %v5666_v4  ;;  %v5667_v14 = vsub.f32 %v5647_v61, %v5666_v4  ;;  %v5463_v61 = vld [vmem:[#allocation8 + $0x10] sm:$0xff] }
0x1069   : > { %5895 = vmatpush.xpose.msrb.mxu3 %v5818_v41 }
0x106a   : > { %5721 = vmatmul.f32.vlgmr.msra.gmra.mxu0 %v5667_v14  ;;  %v5668_v37 = vand.u32 4294901760, %v5667_v14 }
0x106b   : > { %5921 = vmatpush.xpose.msra.mxu0 %v5846_v40 }
0x106c   : > { %5745 = vmatmul.f32.vlgmr.msra.gmra.mxu1 %v5668_v37  ;;  %v5669_v17 = vsub.f32 %v5667_v14, %v5668_v37 }
0x106d   : > { %5943 = vmatpush.xpose.msra.mxu1 %v5818_v41 }
0x106e   : > { %v5670_v29 = vand.u32 4294901760, %v5669_v17 }
0x1070   : > { %5671 = vmatmul.f32.vlgmr.msrb.gmra.mxu2 %v5670_v29  ;;  %5791 = vmatmul.f32.vlgmr.msra.gmra.mxu3 %v5666_v4  ;;  %v5462_v29 = vld [vmem:[#allocation8 + $0x8] sm:$0xff] }
0x1071   : > { %5872 = vmatpush.xpose.msrb.mxu2 %v5845_v63  ;;  %6027 = vmatpush.msra.mxu3 %v6026_v7  ;;  %v6306_v7 = vand.u32 4294901760, %v5462_v29 }
0x1072   : > { %5825 = vmatmul.f32.vlgmr.msrb.gmra.mxu0 %v5824_v12 }
0x1073   : > { %6050 = vmatpush.msrb.mxu0 %v6023_v18 }
0x1074   : > { %5851 = vmatmul.f32.vlgmr.msrb.gmra.mxu1 %v5820_v11 }
0x1075   : > { %6073 = vmatpush.msrb.mxu1 %v5996_v35 }
0x1078   : > { %5769 = vmatmul.f32.vlgmr.msra.gmra.mxu2 %v5666_v4  ;;  %5899 = vmatmul.f32.vlgmr.msrb.gmra.mxu3 %v5822_v55 }
0x1079   : > { %5997 = vmatpush.msra.mxu2 %v5996_v35  ;;  %6121 = vmatpush.msrb.mxu3 %v5996_v35 }
0x107a   : > { %5923 = vmatmul.f32.vlgmr.msra.gmra.mxu0 %v5820_v11 }
0x107c   : > { %5945 = vmatmul.f32.vlgmr.msra.gmra.mxu1 %v5820_v11 }
0x1080   : > { %5875 = vmatmul.f32.vlgmr.msrb.gmra.mxu2 %v5821_v34  ;;  %v6144_v34 = vand.u32 4294901760, %v5464_v51 }
0x1081   : > { %6099 = vmatpush.msrb.mxu2 %v6024_v38  ;;  %v6146_v38 = vand.u32 4294901760, %v5463_v61 }
0x1082   : > { %v6172_v4 = vsub.f32 %v5464_v51, %v6144_v34  ;;  %6145 = vmatpush.msra.mxu0 %v6144_v34 }
0x1083   : > { %v6178_v14 = vsub.f32 %v5463_v61, %v6146_v38 }
0x1084   : > { %v6173_v55 = vand.u32 4294901760, %v6172_v4  ;;  %6147 = vmatpush.msra.mxu0 %v6146_v38 }
0x1085   : > { %v6179_v9 = vand.u32 4294901760, %v6178_v14 }
0x1086   : > { %v6174_v37 = vsub.f32 %v6172_v4, %v6173_v55 }
0x1087   : > { %v6180_v17 = vsub.f32 %v6178_v14, %v6179_v9 }
0x1088   : > { %v6175_v58 = vand.u32 4294901760, %v6174_v37 }
0x1089   : > { %v6181_v12 = vand.u32 4294901760, %v6180_v17 }
0x108a   : > { %6176 = vmatpush.msra.mxu1 %v6175_v58 }
0x108c   : > { %6182 = vmatpush.msra.mxu1 %v6181_v12 }
0x10e7   : > { %v5722_v0 = vpop.f32.mrf.mxu0 }
0x10e9   : > { %v5746_v56 = vpop.f32.mrf.mxu1 }
0x10eb   : > { %v5698_v28 = vpop.f32.mrf.mxu3 }
0x10ef   : > { %v5826_v60 = vpop.f32.mrf.mxu0 }
0x10f1   : > { %v5852_v25 = vpop.f32.mrf.mxu1 }
0x10f2   : > { %v5853_v22 = vadd.f32 %v5852_v25, %v5826_v60 }
0x10f3   : > { %v5672_v15 = vpop.f32.mrf.mxu2  ;;  %v5792_v24 = vpop.f32.mrf.mxu3 }
0x10f4   : > { %v5699_v44 = vadd.f32 %v5698_v28, %v5672_v15  ;;  %v5461_v28 = vld [vmem:[#allocation8] sm:$0xff] }
0x10f5   : > { %v6308_v15 = vand.u32 4294901760, %v5461_v28 }
0x10f6   : > { %v5723_v31 = vadd.f32 %v5722_v0, %v5699_v44  ;;  %v6334_v0 = vsub.f32 %v5462_v29, %v6306_v7 }
0x10f7   : > { %v5924_v59 = vpop.f32.mrf.mxu0 }
0x10f8   : > { %v5747_v26 = vadd.f32 %v5746_v56, %v5723_v31  ;;  %v6335_v44 = vand.u32 4294901760, %v6334_v0  ;;  %v6340_v56 = vsub.f32 %v5461_v28, %v6308_v15 }
0x10f9   : > { %v5946_v1 = vpop.f32.mrf.mxu1 }
0x10fa   : > { %v6336_v31 = vsub.f32 %v6334_v0, %v6335_v44 }
0x10fb   : > { %v5770_v13 = vpop.f32.mrf.mxu2  ;;  %v5900_v57 = vpop.f32.mrf.mxu3 }
0x10fc   : > { %v5771_v10 = vadd.f32 %v5770_v13, %v5747_v26  ;;  %v6341_v26 = vand.u32 4294901760, %v6340_v56 }
0x10fe   : > { %v10926_v46 = vadd.f32 %v5792_v24, %v5771_v10  ;;  %v6337_v24 = vand.u32 4294901760, %v6336_v31  ;;  %v6342_v13 = vsub.f32 %v6340_v56, %v6341_v26 }
0x1100   : > { %v6343_v10 = vand.u32 4294901760, %v6342_v13 }
0x1103   : > { %v5876_v47 = vpop.f32.mrf.mxu2 }
0x1104   : > { %v5877_v27 = vadd.f32 %v5876_v47, %v5853_v22  ;;  %v6454_v22 = vpop.permute.xlu1 %6453 }
0x1106   : > { %v5901_v32 = vadd.f32 %v5900_v57, %v5877_v27 }
0x1108   : > { %v5925_v62 = vadd.f32 %v5924_v59, %v5901_v32  ;;  %v6457_v32 = vsel %vm2004_vm1, %v6454_v22, 0  ;;  %v6290_v59 = vsel %vm2004_vm1, %v10926_v46, 0 }
0x110a   : > { %v5947_v48 = vadd.f32 %v5946_v1, %v5925_v62  ;;  %v6474_v1 = vand.u32 4294901760, %v6457_v32 }
0x110c   : > { %v5949_v33 = vmul.f32 0.25, %v5947_v48 }
0x110e   : > { %v5950_v41 = vsel %vm2158_vm2, %v5949_v33, -inf }
0x110f   : > { %5951 = vmax.xlane.f32.xlu0 %v5950_v41 }
0x1123   : > { %6451 = vrot.lane.b32.xlu0 %v10900_v3, %s9268_s2 }
0x112b   : > { %6947 = vrot.lane.b32.xlu0 %v10904_v23, %s9269_s6 }
0x1133   : > { %6945 = vrot.lane.b32.xlu0 %v10900_v3, %s9269_s6 }
0x1182   : > { %v5952_v63 = vpop.xlane.xlu0 %5951 }
0x1183   : > { %v5953_v40 = vsub.f32 %v5949_v33, %v5952_v63  ;;  %v6310_v33 = vand.u32 4294901760, %v6290_v59 }
0x1185   : > { %v5954_v30 = vmul.f32 1.442695, %v5953_v40 }
0x1187   : > { %8938 = vpow2.f32 %v5954_v30  ;;  %v6501_v30 = vsub.f32 %v6457_v32, %v6474_v1 }
0x118d   : > { %v8939_v52 = vpop.eup %8938 }
0x118e   : > { %v5956_v54 = vsel %vm2158_vm2, %v8939_v52, 0.0 }
0x118f   : > { %5957 = vadd.xlane.f32.xlu2 %v5956_v54  ;;  %v6311_v54 = vsub.f32 %v6290_v59, %v6310_v33 }
0x1202   : > { %v5958_v49 = vpop.xlane.xlu2 %5957 }
0x1203   : > { %8940 = vrcp.f32 %v5958_v49  ;;  %v5970_v43 = vand.u32 2147483648, %v5958_v49  ;;  %v5968_v23 = vand.u32 2147483647, %v5958_v49  ;;  %vm5964_vm9 = vweird.f32 %v5958_v49 }
0x1205   : > { %v5971_v3 = vor.u32 1.1754944e-38, %v5970_v43  ;;  %vm5969_vm11 = vcmp.eq.f32.partialorder %v5968_v23, 8.507059e+37 }
0x1209   : > { %v8941_v53 = vpop.eup %8940 }
0x120a   : > { %v5960_v16 = vmul.f32 %v8941_v53, %v5958_v49  ;;  %vm5965_vm8 = vweird.f32 %v8941_v53 }
0x120b   : > { %vm5966_vm10 = vmor %vm5964_vm9, %vm5965_vm8 }
0x120c   : > { %v5961_v19 = vsub.f32 1.0, %v5960_v16  ;;  %v6502_v16 = vand.u32 4294901760, %v6501_v30 }
0x120e   : > { %v5962_v50 = vmul.f32 %v8941_v53, %v5961_v19  ;;  %v6312_v19 = vand.u32 4294901760, %v6311_v54  ;;  %v6503_v46 = vsub.f32 %v6501_v30, %v6502_v16 }
0x1210   : > { %v5963_v39 = vadd.f32 %v8941_v53, %v5962_v50  ;;  %v6313_v23 = vsub.f32 %v6311_v54, %v6312_v19 }
0x1212   : > { %v5967_v36 = vsel %vm5966_vm10, %v8941_v53, %v5963_v39 }
0x1213   : > { %v5972_v5 = vsel %vm5969_vm11, %v5971_v3, %v5967_v36  ;;  %v6504_v36 = vand.u32 4294901760, %v6503_v46 }
0x1214   : > { %v5973_v35 = vmul.f32 %v8939_v52, %v5972_v5  ;;  %v6314_v5 = vand.u32 4294901760, %v6313_v23 }
0x1216   : > { %v5979_v42 = vsel %vm2158_vm2, %v5973_v35, 0  ;;  %v6452_v35 = vpop.permute.xlu0 %6451 }
0x1217   : > { %v5998_v8 = vand.u32 4294901760, %v5979_v42 }
0x1219   : > { %6029 = vmatmul.f32.vlgmr.msra.gmra.mxu3 %v5998_v8  ;;  %v5999_v11 = vsub.f32 %v5979_v42, %v5998_v8  ;;  %v6455_v42 = vsel %vm2004_vm1, %v6452_v35, 0 }
0x121a   : > { %6229 = vmatpush.msra.mxu3 %v6144_v34 }
0x121b   : > { %6053 = vmatmul.f32.vlgmr.msrb.gmra.mxu0 %v5999_v11  ;;  %v6000_v2 = vand.u32 4294901760, %v5999_v11 }
0x121c   : > { %6231 = vmatpush.msra.mxu3 %v6146_v38  ;;  %6256 = vmatpush.msrb.mxu0 %v6173_v55 }
0x121d   : > { %6077 = vmatmul.f32.vlgmr.msrb.gmra.mxu1 %v6000_v2  ;;  %v6001_v20 = vsub.f32 %v5999_v11, %v6000_v2 }
0x121e   : > { %6260 = vmatpush.msrb.mxu0 %v6179_v9  ;;  %6281 = vmatpush.msrb.mxu1 %v6144_v34 }
0x121f   : > { %v6002_v18 = vand.u32 4294901760, %v6001_v20 }
0x1220   : > { %6283 = vmatpush.msrb.mxu1 %v6146_v38 }
0x1221   : > { %6003 = vmatmul.f32.vlgmr.msra.gmra.mxu2 %v6002_v18  ;;  %6123 = vmatmul.f32.vlgmr.msrb.gmra.mxu3 %v5998_v8 }
0x1222   : > { %6204 = vmatpush.msra.mxu2 %v6172_v4  ;;  %6338 = vmatpush.msrb.mxu3 %v6337_v24 }
0x1224   : > { %6207 = vmatpush.msra.mxu2 %v6178_v14  ;;  %6344 = vmatpush.msrb.mxu3 %v6343_v10 }
0x1229   : > { %6101 = vmatmul.f32.vlgmr.msrb.gmra.mxu2 %v5998_v8  ;;  %v6476_v8 = vand.u32 4294901760, %v6455_v42 }
0x122a   : > { %6307 = vmatpush.msrb.mxu2 %v6306_v7 }
0x122b   : > { %v6477_v11 = vsub.f32 %v6455_v42, %v6476_v8 }
0x122c   : > { %6309 = vmatpush.msrb.mxu2 %v6308_v15 }
0x122d   : > { %v6478_v2 = vand.u32 4294901760, %v6477_v11 }
0x122f   : > { %v6479_v20 = vsub.f32 %v6477_v11, %v6478_v2 }
0x1231   : > { %v6480_v18 = vand.u32 4294901760, %v6479_v20 }
0x1298   : > { %v6054_v27 = vpop.f32.mrf.mxu0 }
0x129a   : > { %v6078_v62 = vpop.f32.mrf.mxu1 }
0x129c   : > { %v6030_v60 = vpop.f32.mrf.mxu3 }
0x12a4   : > { %v6004_v25 = vpop.f32.mrf.mxu2  ;;  %v6124_v40 = vpop.f32.mrf.mxu3 }
0x12a5   : > { %v6031_v47 = vadd.f32 %v6030_v60, %v6004_v25 }
0x12a7   : > { %v6055_v57 = vadd.f32 %v6054_v27, %v6031_v47 }
0x12a9   : > { %v6079_v48 = vadd.f32 %v6078_v62, %v6055_v57 }
0x12ac   : > { %v6102_v41 = vpop.f32.mrf.mxu2 }
0x12ad   : > { %v6103_v63 = vadd.f32 %v6102_v41, %v6079_v48 }
0x12af   : > { %v6125_v52 = vadd.f32 %v6124_v40, %v6103_v63 }
0x12b1   : > { %v6128_v49 = vsel %vm2004_vm1, %v6125_v52, 0 }
0x12b2   : > { %v6148_v53 = vand.u32 4294901760, %v6128_v49 }
0x12b4   : > { %v6149_v43 = vsub.f32 %v6128_v49, %v6148_v53  ;;  %6184 = vmatmul.f32.vlgmr.msra.gmra.mxu1 %v6148_v53 }
0x12b5   : > { %6391 = vmatpush.msra.mxu1 %v6306_v7 }
0x12b6   : > { %v6150_v50 = vand.u32 4294901760, %v6149_v43  ;;  %6210 = vmatmul.f32.vlgmr.msra.gmra.mxu2 %v6149_v43 }
0x12b7   : > { %6393 = vmatpush.msra.mxu1 %v6308_v15  ;;  %6418 = vmatpush.msra.mxu2 %v6335_v44 }
0x12b8   : > { %v6151_v39 = vsub.f32 %v6149_v43, %v6150_v50  ;;  %6235 = vmatmul.f32.vlgmr.msra.gmra.mxu3 %v6150_v50  ;;  %v5466_v50 = vld [vmem:[#allocation8 + $0x28] sm:$0xff] }
0x12b9   : > { %6422 = vmatpush.msra.mxu2 %v6341_v26  ;;  %6443 = vmatpush.msra.mxu3 %v6306_v7 }
0x12ba   : > { %v6152_v3 = vand.u32 4294901760, %v6151_v39 }
0x12bb   : > { %6445 = vmatpush.msra.mxu3 %v6308_v15 }
0x12bc   : > { %6153 = vmatmul.f32.vlgmr.msra.gmra.mxu0 %v6152_v3  ;;  %6285 = vmatmul.f32.vlgmr.msrb.gmra.mxu1 %v6148_v53 }
0x12bd   : > { %6505 = vmatpush.xpose.msrb.mxu1 %v6504_v36  ;;  %6366 = vmatpush.msra.mxu0 %v6334_v0  ;;  %v5465_v36 = vld [vmem:[#allocation8 + $0x20] sm:$0xff] }
0x12be   : > { %6315 = vmatmul.f32.vlgmr.msrb.gmra.mxu2 %v6314_v5 }
0x12bf   : > { %6528 = vmatpush.xpose.msrb.mxu2 %v6501_v30  ;;  %6369 = vmatpush.msra.mxu0 %v6340_v56 }
0x12c0   : > { %6346 = vmatmul.f32.vlgmr.msrb.gmra.mxu3 %v6310_v33 }
0x12c1   : > { %6551 = vmatpush.xpose.msrb.mxu3 %v6474_v1 }
0x12c4   : > { %6262 = vmatmul.f32.vlgmr.msrb.gmra.mxu0 %v6148_v53  ;;  %6397 = vmatmul.f32.vlgmr.msra.gmra.mxu1 %v6312_v19  ;;  %v6948_v53 = vpop.permute.xlu0 %6947 }
0x12c5   : > { %6475 = vmatpush.xpose.msrb.mxu0 %v6474_v1  ;;  %6599 = vmatpush.xpose.msra.mxu1 %v6474_v1  ;;  %v6951_v23 = vsel %vm2004_vm1, %v6948_v53, 0 }
0x12c6   : > { %6424 = vmatmul.f32.vlgmr.msra.gmra.mxu2 %v6310_v33 }
0x12c8   : > { %6447 = vmatmul.f32.vlgmr.msra.gmra.mxu3 %v6310_v33 }
0x12cc   : > { %6372 = vmatmul.f32.vlgmr.msra.gmra.mxu0 %v6311_v54  ;;  %6507 = vmatmul.f32.vlgmr.msrb.gmra.mxu1 %v6476_v8 }
0x12cd   : > { %6577 = vmatpush.xpose.msra.mxu0 %v6502_v16 }
0x12ce   : > { %6531 = vmatmul.f32.vlgmr.msrb.gmra.mxu2 %v6477_v11 }
0x12d0   : > { %6555 = vmatmul.f32.vlgmr.msrb.gmra.mxu3 %v6478_v2  ;;  %v6801_v2 = vand.u32 4294901760, %v5465_v36 }
0x12d4   : > { %6481 = vmatmul.f32.vlgmr.msrb.gmra.mxu0 %v6480_v18  ;;  %6601 = vmatmul.f32.vlgmr.msra.gmra.mxu1 %v6476_v8 }
0x12dc   : > { %6579 = vmatmul.f32.vlgmr.msra.gmra.mxu0 %v6476_v8  ;;  %v10951_v8 = vand.u32 4294901760, %v6951_v23 }
0x1331   : > { %v6185_v51 = vpop.f32.mrf.mxu1 }
0x1339   : > { %v6154_v34 = vpop.f32.mrf.mxu0  ;;  %v6211_v61 = vpop.f32.mrf.mxu2 }
0x133a   : > { %v6186_v4 = vadd.f32 %v6185_v51, %v6154_v34  ;;  %v6286_v14 = vpop.f32.mrf.mxu1 }
0x133b   : > { %v6236_v38 = vpop.f32.mrf.mxu3 }
0x133c   : > { %v6212_v55 = vadd.f32 %v6211_v61, %v6186_v4  ;;  %v10954_v4 = vsub.f32 %v6951_v23, %v10951_v8 }
0x133e   : > { %v6237_v37 = vadd.f32 %v6236_v38, %v6212_v55 }
0x1341   : > { %v6263_v9 = vpop.f32.mrf.mxu0  ;;  %v6316_v58 = vpop.f32.mrf.mxu2 }
0x1342   : > { %v6264_v17 = vadd.f32 %v6263_v9, %v6237_v37  ;;  %v6398_v28 = vpop.f32.mrf.mxu1  ;;  %v6996_v37 = vand.u32 4294901760, %v10954_v4 }
0x1343   : > { %v6347_v29 = vpop.f32.mrf.mxu3 }
0x1344   : > { %v6287_v7 = vadd.f32 %v6286_v14, %v6264_v17  ;;  %v6997_v17 = vsub.f32 %v10954_v4, %v6996_v37 }
0x1346   : > { %v6317_v12 = vadd.f32 %v6316_v58, %v6287_v7 }
0x1348   : > { %v6348_v0 = vadd.f32 %v6347_v29, %v6317_v12 }
0x1349   : > { %v6373_v15 = vpop.f32.mrf.mxu0  ;;  %v6425_v44 = vpop.f32.mrf.mxu2 }
0x134a   : > { %v6374_v56 = vadd.f32 %v6373_v15, %v6348_v0  ;;  %v6508_v10 = vpop.f32.mrf.mxu1  ;;  %v6833_v0 = vsub.f32 %v5465_v36, %v6801_v2 }
0x134b   : > { %v6448_v26 = vpop.f32.mrf.mxu3 }
0x134c   : > { %v6399_v31 = vadd.f32 %v6398_v28, %v6374_v56  ;;  %v6998_v28 = vand.u32 4294901760, %v6997_v17  ;;  %v6834_v56 = vand.u32 4294901760, %v6833_v0 }
0x134e   : > { %v6426_v24 = vadd.f32 %v6425_v44, %v6399_v31 }
0x1350   : > { %v10942_v13 = vadd.f32 %v6448_v26, %v6426_v24  ;;  %v6835_v26 = vsub.f32 %v6833_v0, %v6834_v56 }
0x1351   : > { %v6482_v60 = vpop.f32.mrf.mxu0  ;;  %v6532_v22 = vpop.f32.mrf.mxu2 }
0x1352   : > { %v6509_v25 = vadd.f32 %v6508_v10, %v6482_v60  ;;  %v6602_v62 = vpop.f32.mrf.mxu1  ;;  %v6836_v24 = vand.u32 4294901760, %v6835_v26 }
0x1353   : > { %v6556_v27 = vpop.f32.mrf.mxu3 }
0x1354   : > { %v6533_v47 = vadd.f32 %v6532_v22, %v6509_v25  ;;  %v6946_v22 = vpop.permute.xlu0 %6945 }
0x1356   : > { %v6557_v57 = vadd.f32 %v6556_v27, %v6533_v47 }
0x1359   : > { %v6580_v32 = vpop.f32.mrf.mxu0 }
0x135a   : > { %v6581_v59 = vadd.f32 %v6580_v32, %v6557_v57  ;;  %v6949_v32 = vsel %vm2004_vm1, %v6946_v22, 0 }
0x135c   : > { %v6603_v1 = vadd.f32 %v6602_v62, %v6581_v59 }
0x135e   : > { %v6605_v48 = vmul.f32 0.25, %v6603_v1 }
0x1360   : > { %v6606_v33 = vsel %vm2158_vm2, %v6605_v48, -inf }
0x1361   : > { %6607 = vmax.xlane.f32.xlu1 %v6606_v33 }
0x137a   : > { %7124 = vrot.lane.b32.xlu1 %v10909_v45, %s9269_s6  ;;  %s11494_s6 = sld [smem:[#allocation34_spill]] }
0x13d4   : > { %v6608_v41 = vpop.xlane.xlu1 %6607 }
0x13d5   : > { %v6609_v63 = vsub.f32 %v6605_v48, %v6608_v41  ;;  %v6970_v48 = vand.u32 4294901760, %v6949_v32 }
0x13d7   : > { %v6610_v40 = vmul.f32 1.442695, %v6609_v63 }
0x13d9   : > { %8942 = vpow2.f32 %v6610_v40 }
0x13df   : > { %v8943_v30 = vpop.eup %8942 }
0x13e0   : > { %v6612_v52 = vsel %vm2158_vm2, %v8943_v30, 0.0 }
0x13e1   : > { %6613 = vadd.xlane.f32.xlu2 %v6612_v52  ;;  %v6971_v52 = vsub.f32 %v6949_v32, %v6970_v48 }
0x13ec   : > { %v7125_v57 = vpop.permute.xlu1 %7124 }
0x13ed   : > { %v7145_v62 = vand.u32 4294901760, %v7125_v57 }
0x13ef   : > { %v7172_v40 = vsub.f32 %v7125_v57, %v7145_v62 }
0x13f1   : > { %v7173_v53 = vand.u32 4294901760, %v7172_v40 }
0x13f9   : > { %6630 = vrot.lane.b32.xlu2 %v10909_v45, %s9268_s2  ;;  %v6799_v45 = vand.u32 4294901760, %v5466_v50  ;;  %s11493_s2 = sld [smem:[#allocation33_spill]] }
0x13fb   : > { %v6827_v7 = vsub.f32 %v5466_v50, %v6799_v45  ;;  %v7174_v50 = vsub.f32 %v7172_v40, %v7173_v53 }
0x13fd   : > { %v6828_v15 = vand.u32 4294901760, %v6827_v7 }
0x13ff   : > { %v6829_v44 = vsub.f32 %v6827_v7, %v6828_v15 }
0x1401   : > { %v6830_v31 = vand.u32 4294901760, %v6829_v44 }
0x1454   : > { %v6614_v54 = vpop.xlane.xlu2 %6613 }
0x1455   : > { %8944 = vrcp.f32 %v6614_v54  ;;  %v6626_v39 = vand.u32 2147483648, %v6614_v54  ;;  %v6624_v35 = vand.u32 2147483647, %v6614_v54  ;;  %vm6620_vm13 = vweird.f32 %v6614_v54 }
0x1457   : > { %v6627_v20 = vor.u32 1.1754944e-38, %v6626_v39  ;;  %vm6625_vm15 = vcmp.eq.f32.partialorder %v6624_v35, 8.507059e+37 }
0x145b   : > { %v8945_v49 = vpop.eup %8944 }
0x145c   : > { %v6616_v16 = vmul.f32 %v8945_v49, %v6614_v54  ;;  %v6631_v19 = vpop.permute.xlu2 %6630  ;;  %vm6621_vm12 = vweird.f32 %v8945_v49 }
0x145d   : > { %v6651_v43 = vand.u32 4294901760, %v6631_v19  ;;  %vm6622_vm14 = vmor %vm6620_vm13, %vm6621_vm12 }
0x145e   : > { %v6617_v46 = vsub.f32 1.0, %v6616_v16  ;;  %v6972_v16 = vand.u32 4294901760, %v6971_v52 }
0x145f   : > { %v6678_v3 = vsub.f32 %v6631_v19, %v6651_v43  ;;  %6652 = vmatpush.msra.mxu2 %v6651_v43  ;;  %6728 = vmatpush.msrb.mxu1 %v6651_v43 }
0x1460   : > { %v6618_v5 = vmul.f32 %v8945_v49, %v6617_v46  ;;  %v6973_v46 = vsub.f32 %v6971_v52, %v6972_v16 }
0x1461   : > { %v6679_v42 = vand.u32 4294901760, %v6678_v3  ;;  %6705 = vmatpush.msrb.mxu0 %v6678_v3  ;;  %6831 = vmatpush.msra.mxu1 %v6830_v31 }
0x1462   : > { %v6619_v11 = vadd.f32 %v8945_v49, %v6618_v5  ;;  %v6974_v36 = vand.u32 4294901760, %v6973_v46 }
0x1463   : > { %6800 = vmatpush.msra.mxu0 %v6799_v45  ;;  %v6680_v18 = vsub.f32 %v6678_v3, %v6679_v42  ;;  %6754 = vmatpush.msrb.mxu2 %v6679_v42  ;;  %v7175_v3 = vand.u32 4294901760, %v7174_v50 }
0x1464   : > { %v6623_v51 = vsel %vm6622_vm14, %v8945_v49, %v6619_v11  ;;  %6837 = vmatpush.msra.mxu1 %v6836_v24 }
0x1465   : > { %6802 = vmatpush.msra.mxu0 %v6801_v2  ;;  %v6628_v34 = vsel %vm6625_vm15, %v6627_v20, %v6623_v51  ;;  %v6681_v61 = vand.u32 4294901760, %v6680_v18 }
0x1466   : > { %v6629_v38 = vmul.f32 %v8943_v30, %v6628_v34 }
0x1467   : > { %6682 = vmatpush.msra.mxu3 %v6681_v61 }
0x1468   : > { %v6634_v55 = vsel %vm2158_vm2, %v6629_v38, 0 }
0x1469   : > { %6776 = vmatpush.msrb.mxu3 %v6651_v43  ;;  %v6653_v14 = vand.u32 4294901760, %v6634_v55 }
0x146b   : > { %6684 = vmatmul.f32.vlgmr.msra.gmra.mxu3 %v6653_v14  ;;  %v6654_v9 = vsub.f32 %v6634_v55, %v6653_v14 }
0x146c   : > { %6884 = vmatpush.msra.mxu3 %v6799_v45 }
0x146d   : > { %6708 = vmatmul.f32.vlgmr.msrb.gmra.mxu0 %v6654_v9  ;;  %v6655_v58 = vand.u32 4294901760, %v6654_v9 }
0x146e   : > { %6886 = vmatpush.msra.mxu3 %v6801_v2  ;;  %6911 = vmatpush.msrb.mxu0 %v6828_v15 }
0x146f   : > { %6732 = vmatmul.f32.vlgmr.msrb.gmra.mxu1 %v6655_v58  ;;  %v6656_v29 = vsub.f32 %v6654_v9, %v6655_v58 }
0x1470   : > { %6915 = vmatpush.msrb.mxu0 %v6834_v56  ;;  %6936 = vmatpush.msrb.mxu1 %v6799_v45 }
0x1471   : > { %v6657_v12 = vand.u32 4294901760, %v6656_v29 }
0x1472   : > { %6938 = vmatpush.msrb.mxu1 %v6801_v2 }
0x1473   : > { %6658 = vmatmul.f32.vlgmr.msra.gmra.mxu2 %v6657_v12  ;;  %6778 = vmatmul.f32.vlgmr.msrb.gmra.mxu3 %v6653_v14 }
0x1474   : > { %6999 = vmatpush.xpose.msrb.mxu3 %v6998_v28  ;;  %6859 = vmatpush.msra.mxu2 %v6827_v7 }
0x1476   : > { %6862 = vmatpush.msra.mxu2 %v6833_v0 }
0x147b   : > { %6756 = vmatmul.f32.vlgmr.msrb.gmra.mxu2 %v6653_v14 }
0x147c   : > { %6969 = vmatpush.xpose.msrb.mxu2 %v10951_v8 }
0x14ea   : > { %v6709_v47 = vpop.f32.mrf.mxu0 }
0x14ec   : > { %v6733_v59 = vpop.f32.mrf.mxu1 }
0x14ee   : > { %v6685_v10 = vpop.f32.mrf.mxu3 }
0x14f6   : > { %v6659_v60 = vpop.f32.mrf.mxu2  ;;  %v6779_v63 = vpop.f32.mrf.mxu3 }
0x14f7   : > { %v6686_v25 = vadd.f32 %v6685_v10, %v6659_v60 }
0x14f9   : > { %v6710_v27 = vadd.f32 %v6709_v47, %v6686_v25 }
0x14fb   : > { %v6734_v1 = vadd.f32 %v6733_v59, %v6710_v27 }
0x14fe   : > { %v6757_v33 = vpop.f32.mrf.mxu2 }
0x14ff   : > { %v6758_v41 = vadd.f32 %v6757_v33, %v6734_v1 }
0x1501   : > { %v6780_v30 = vadd.f32 %v6779_v63, %v6758_v41 }
0x1503   : > { %v6783_v54 = vsel %vm2004_vm1, %v6780_v30, 0  ;;  %v5468_v30 = vld [vmem:[#allocation8 + $0x38] sm:$0xff] }
0x1504   : > { %v6803_v49 = vand.u32 4294901760, %v6783_v54 }
0x1506   : > { %v6804_v19 = vsub.f32 %v6783_v54, %v6803_v49  ;;  %6839 = vmatmul.f32.vlgmr.msra.gmra.mxu1 %v6803_v49  ;;  %v5467_v54 = vld [vmem:[#allocation8 + $0x30] sm:$0xff] }
0x1507   : > { %7045 = vmatpush.xpose.msra.mxu1 %v10951_v8 }
0x1508   : > { %v6805_v43 = vand.u32 4294901760, %v6804_v19  ;;  %6865 = vmatmul.f32.vlgmr.msra.gmra.mxu2 %v6804_v19 }
0x1509   : > { %7071 = vmatpush.xpose.msra.mxu2 %v6996_v37 }
0x150a   : > { %v6806_v23 = vsub.f32 %v6804_v19, %v6805_v43  ;;  %6890 = vmatmul.f32.vlgmr.msra.gmra.mxu3 %v6805_v43 }
0x150b   : > { %7093 = vmatpush.xpose.msra.mxu3 %v10951_v8 }
0x150c   : > { %v6807_v39 = vand.u32 4294901760, %v6806_v23 }
0x150e   : > { %6808 = vmatmul.f32.vlgmr.msra.gmra.mxu0 %v6807_v39  ;;  %6940 = vmatmul.f32.vlgmr.msrb.gmra.mxu1 %v6803_v49 }
0x150f   : > { %7022 = vmatpush.xpose.msra.mxu0 %v10954_v4  ;;  %7176 = vmatpush.msrb.mxu1 %v7175_v3 }
0x1510   : > { %6975 = vmatmul.f32.vlgmr.msrb.gmra.mxu2 %v6974_v36 }
0x1511   : > { %7199 = vmatpush.msrb.mxu2 %v7172_v40 }
0x1512   : > { %7001 = vmatmul.f32.vlgmr.msrb.gmra.mxu3 %v6970_v48 }
0x1513   : > { %7222 = vmatpush.msrb.mxu3 %v7145_v62 }
0x1516   : > { %6917 = vmatmul.f32.vlgmr.msrb.gmra.mxu0 %v6803_v49  ;;  %7049 = vmatmul.f32.vlgmr.msra.gmra.mxu1 %v6972_v16 }
0x1517   : > { %7146 = vmatpush.msrb.mxu0 %v7145_v62  ;;  %7270 = vmatpush.msra.mxu1 %v7145_v62 }
0x1518   : > { %7073 = vmatmul.f32.vlgmr.msra.gmra.mxu2 %v6970_v48 }
0x151a   : > { %7095 = vmatmul.f32.vlgmr.msra.gmra.mxu3 %v6970_v48 }
0x151e   : > { %7025 = vmatmul.f32.vlgmr.msra.gmra.mxu0 %v6971_v52  ;;  %v7293_v52 = vand.u32 4294901760, %v5468_v30 }
0x151f   : > { %7248 = vmatpush.msra.mxu0 %v7173_v53  ;;  %v7295_v53 = vand.u32 4294901760, %v5467_v54 }
0x1520   : > { %v7321_v49 = vsub.f32 %v5468_v30, %v7293_v52  ;;  %7294 = vmatpush.msra.mxu2 %v7293_v52 }
0x1521   : > { %v7327_v19 = vsub.f32 %v5467_v54, %v7295_v53 }
0x1522   : > { %v7322_v16 = vand.u32 4294901760, %v7321_v49  ;;  %7296 = vmatpush.msra.mxu2 %v7295_v53 }
0x1523   : > { %v7328_v50 = vand.u32 4294901760, %v7327_v19 }
0x1524   : > { %v7323_v43 = vsub.f32 %v7321_v49, %v7322_v16 }
0x1525   : > { %v7329_v23 = vsub.f32 %v7327_v19, %v7328_v50 }
0x1526   : > { %v7324_v46 = vand.u32 4294901760, %v7323_v43  ;;  %v7479_v43 = vld [vmem:[#allocation10 + $0x10] sm:$0xff] }
0x1527   : > { %v7330_v39 = vand.u32 4294901760, %v7329_v23 }
0x1528   : > { %7325 = vmatpush.msra.mxu3 %v7324_v46 }
0x152a   : > { %7331 = vmatpush.msra.mxu3 %v7330_v39  ;;  %v7510_v39 = vand.u32 4294901760, %v7479_v43 }
0x1583   : > { %v6840_v5 = vpop.f32.mrf.mxu1 }
0x158b   : > { %v6809_v35 = vpop.f32.mrf.mxu0  ;;  %v6866_v45 = vpop.f32.mrf.mxu2 }
0x158c   : > { %v6841_v42 = vadd.f32 %v6840_v5, %v6809_v35  ;;  %v6941_v20 = vpop.f32.mrf.mxu1 }
0x158d   : > { %v6891_v8 = vpop.f32.mrf.mxu3 }
0x158e   : > { %v6867_v11 = vadd.f32 %v6866_v45, %v6841_v42 }
0x1590   : > { %v6892_v2 = vadd.f32 %v6891_v8, %v6867_v11 }
0x1593   : > { %v6918_v18 = vpop.f32.mrf.mxu0  ;;  %v6976_v34 = vpop.f32.mrf.mxu2 }
0x1594   : > { %v6919_v51 = vadd.f32 %v6918_v18, %v6892_v2  ;;  %v7050_v9 = vpop.f32.mrf.mxu1 }
0x1595   : > { %v7002_v4 = vpop.f32.mrf.mxu3 }
0x1596   : > { %v6942_v61 = vadd.f32 %v6941_v20, %v6919_v51  ;;  %v7003_v55 = vadd.f32 %v7002_v4, %v6976_v34 }
0x1598   : > { %v10966_v38 = vadd.f32 %v6942_v61, %v10942_v13 }
0x159b   : > { %v7026_v14 = vpop.f32.mrf.mxu0  ;;  %v7074_v17 = vpop.f32.mrf.mxu2 }
0x159c   : > { %v7027_v37 = vadd.f32 %v7026_v14, %v7003_v55 }
0x159d   : > { %v7096_v7 = vpop.f32.mrf.mxu3 }
0x159e   : > { %v7051_v58 = vadd.f32 %v7050_v9, %v7027_v37 }
0x15a0   : > { %v7075_v29 = vadd.f32 %v7074_v17, %v7051_v58 }
0x15a2   : > { %v7097_v12 = vadd.f32 %v7096_v7, %v7075_v29 }
0x15a4   : > { %v7099_v28 = vmul.f32 0.25, %v7097_v12 }
0x15a6   : > { %v7100_v0 = vsel %vm2158_vm2, %v7099_v28, -inf }
0x15a7   : > { %7101 = vmax.xlane.f32.xlu0 %v7100_v0 }
0x161a   : > { %v7102_v15 = vpop.xlane.xlu0 %7101 }
0x161b   : > { %v7103_v44 = vsub.f32 %v7099_v28, %v7102_v15 }
0x161d   : > { %v7104_v56 = vmul.f32 1.442695, %v7103_v44 }
0x161f   : > { %8946 = vpow2.f32 %v7104_v56  ;;  %v8900_v56 = vld [vmem:[%s11492_s28] ss:$0 sm:$0xff]  ;;  %s11501_s28 = sld [smem:[#allocation41_spill]] }
0x1625   : > { %v8947_v31 = vpop.eup %8946 }
0x1626   : > { %v7106_v13 = vsel %vm2158_vm2, %v8947_v31, 0.0 }
0x1627   : > { %7107 = vadd.xlane.f32.xlu2 %v7106_v13 }
0x169a   : > { %v7108_v26 = vpop.xlane.xlu2 %7107 }
0x169b   : > { %8948 = vrcp.f32 %v7108_v26  ;;  %v7120_v25 = vand.u32 2147483648, %v7108_v26  ;;  %v7118_v47 = vand.u32 2147483647, %v7108_v26  ;;  %vm7114_vm4 = vweird.f32 %v7108_v26 }
0x169d   : > { %v7121_v57 = vor.u32 1.1754944e-38, %v7120_v25  ;;  %vm7119_vm6 = vcmp.eq.f32.partialorder %v7118_v47, 8.507059e+37 }
0x16a1   : > { %v8949_v24 = vpop.eup %8948 }
0x16a2   : > { %v7110_v10 = vmul.f32 %v8949_v24, %v7108_v26  ;;  %vm7115_vm3 = vweird.f32 %v8949_v24 }
0x16a3   : > { %vm7116_vm5 = vmor %vm7114_vm4, %vm7115_vm3 }
0x16a4   : > { %v7111_v60 = vsub.f32 1.0, %v7110_v10 }
0x16a6   : > { %v7112_v22 = vmul.f32 %v8949_v24, %v7111_v60 }
0x16a8   : > { %v7113_v27 = vadd.f32 %v8949_v24, %v7112_v22 }
0x16aa   : > { %v7117_v32 = vsel %vm7116_vm5, %v8949_v24, %v7113_v27  ;;  %v7484_v27 = vld [vmem:[#allocation10 + $0x38] sm:$0xff]  ;;  %vm8467_vm5 = vcmask 261120  }
0x16ab   : > { %v7122_v59 = vsel %vm7119_vm6, %v7121_v57, %v7117_v32  ;;  %v10982_v57 = vand.u32 4294901760, %v7484_v27 }
0x16ac   : > { %v7123_v62 = vmul.f32 %v8947_v31, %v7122_v59  ;;  %v7482_v59 = vld [vmem:[#allocation10 + $0x28] sm:$0xff] }
0x16ae   : > { %v7128_v1 = vsel %vm2158_vm2, %v7123_v62, 0 }
0x16af   : > { %v7147_v48 = vand.u32 4294901760, %v7128_v1 }
0x16b1   : > { %7178 = vmatmul.f32.vlgmr.msrb.gmra.mxu1 %v7147_v48  ;;  %v7148_v33 = vsub.f32 %v7128_v1, %v7147_v48 }
0x16b2   : > { %7378 = vmatpush.msrb.mxu1 %v7293_v52 }
0x16b3   : > { %7202 = vmatmul.f32.vlgmr.msrb.gmra.mxu2 %v7148_v33  ;;  %v7149_v41 = vand.u32 4294901760, %v7148_v33 }
0x16b4   : > { %7380 = vmatpush.msrb.mxu1 %v7295_v53  ;;  %7405 = vmatpush.msrb.mxu2 %v7322_v16 }
0x16b5   : > { %7226 = vmatmul.f32.vlgmr.msrb.gmra.mxu3 %v7149_v41  ;;  %v7150_v63 = vsub.f32 %v7148_v33, %v7149_v41  ;;  %v7481_v33 = vld [vmem:[#allocation10 + $0x20] sm:$0xff] }
0x16b6   : > { %7409 = vmatpush.msrb.mxu2 %v7328_v50  ;;  %7430 = vmatpush.msrb.mxu3 %v7293_v52  ;;  %v11005_v30 = vand.u32 4294901760, %v7481_v33  ;;  %v7480_v52 = vld [vmem:[#allocation10 + $0x18] sm:$0xff] }
0x16b7   : > { %v7151_v40 = vand.u32 4294901760, %v7150_v63 }
0x16b8   : > { %7432 = vmatpush.msrb.mxu3 %v7295_v53  ;;  %v7552_v16 = vsub.f32 %v7481_v33, %v11005_v30 }
0x16b9   : > { %7152 = vmatmul.f32.vlgmr.msrb.gmra.mxu0 %v7151_v40  ;;  %7272 = vmatmul.f32.vlgmr.msra.gmra.mxu1 %v7147_v48 }
0x16ba   : > { %7353 = vmatpush.msrb.mxu0 %v7321_v49  ;;  %v7553_v23 = vand.u32 4294901760, %v7552_v16 }
0x16bc   : > { %7356 = vmatpush.msrb.mxu0 %v7327_v19  ;;  %v11015_v19 = vand.u32 4294901760, %v7480_v52 }
0x16c1   : > { %7250 = vmatmul.f32.vlgmr.msra.gmra.mxu0 %v7147_v48  ;;  %v10995_v48 = vand.u32 4294901760, %v7482_v59 }
0x16c2   : > { %7501 = vmatpush.msra.mxu0 %v10982_v57 }
0x16c3   : > { %v11003_v40 = vsub.f32 %v7482_v59, %v10995_v48 }
0x16c5   : > { %v7547_v53 = vand.u32 4294901760, %v11003_v40 }
0x16c7   : > { %v7548_v46 = vsub.f32 %v11003_v40, %v7547_v53 }
0x172e   : > { %v7179_v3 = vpop.f32.mrf.mxu1 }
0x1736   : > { %v7153_v36 = vpop.f32.mrf.mxu0  ;;  %v7203_v35 = vpop.f32.mrf.mxu2 }
0x1737   : > { %v7180_v5 = vadd.f32 %v7179_v3, %v7153_v36  ;;  %v7273_v20 = vpop.f32.mrf.mxu1  ;;  %v7558_v3 = vsub.f32 %v7480_v52, %v11015_v19  ;;  %v7478_v36 = vld [vmem:[#allocation10 + $0x8] sm:$0xff] }
0x1738   : > { %v7227_v42 = vpop.f32.mrf.mxu3 }
0x1739   : > { %v7204_v45 = vadd.f32 %v7203_v35, %v7180_v5  ;;  %v7549_v5 = vand.u32 4294901760, %v7548_v46  ;;  %v7554_v35 = vsub.f32 %v7552_v16, %v7553_v23 }
0x173b   : > { %v7228_v8 = vadd.f32 %v7227_v42, %v7204_v45  ;;  %v7564_v45 = vsub.f32 %v7479_v43, %v7510_v39  ;;  %v7512_v42 = vand.u32 4294901760, %v7478_v36  ;;  %v7784_v43 = vld [vmem:[%s11495_s10 + $0x58] sm:$0xff] }
0x173e   : > { %v7251_v11 = vpop.f32.mrf.mxu0 }
0x173f   : > { %v7252_v2 = vadd.f32 %v7251_v11, %v7228_v8  ;;  %v7559_v8 = vand.u32 4294901760, %v7558_v3  ;;  %v7477_v11 = vld [vmem:[#allocation10] sm:$0xff] }
0x1741   : > { %v7274_v18 = vadd.f32 %v7273_v20, %v7252_v2  ;;  %v7555_v2 = vand.u32 4294901760, %v7554_v35  ;;  %v7565_v20 = vand.u32 4294901760, %v7564_v45 }
0x1743   : > { %v7277_v51 = vsel %vm2004_vm1, %v7274_v18, 0  ;;  %v7570_v18 = vsub.f32 %v7478_v36, %v7512_v42  ;;  %v7783_v36 = vld [vmem:[%s11495_s10 + $0x50] sm:$0xff] }
0x1744   : > { %v7297_v34 = vand.u32 4294901760, %v7277_v51 }
0x1746   : > { %v7298_v61 = vsub.f32 %v7277_v51, %v7297_v34  ;;  %7333 = vmatmul.f32.vlgmr.msra.gmra.mxu3 %v7297_v34  ;;  %v7514_v51 = vand.u32 4294901760, %v7477_v11 }
0x1747   : > { %7633 = vmatpush.msra.mxu3 %v10982_v57 }
0x1748   : > { %v7299_v4 = vand.u32 4294901760, %v7298_v61  ;;  %7359 = vmatmul.f32.vlgmr.msrb.gmra.mxu0 %v7298_v61 }
0x174a   : > { %v7300_v55 = vsub.f32 %v7298_v61, %v7299_v4  ;;  %7384 = vmatmul.f32.vlgmr.msrb.gmra.mxu1 %v7299_v4  ;;  %v7566_v61 = vsub.f32 %v7564_v45, %v7565_v20  ;;  %v7571_v4 = vand.u32 4294901760, %v7570_v18 }
0x174c   : > { %v7301_v14 = vand.u32 4294901760, %v7300_v55  ;;  %v7576_v55 = vsub.f32 %v7477_v11, %v7514_v51  ;;  %v7782_v11 = vld [vmem:[%s11495_s10 + $0x48] sm:$0xff] }
0x174e   : > { %7302 = vmatmul.f32.vlgmr.msra.gmra.mxu2 %v7301_v14  ;;  %7434 = vmatmul.f32.vlgmr.msrb.gmra.mxu3 %v7297_v34 }
0x1756   : > { %7411 = vmatmul.f32.vlgmr.msrb.gmra.mxu2 %v7297_v34  ;;  %v7560_v34 = vsub.f32 %v7558_v3, %v7559_v8 }
0x1758   : > { %v7561_v14 = vand.u32 4294901760, %v7560_v34 }
0x17c5   : > { %v7360_v17 = vpop.f32.mrf.mxu0 }
0x17c7   : > { %v7385_v7 = vpop.f32.mrf.mxu1 }
0x17c9   : > { %v7334_v37 = vpop.f32.mrf.mxu3 }
0x17d1   : > { %v7303_v9 = vpop.f32.mrf.mxu2  ;;  %v7435_v15 = vpop.f32.mrf.mxu3 }
0x17d2   : > { %v7335_v58 = vadd.f32 %v7334_v37, %v7303_v9  ;;  %v7567_v37 = vand.u32 4294901760, %v7566_v61  ;;  %v7572_v9 = vsub.f32 %v7570_v18, %v7571_v4  ;;  %v7781_v61 = vld [vmem:[%s11495_s10 + $0x40] sm:$0xff] }
0x17d4   : > { %v7361_v29 = vadd.f32 %v7360_v17, %v7335_v58  ;;  %v7577_v58 = vand.u32 4294901760, %v7576_v55  ;;  %v7573_v17 = vand.u32 4294901760, %v7572_v9 }
0x17d6   : > { %v7386_v12 = vadd.f32 %v7385_v7, %v7361_v29  ;;  %v7578_v29 = vsub.f32 %v7576_v55, %v7577_v58 }
0x17d8   : > { %v7579_v7 = vand.u32 4294901760, %v7578_v29 }
0x17d9   : > { %v7412_v28 = vpop.f32.mrf.mxu2 }
0x17da   : > { %v7413_v0 = vadd.f32 %v7412_v28, %v7386_v12 }
0x17dc   : > { %v7436_v44 = vadd.f32 %v7435_v15, %v7413_v0 }
0x17de   : > { %v7438_v31 = vadd.f32 %v7436_v44, %v10966_v38  ;;  %v7483_v38 = vld [vmem:[#allocation10 + $0x30] sm:$0xff] }
0x17df   : > { %v10987_v32 = vand.u32 4294901760, %v7483_v38 }
0x17e0   : > { %v7443_v13 = vadd.f32 %v8900_v56, %v7438_v31 }
0x17e1   : > { %v10993_v1 = vsub.f32 %v7483_v38, %v10987_v32  ;;  %7503 = vmatpush.msra.mxu0 %v10987_v32  ;;  %7635 = vmatpush.msra.mxu3 %v10987_v32 }
0x17e2   : > { %v7444_v26 = vadd.f32 %v7443_v13, %v10721_v6  ;;  %v10985_v6 = vsub.f32 %v7484_v27, %v10982_v57 }
0x17e3   : > { %v7541_v63 = vand.u32 4294901760, %v10993_v1  ;;  %7505 = vmatpush.msra.mxu0 %v10995_v48  ;;  %7637 = vmatpush.msra.mxu3 %v10995_v48 }
0x17e4   : > { %v7447_v24 = vsel %vm1257_vm0, %v7444_v26, 0.0  ;;  %v7535_v62 = vand.u32 4294901760, %v10985_v6  ;;  %7596 = vmatpush.msra.mxu2 %v10985_v6 }
0x17e5   : > { %7448 = vadd.xlane.f32.xlu1 %v7447_v24  ;;  %v7542_v49 = vsub.f32 %v10993_v1, %v7541_v63  ;;  %7507 = vmatpush.msra.mxu0 %v11005_v30  ;;  %v8901_v24 = vld [vmem:[%s11493_s2] ss:$0 sm:$0xff]  ;;  %s11371_s2 = scalar_lea.vmem [#allocation11], %s11437_s18  ;;  %s9134_s18 = scalar_lea.hbm %s9465_s30, 16 }
0x17e6   : > { %v7536_v41 = vsub.f32 %v10985_v6, %v7535_v62  ;;  %7599 = vmatpush.msra.mxu2 %v10993_v1  ;;  %7639 = vmatpush.msra.mxu3 %v11005_v30 }
0x17e7   : > { %v7543_v50 = vand.u32 4294901760, %v7542_v49  ;;  %7509 = vmatpush.msra.mxu0 %v11015_v19 }
0x17e8   : > { %v7537_v54 = vand.u32 4294901760, %v7536_v41  ;;  %7602 = vmatpush.msra.mxu2 %v11003_v40  ;;  %7641 = vmatpush.msra.mxu3 %v11015_v19 }
0x17e9   : > { %7511 = vmatpush.msra.mxu0 %v7510_v39 }
0x17ea   : > { %7538 = vmatpush.msra.mxu1 %v7537_v54  ;;  %7605 = vmatpush.msra.mxu2 %v7552_v16  ;;  %v7785_v54 = vld [vmem:[%s11495_s10 + $0x60] sm:$0xff] }
0x17eb   : > { %7643 = vmatpush.msra.mxu3 %v7510_v39  ;;  %7513 = vmatpush.msra.mxu0 %v7512_v42 }
0x17ec   : > { %7544 = vmatpush.msra.mxu1 %v7543_v50  ;;  %7608 = vmatpush.msra.mxu2 %v7558_v3  ;;  %v11079_v3 = vand.u32 4294901760, %v7784_v43 }
0x17ed   : > { %7645 = vmatpush.msra.mxu3 %v7512_v42  ;;  %7515 = vmatpush.msra.mxu0 %v7514_v51 }
0x17ee   : > { %7550 = vmatpush.msra.mxu1 %v7549_v5  ;;  %7611 = vmatpush.msra.mxu2 %v7564_v45 }
0x17ef   : > { %7666 = vmatpush.msrb.mxu0 %v7535_v62  ;;  %7647 = vmatpush.msra.mxu3 %v7514_v51 }
0x17f0   : > { %7556 = vmatpush.msra.mxu1 %v7555_v2  ;;  %7614 = vmatpush.msra.mxu2 %v7570_v18 }
0x17f1   : > { %7670 = vmatpush.msrb.mxu0 %v7541_v63  ;;  %v7786_v63 = vld [vmem:[%s11495_s10 + $0x68] sm:$0xff] }
0x17f2   : > { %7562 = vmatpush.msra.mxu1 %v7561_v14  ;;  %7617 = vmatpush.msra.mxu2 %v7576_v55  ;;  %v11051_v52 = vand.u32 4294901760, %v7786_v63 }
0x17f3   : > { %7674 = vmatpush.msrb.mxu0 %v7547_v53 }
0x17f4   : > { %7568 = vmatpush.msra.mxu1 %v7567_v37  ;;  %v11062_v16 = vsub.f32 %v7786_v63, %v11051_v52  ;;  %v11112_v37 = vand.u32 4294901760, %v7781_v61 }
0x17f5   : > { %7678 = vmatpush.msrb.mxu0 %v7553_v23 }
0x17f6   : > { %7574 = vmatpush.msra.mxu1 %v7573_v17  ;;  %v7848_v23 = vand.u32 4294901760, %v11062_v16 }
0x17f7   : > { %7682 = vmatpush.msrb.mxu0 %v7559_v8  ;;  %v11091_v8 = vsub.f32 %v7784_v43, %v11079_v3 }
0x17f8   : > { %7580 = vmatpush.msra.mxu1 %v7579_v7  ;;  %v7849_v35 = vsub.f32 %v11062_v16, %v7848_v23  ;;  %v11126_v7 = vsub.f32 %v7781_v61, %v11112_v37 }
0x17f9   : > { %7686 = vmatpush.msrb.mxu0 %v7565_v20  ;;  %v7860_v34 = vand.u32 4294901760, %v11091_v8 }
0x17fa   : > { %7709 = vmatpush.msrb.mxu1 %v10982_v57  ;;  %v7850_v2 = vand.u32 4294901760, %v7849_v35 }
0x17fb   : > { %7690 = vmatpush.msrb.mxu0 %v7571_v4  ;;  %v7861_v9 = vsub.f32 %v11091_v8, %v7860_v34 }
0x17fc   : > { %7711 = vmatpush.msrb.mxu1 %v10987_v32 }
0x17fd   : > { %7694 = vmatpush.msrb.mxu0 %v7577_v58  ;;  %v7780_v58 = vld [vmem:[%s11495_s10 + $0x38] sm:$0xff] }
0x17fe   : > { %7713 = vmatpush.msrb.mxu1 %v10995_v48  ;;  %v7787_v48 = vld [vmem:[%s11495_s10 + $0x70] sm:$0xff] }
0x17ff   : > { %v11042_v41 = vand.u32 4294901760, %v7787_v48 }
0x1800   : > { %7715 = vmatpush.msrb.mxu1 %v11005_v30 }
0x1801   : > { %v11049_v30 = vsub.f32 %v7787_v48, %v11042_v41 }
0x1802   : > { %7717 = vmatpush.msrb.mxu1 %v11015_v19  ;;  %v11064_v19 = vand.u32 4294901760, %v7785_v54 }
0x1803   : > { %v7842_v53 = vand.u32 4294901760, %v11049_v30 }
0x1804   : > { %7719 = vmatpush.msrb.mxu1 %v7510_v39  ;;  %v11075_v39 = vsub.f32 %v7785_v54, %v11064_v19 }
0x1805   : > { %v7843_v46 = vsub.f32 %v11049_v30, %v7842_v53 }
0x1806   : > { %7721 = vmatpush.msrb.mxu1 %v7512_v42  ;;  %v7854_v45 = vand.u32 4294901760, %v11075_v39  ;;  %v11087_v42 = vand.u32 4294901760, %v7783_v36 }
0x1807   : > { %v7844_v5 = vand.u32 4294901760, %v7843_v46  ;;  %v8903_v46 = vld [vmem:[%s11496_s1] ss:$0 sm:$0xff]  ;;  %s8524_s1 = sshll.u32 %s11371_s2, 4  ;;  %s8525_s1 = int_to_ptr.vmem [resolvable:$true] %s8524_s1 }
0x1808   : > { %7723 = vmatpush.msrb.mxu1 %v7514_v51  ;;  %v7855_v20 = vsub.f32 %v11075_v39, %v7854_v45  ;;  %v11100_v18 = vsub.f32 %v7783_v36, %v11087_v42  ;;  %v11102_v51 = vand.u32 4294901760, %v7782_v11 }
0x180a   : > { %v7856_v4 = vand.u32 4294901760, %v7855_v20  ;;  %v7866_v55 = vand.u32 4294901760, %v11100_v18  ;;  %v11110_v14 = vsub.f32 %v7782_v11, %v11102_v51  ;;  %v7774_v20 = vld [vmem:[%s11495_s10 + $0x8] sm:$0xff] }
0x180c   : > { %v7867_v17 = vsub.f32 %v11100_v18, %v7866_v55  ;;  %v7872_v29 = vand.u32 4294901760, %v11110_v14 }
0x1858   : > { %v7449_v10 = vpop.xlane.xlu1 %7448 }
0x1859   : > { %v7450_v60 = vmul.f32 %v7449_v10, %v10197_v21 }
0x185b   : > { %v10977_v25 = vsub.f32 %v7444_v26, %v7450_v60  ;;  %v8902_v60 = vld [vmem:[%s11494_s6] ss:$0 sm:$0xff] }
0x185d   : > { %v7452_v22 = vmul.f32 %v10977_v25, %v10977_v25 }
0x185f   : > { %v7453_v47 = vsel %vm1257_vm0, %v7452_v22, 0.0 }
0x1860   : > { %7454 = vadd.xlane.f32.xlu0 %v7453_v47 }
0x18d3   : > { %v7455_v12 = vpop.xlane.xlu0 %7454 }
0x18d4   : > { %v7456_v28 = vmul.f32 %v7455_v12, %v10197_v21  ;;  %v11128_v12 = vand.u32 4294901760, %v7780_v58 }
0x18d6   : > { %v7457_v0 = vadd.f32 1e-05, %v7456_v28  ;;  %v7862_v28 = vand.u32 4294901760, %v7861_v9 }
0x18d8   : > { %8950 = vrsqrt.f32 %v7457_v0  ;;  %vm7464_vm2 = vweird.f32 %v7457_v0 }
0x18de   : > { %v8951_v15 = vpop.eup %8950 }
0x18df   : > { %v7459_v44 = vmul.f32 %v8951_v15, %v7457_v0  ;;  %vm7465_vm1 = vweird.f32 %v8951_v15  ;;  %v7779_v0 = vld [vmem:[%s11495_s10 + $0x30] sm:$0xff] }
0x18e0   : > { %vm7466_vm7 = vmor %vm7464_vm2, %vm7465_vm1 }
0x18e1   : > { %v7460_v56 = vmul.f32 %v8951_v15, %v7459_v44  ;;  %v7873_v44 = vsub.f32 %v11110_v14, %v7872_v29 }
0x18e3   : > { %v7461_v31 = vmul.f32 0.5, %v7460_v56  ;;  %v7878_v56 = vand.u32 4294901760, %v11126_v7 }
0x18e5   : > { %v7462_v13 = vsub.f32 1.5, %v7461_v31  ;;  %v11139_v31 = vsub.f32 %v7780_v58, %v11128_v12 }
0x18e7   : > { %v7463_v26 = vmul.f32 %v8951_v15, %v7462_v13  ;;  %v11142_v13 = vand.u32 4294901760, %v7779_v0 }
0x18e9   : > { %v7467_v10 = vsel %vm7466_vm7, %v8951_v15, %v7463_v26  ;;  %v7868_v15 = vand.u32 4294901760, %v7867_v17  ;;  %v7778_v26 = vld [vmem:[%s11495_s10 + $0x28] sm:$0xff] }
0x18ea   : > { %v7468_v22 = vmul.f32 %v7467_v10, %v10977_v25  ;;  %v7788_v25 = vld [vmem:[%s11495_s10 + $0x78] sm:$0xff]  ;;  %v7879_v10 = vsub.f32 %v11126_v7, %v7878_v56 }
0x18eb   : > { %v11036_v1 = vand.u32 4294901760, %v7788_v25 }
0x18ec   : > { %v7472_v47 = vmul.f32 %v8901_v24, %v7468_v22  ;;  %v7874_v24 = vand.u32 4294901760, %v7873_v44  ;;  %v11150_v22 = vand.u32 4294901760, %v7778_v26 }
0x18ed   : > { %v11040_v33 = vsub.f32 %v7788_v25, %v11036_v1  ;;  %7794 = vmatpush.msrb.mxu2 %v11036_v1  ;;  %v7776_v25 = vld [vmem:[%s11495_s10 + $0x18] sm:$0xff] }
0x18ee   : > { %v11031_v27 = vadd.f32 %v8902_v60, %v7472_v47  ;;  %v7884_v60 = vand.u32 4294901760, %v11139_v31  ;;  %v11155_v47 = vsub.f32 %v7779_v0, %v11142_v13  ;;  %v11208_v0 = vand.u32 4294901760, %v7774_v20 }
0x18ef   : > { %v7836_v40 = vand.u32 4294901760, %v11040_v33  ;;  %7796 = vmatpush.msrb.mxu2 %v11042_v41 }
0x18f0   : > { %v7490_v57 = vsel %vm1257_vm0, %v11031_v27, 0 }
0x18f1   : > { %v7516_v38 = vand.u32 4294901760, %v7490_v57  ;;  %v7837_v49 = vsub.f32 %v11040_v33, %v7836_v40  ;;  %7798 = vmatpush.msrb.mxu2 %v11051_v52 }
0x18f3   : > { %7582 = vmatmul.f32.vlgmr.msra.gmra.mxu1 %v7516_v38  ;;  %v7517_v6 = vsub.f32 %v7490_v57, %v7516_v38  ;;  %v7838_v50 = vand.u32 4294901760, %v7837_v49  ;;  %7800 = vmatpush.msrb.mxu2 %v11064_v19  ;;  %v7777_v57 = vld [vmem:[%s11495_s10 + $0x20] sm:$0xff]  ;;  %v11176_v49 = vand.u32 4294901760, %v7776_v25 }
0x18f4   : > { %7990 = vmatpush.msra.mxu1 %v11036_v1 }
0x18f5   : > { %7620 = vmatmul.f32.vlgmr.msra.gmra.mxu2 %v7517_v6  ;;  %v7518_v32 = vand.u32 4294901760, %v7517_v6  ;;  %7839 = vmatpush.msrb.mxu3 %v7838_v50  ;;  %v7775_v50 = vld [vmem:[%s11495_s10 + $0x10] sm:$0xff]  ;;  %v11191_v35 = vsub.f32 %v7776_v25, %v11176_v49 }
0x18f6   : > { %7992 = vmatpush.msra.mxu1 %v11042_v41  ;;  %7802 = vmatpush.msrb.mxu2 %v11079_v3  ;;  %v11193_v11 = vand.u32 4294901760, %v7775_v50 }
0x18f7   : > { %7651 = vmatmul.f32.vlgmr.msra.gmra.mxu3 %v7518_v32  ;;  %v7519_v59 = vsub.f32 %v7517_v6, %v7518_v32  ;;  %v7885_v6 = vsub.f32 %v11139_v31, %v7884_v60  ;;  %v11163_v32 = vsub.f32 %v7778_v26, %v11150_v22  ;;  %v7908_v9 = vand.u32 4294901760, %v11191_v35 }
0x18f8   : > { %7994 = vmatpush.msra.mxu1 %v11051_v52  ;;  %7845 = vmatpush.msrb.mxu3 %v7844_v5  ;;  %v11204_v58 = vsub.f32 %v7775_v50, %v11193_v11 }
0x18f9   : > { %v7520_v62 = vand.u32 4294901760, %v7519_v59  ;;  %7804 = vmatpush.msrb.mxu2 %v11087_v42  ;;  %v11165_v59 = vand.u32 4294901760, %v7777_v57  ;;  %v7886_v48 = vand.u32 4294901760, %v7885_v6  ;;  %v7896_v63 = vand.u32 4294901760, %v11163_v32 }
0x18fa   : > { %7996 = vmatpush.msra.mxu1 %v11064_v19  ;;  %7851 = vmatpush.msrb.mxu3 %v7850_v2 }
0x18fb   : > { %7521 = vmatmul.f32.vlgmr.msra.gmra.mxu0 %v7520_v62  ;;  %7725 = vmatmul.f32.vlgmr.msrb.gmra.mxu1 %v7516_v38  ;;  %v7890_v62 = vand.u32 4294901760, %v11155_v47  ;;  %v11174_v54 = vsub.f32 %v7777_v57, %v11165_v59  ;;  %v7897_v36 = vsub.f32 %v11163_v32, %v7896_v63  ;;  %v11219_v57 = vsub.f32 %v7774_v20, %v11208_v0 }
0x18fc   : > { %7937 = vmatpush.msra.mxu0 %v11040_v33  ;;  %7998 = vmatpush.msra.mxu1 %v11079_v3 }
0x18fd   : > { %7806 = vmatpush.msrb.mxu2 %v11102_v51  ;;  %7857 = vmatpush.msrb.mxu3 %v7856_v4  ;;  %v7891_v43 = vsub.f32 %v11155_v47, %v7890_v62  ;;  %v7902_v5 = vand.u32 4294901760, %v11174_v54  ;;  %v7898_v61 = vand.u32 4294901760, %v7897_v36  ;;  %v7920_v50 = vand.u32 4294901760, %v11219_v57 }
0x18fe   : > { %7940 = vmatpush.msra.mxu0 %v11049_v30  ;;  %8000 = vmatpush.msra.mxu1 %v11087_v42 }
0x18ff   : > { %7808 = vmatpush.msrb.mxu2 %v11112_v37  ;;  %7863 = vmatpush.msrb.mxu3 %v7862_v28  ;;  %v7892_v2 = vand.u32 4294901760, %v7891_v43  ;;  %v7903_v4 = vsub.f32 %v11174_v54, %v7902_v5 }
0x1900   : > { %7943 = vmatpush.msra.mxu0 %v11062_v16  ;;  %8002 = vmatpush.msra.mxu1 %v11102_v51 }
0x1901   : > { %7810 = vmatpush.msrb.mxu2 %v11128_v12  ;;  %7869 = vmatpush.msrb.mxu3 %v7868_v15  ;;  %v7773_v15 = vld [vmem:[%s11495_s10] sm:$0xff]  ;;  %v7904_v26 = vand.u32 4294901760, %v7903_v4 }
0x1902   : > { %7946 = vmatpush.msra.mxu0 %v11075_v39  ;;  %8004 = vmatpush.msra.mxu1 %v11112_v37 }
0x1903   : > { %7696 = vmatmul.f32.vlgmr.msrb.gmra.mxu0 %v7516_v38  ;;  %7812 = vmatpush.msrb.mxu2 %v11142_v13  ;;  %v7880_v38 = vand.u32 4294901760, %v7879_v10  ;;  %v7914_v10 = vand.u32 4294901760, %v11204_v58 }
0x1904   : > { %7949 = vmatpush.msra.mxu0 %v11091_v8  ;;  %8006 = vmatpush.msra.mxu1 %v11128_v12 }
0x1905   : > { %7875 = vmatpush.msrb.mxu3 %v7874_v24  ;;  %7814 = vmatpush.msrb.mxu2 %v11150_v22  ;;  %v7909_v24 = vsub.f32 %v11191_v35, %v7908_v9 }
0x1906   : > { %7952 = vmatpush.msra.mxu0 %v11100_v18  ;;  %8008 = vmatpush.msra.mxu1 %v11142_v13 }
0x1907   : > { %7881 = vmatpush.msrb.mxu3 %v7880_v38  ;;  %7816 = vmatpush.msrb.mxu2 %v11165_v59  ;;  %v11221_v38 = vand.u32 4294901760, %v7773_v15  ;;  %v7910_v25 = vand.u32 4294901760, %v7909_v24 }
0x1908   : > { %7955 = vmatpush.msra.mxu0 %v11110_v14  ;;  %8010 = vmatpush.msra.mxu1 %v11150_v22 }
0x1909   : > { %7887 = vmatpush.msrb.mxu3 %v7886_v48  ;;  %7818 = vmatpush.msrb.mxu2 %v11176_v49  ;;  %v7915_v48 = vsub.f32 %v11204_v58, %v7914_v10 }
0x190a   : > { %7958 = vmatpush.msra.mxu0 %v11126_v7  ;;  %8012 = vmatpush.msra.mxu1 %v11165_v59 }
0x190b   : > { %7893 = vmatpush.msrb.mxu3 %v7892_v2  ;;  %7820 = vmatpush.msrb.mxu2 %v11193_v11  ;;  %v7916_v2 = vand.u32 4294901760, %v7915_v48 }
0x190c   : > { %7961 = vmatpush.msra.mxu0 %v11139_v31  ;;  %8014 = vmatpush.msra.mxu1 %v11176_v49 }
0x190d   : > { %7899 = vmatpush.msrb.mxu3 %v7898_v61  ;;  %7822 = vmatpush.msrb.mxu2 %v11208_v0  ;;  %v7921_v61 = vsub.f32 %v11219_v57, %v7920_v50 }
0x190e   : > { %7964 = vmatpush.msra.mxu0 %v11155_v47  ;;  %8016 = vmatpush.msra.mxu1 %v11193_v11 }
0x190f   : > { %7905 = vmatpush.msrb.mxu3 %v7904_v26  ;;  %7824 = vmatpush.msrb.mxu2 %v11221_v38 }
0x1910   : > { %7967 = vmatpush.msra.mxu0 %v11163_v32  ;;  %8018 = vmatpush.msra.mxu1 %v11208_v0 }
0x1911   : > { %8031 = vmatpush.msra.mxu2 %v7836_v40  ;;  %7911 = vmatpush.msrb.mxu3 %v7910_v25  ;;  %v7922_v40 = vand.u32 4294901760, %v7921_v61  ;;  %v8904_v25 = vld [vmem:[%s11497_s24] ss:$0 sm:$0xff] }
0x1912   : > { %7970 = vmatpush.msra.mxu0 %v11174_v54  ;;  %8020 = vmatpush.msra.mxu1 %v11221_v38 }
0x1913   : > { %8035 = vmatpush.msra.mxu2 %v7842_v53  ;;  %7917 = vmatpush.msrb.mxu3 %v7916_v2 }
0x1914   : > { %7973 = vmatpush.msra.mxu0 %v11191_v35 }
0x1915   : > { %8039 = vmatpush.msra.mxu2 %v7848_v23  ;;  %7923 = vmatpush.msrb.mxu3 %v7922_v40 }
0x1916   : > { %7976 = vmatpush.msra.mxu0 %v11204_v58 }
0x1917   : > { %8043 = vmatpush.msra.mxu2 %v7854_v45 }
0x1918   : > { %7979 = vmatpush.msra.mxu0 %v11219_v57 }
0x1919   : > { %8047 = vmatpush.msra.mxu2 %v7860_v34 }
0x191b   : > { %8051 = vmatpush.msra.mxu2 %v7866_v55 }
0x191d   : > { %8055 = vmatpush.msra.mxu2 %v7872_v29 }
0x191f   : > { %8059 = vmatpush.msra.mxu2 %v7878_v56 }
0x1921   : > { %8063 = vmatpush.msra.mxu2 %v7884_v60 }
0x1923   : > { %8067 = vmatpush.msra.mxu2 %v7890_v62 }
0x1925   : > { %8071 = vmatpush.msra.mxu2 %v7896_v63 }
0x1927   : > { %8075 = vmatpush.msra.mxu2 %v7902_v5 }
0x1929   : > { %8079 = vmatpush.msra.mxu2 %v7908_v9 }
0x192b   : > { %8083 = vmatpush.msra.mxu2 %v7914_v10 }
0x192d   : > { %8087 = vmatpush.msra.mxu2 %v7920_v50 }
0x1970   : > { %v7583_v17 = vpop.f32.mrf.mxu1 }
0x1978   : > { %v7522_v28 = vpop.f32.mrf.mxu0  ;;  %v7621_v43 = vpop.f32.mrf.mxu2 }
0x1979   : > { %v7523_v44 = vadd.f32 %v8903_v46, %v7522_v28  ;;  %v11231_v46 = vsub.f32 %v7773_v15, %v11221_v38 }
0x197a   : > { %v7652_v20 = vpop.f32.mrf.mxu3 }
0x197b   : > { %v7584_v6 = vadd.f32 %v7583_v17, %v7523_v44  ;;  %v7926_v4 = vand.u32 4294901760, %v11231_v46  ;;  %7982 = vmatpush.msra.mxu0 %v11231_v46  ;;  %v7726_v44 = vpop.f32.mrf.mxu1 }
0x197d   : > { %v7622_v36 = vadd.f32 %v7621_v43, %v7584_v6  ;;  %v7927_v28 = vsub.f32 %v11231_v46, %v7926_v4  ;;  %8091 = vmatpush.msra.mxu2 %v7926_v4 }
0x197f   : > { %v7653_v17 = vadd.f32 %v7652_v20, %v7622_v36  ;;  %v7928_v26 = vand.u32 4294901760, %v7927_v28 }
0x1980   : > { %v7697_v33 = vpop.f32.mrf.mxu0 }
0x1981   : > { %v7698_v15 = vadd.f32 %v7697_v33, %v7653_v17  ;;  %7929 = vmatpush.msrb.mxu3 %v7928_v26 }
0x1983   : > { %v11248_v24 = vadd.f32 %v7726_v44, %v7698_v15  ;;  %8098 = vmatpush.msra.mxu3 %v11036_v1 }
0x1985   : > { %v11253_v30 = vmul.f32 0.70710677, %v11248_v24  ;;  %8100 = vmatpush.msra.mxu3 %v11042_v41 }
0x1987   : > { %v7731_v53 = vmul.f32 %v11253_v30, %v11253_v30  ;;  %8102 = vmatpush.msra.mxu3 %v11051_v52 }
0x1989   : > { %v7732_v16 = vmin.f32 %v7731_v53, 16.0  ;;  %8104 = vmatpush.msra.mxu3 %v11064_v19 }
0x198b   : > { %v7733_v23 = vmul.f32 2.1237322e-06, %v7732_v16  ;;  %v7744_v39 = vmul.f32 3.8918573e-05, %v7732_v16  ;;  %8106 = vmatpush.msra.mxu3 %v11079_v3 }
0x198d   : > { %v7734_v1 = vadd.f32 0.00028619796, %v7733_v23  ;;  %v7745_v45 = vadd.f32 0.001143296, %v7744_v39  ;;  %8108 = vmatpush.msra.mxu3 %v11087_v42 }
0x198f   : > { %v7735_v41 = vmul.f32 %v7734_v1, %v7732_v16  ;;  %v7746_v8 = vmul.f32 %v7745_v45, %v7732_v16  ;;  %8110 = vmatpush.msra.mxu3 %v11102_v51  ;;  %v8174_v45 = vld [vmem:[%s11498_s12 + $0x28] sm:$0xff] }
0x1991   : > { %v7747_v52 = vadd.f32 0.014752088, %v7746_v8  ;;  %v7736_v19 = vadd.f32 0.0036580483, %v7735_v41  ;;  %8112 = vmatpush.msra.mxu3 %v11112_v37 }
0x1993   : > { %v7748_v18 = vmul.f32 %v7747_v52, %v7732_v16  ;;  %8114 = vmatpush.msra.mxu3 %v11128_v12  ;;  %v7737_v42 = vmul.f32 %v7736_v19, %v7732_v16  ;;  %v11322_v52 = vand.u32 4294901760, %v8174_v45  ;;  %v8173_v19 = vld [vmem:[%s11498_s12 + $0x20] sm:$0xff] }
0x1995   : > { %v7749_v3 = vadd.f32 0.112945676, %v7748_v18  ;;  %8116 = vmatpush.msra.mxu3 %v11142_v13  ;;  %v7738_v55 = vadd.f32 0.05243302, %v7737_v42  ;;  %v11330_v42 = vsub.f32 %v8174_v45, %v11322_v52 }
0x1997   : > { %v7750_v34 = vmul.f32 %v7749_v3, %v7732_v16  ;;  %8118 = vmatpush.msra.mxu3 %v11150_v22  ;;  %v7739_v29 = vmul.f32 %v7738_v55, %v7732_v16 }
0x1999   : > { %v7751_v51 = vadd.f32 0.4994258, %v7750_v34  ;;  %8120 = vmatpush.msra.mxu3 %v11165_v59  ;;  %v7740_v7 = vadd.f32 0.18741608, %v7739_v29  ;;  %v11332_v34 = vand.u32 4294901760, %v8173_v19 }
0x199b   : > { %v7752_v14 = vmul.f32 %v7751_v51, %v7732_v16  ;;  %8122 = vmatpush.msra.mxu3 %v11176_v49  ;;  %v7741_v56 = vmul.f32 %v7740_v7, %v7732_v16  ;;  %v8176_v16 = vld [vmem:[%s11498_s12 + $0x38] sm:$0xff]  ;;  %v8244_v29 = vsub.f32 %v8173_v19, %v11332_v34 }
0x199c   : > { %v11307_v23 = vand.u32 4294901760, %v8176_v16  ;;  %v8172_v51 = vld [vmem:[%s11498_s12 + $0x18] sm:$0xff] }
0x199d   : > { %v7753_v37 = vadd.f32 1.0, %v7752_v14  ;;  %8124 = vmatpush.msra.mxu3 %v11193_v11  ;;  %v7742_v22 = vadd.f32 1.1283791, %v7741_v56  ;;  %v7729_v11 = vmul.f32 0.5, %v11248_v24  ;;  %v11341_v7 = vand.u32 4294901760, %v8172_v51 }
0x199e   : > { %v11311_v39 = vsub.f32 %v8176_v16, %v11307_v23  ;;  %8193 = vmatpush.msrb.mxu0 %v11307_v23  ;;  %v8963_v16 = vld [vmem:[%s9680_s11] sm:$0xff]  ;;  %s11438_s11 = sshll.u32 %s9493_s0, 3 }
0x199f   : > { %8952 = vrcp.f32 %v7753_v37  ;;  %8126 = vmatpush.msra.mxu3 %v11208_v0  ;;  %v7765_v60 = vand.u32 2147483648, %v7753_v37  ;;  %v7763_v32 = vand.u32 2147483647, %v7753_v37  ;;  %vm7759_vm9 = vweird.f32 %v7753_v37  ;;  %s8522_s6 = scalar_lea.hbm %s9465_s30, %s11438_s11 }
0x19a0   : > { %v7743_v63 = vmul.f32 %v7742_v22, %v11253_v30  ;;  %v8227_v41 = vand.u32 4294901760, %v11311_v39  ;;  %v8250_v22 = vsub.f32 %v8172_v51, %v11341_v7  ;;  %s8526_s24 = sshll.u32 %s8522_s6, 4  ;;  %s8527_s24 = int_to_ptr.hbm [resolvable:$true] %s8526_s24 }
0x19a1   : > { %8128 = vmatpush.msra.mxu3 %v11221_v38  ;;  %v7766_v62 = vor.u32 1.1754944e-38, %v7765_v60  ;;  %vm7764_vm11 = vcmp.eq.f32.partialorder %v7763_v32, 8.507059e+37 }
0x19a2   : > { %v8228_v18 = vsub.f32 %v11311_v39, %v8227_v41 }
0x19a4   : > { %v8229_v55 = vand.u32 4294901760, %v8228_v18 }
0x19a5   : > { %v8953_v12 = vpop.eup %8952 }
0x19a6   : > { %v7755_v31 = vmul.f32 %v8953_v12, %v7753_v37  ;;  %vm7760_vm8 = vweird.f32 %v8953_v12  ;;  %v8239_v37 = vand.u32 4294901760, %v11330_v42  ;;  %8230 = vmatpush.msrb.mxu1 %v8229_v55 }
0x19a7   : > { %vm7761_vm10 = vmor %vm7759_vm9, %vm7760_vm8 }
0x19a8   : > { %v7756_v13 = vsub.f32 1.0, %v7755_v31  ;;  %v8240_v31 = vsub.f32 %v11330_v42, %v8239_v37 }
0x19aa   : > { %v7757_v47 = vmul.f32 %v8953_v12, %v7756_v13  ;;  %v8245_v13 = vand.u32 4294901760, %v8244_v29  ;;  %v8241_v32 = vand.u32 4294901760, %v8240_v31 }
0x19ac   : > { %v7758_v59 = vadd.f32 %v8953_v12, %v7757_v47  ;;  %v8170_v47 = vld [vmem:[%s11498_s12 + $0x8] sm:$0xff] }
0x19ae   : > { %v7762_v54 = vsel %vm7761_vm10, %v8953_v12, %v7758_v59  ;;  %v8171_v12 = vld [vmem:[%s11498_s12 + $0x10] sm:$0xff]  ;;  %v8246_v59 = vsub.f32 %v8244_v29, %v8245_v13 }
0x19af   : > { %v7767_v49 = vsel %vm7764_vm11, %v7766_v62, %v7762_v54  ;;  %v8202_v60 = vand.u32 4294901760, %v8171_v12  ;;  %v8251_v54 = vand.u32 4294901760, %v8250_v22 }
0x19b0   : > { %v7768_v5 = vmul.f32 %v7767_v49, %v7743_v63  ;;  %v8204_v63 = vand.u32 4294901760, %v8170_v47  ;;  %v8169_v49 = vld [vmem:[%s11498_s12] sm:$0xff] }
0x19b1   : > { %v8256_v62 = vsub.f32 %v8171_v12, %v8202_v60 }
0x19b2   : > { %v8739_v35 = vclamps-f32 %v7768_v5, 1.0  ;;  %v8247_v5 = vand.u32 4294901760, %v8246_v59 }
0x19b4   : > { %v7771_v9 = vadd.f32 1.0, %v8739_v35  ;;  %v8257_v35 = vand.u32 4294901760, %v8256_v62 }
0x19b6   : > { %v7772_v58 = vmul.f32 %v7771_v9, %v7729_v11  ;;  %v8262_v11 = vsub.f32 %v8170_v47, %v8204_v63  ;;  %v8206_v9 = vand.u32 4294901760, %v8169_v49 }
0x19b8   : > { %v7825_v0 = vand.u32 4294901760, %v7772_v58 }
0x19ba   : > { %v7826_v10 = vsub.f32 %v7772_v58, %v7825_v0  ;;  %7931 = vmatmul.f32.vlgmr.msrb.gmra.mxu3 %v7825_v0  ;;  %v8252_v58 = vsub.f32 %v8250_v22, %v8251_v54 }
0x19bb   : > { %8401 = vmatpush.msrb.mxu3 %v11307_v23 }
0x19bc   : > { %7985 = vmatmul.f32.vlgmr.msra.gmra.mxu0 %v7826_v10  ;;  %v7827_v57 = vand.u32 4294901760, %v7826_v10 }
0x19be   : > { %8024 = vmatmul.f32.vlgmr.msra.gmra.mxu1 %v7827_v57  ;;  %v7828_v38 = vsub.f32 %v7826_v10, %v7827_v57  ;;  %v8263_v10 = vand.u32 4294901760, %v8262_v11  ;;  %v8268_v57 = vsub.f32 %v8169_v49, %v8206_v9 }
0x19c0   : > { %v7829_v6 = vand.u32 4294901760, %v7828_v38  ;;  %v8253_v38 = vand.u32 4294901760, %v8252_v58 }
0x19c2   : > { %7830 = vmatmul.f32.vlgmr.msrb.gmra.mxu2 %v7829_v6  ;;  %8130 = vmatmul.f32.vlgmr.msra.gmra.mxu3 %v7825_v0 }
0x19c3   : > { %8358 = vmatpush.msrb.mxu2 %v8227_v41 }
0x19ca   : > { %8093 = vmatmul.f32.vlgmr.msra.gmra.mxu2 %v7825_v0  ;;  %v8258_v0 = vsub.f32 %v8256_v62, %v8257_v35 }
0x19cc   : > { %v8259_v6 = vand.u32 4294901760, %v8258_v0 }
0x1a39   : > { %v7986_v36 = vpop.f32.mrf.mxu0 }
0x1a3b   : > { %v8025_v20 = vpop.f32.mrf.mxu1 }
0x1a3d   : > { %v7932_v48 = vpop.f32.mrf.mxu3 }
0x1a45   : > { %v7831_v43 = vpop.f32.mrf.mxu2  ;;  %v8131_v33 = vpop.f32.mrf.mxu3 }
0x1a46   : > { %v7832_v50 = vadd.f32 %v8904_v25, %v7831_v43  ;;  %v8264_v25 = vsub.f32 %v8262_v11, %v8263_v10 }
0x1a48   : > { %v7933_v46 = vadd.f32 %v7932_v48, %v7832_v50  ;;  %v8269_v48 = vand.u32 4294901760, %v8268_v57  ;;  %v8265_v43 = vand.u32 4294901760, %v8264_v25 }
0x1a4a   : > { %v7987_v2 = vadd.f32 %v7986_v36, %v7933_v46  ;;  %v8270_v50 = vsub.f32 %v8268_v57, %v8269_v48 }
0x1a4c   : > { %v8026_v61 = vadd.f32 %v8025_v20, %v7987_v2  ;;  %v8271_v46 = vand.u32 4294901760, %v8270_v50 }
0x1a4d   : > { %v8094_v4 = vpop.f32.mrf.mxu2 }
0x1a4e   : > { %v8095_v17 = vadd.f32 %v8094_v4, %v8026_v61 }
0x1a50   : > { %v8132_v40 = vadd.f32 %v8131_v33, %v8095_v17 }
0x1a52   : > { %v8134_v28 = vadd.f32 %v8132_v40, %v11031_v27  ;;  %v8175_v27 = vld [vmem:[%s11498_s12 + $0x30] sm:$0xff] }
0x1a53   : > { %v11313_v1 = vand.u32 4294901760, %v8175_v27 }
0x1a54   : > { %v8137_v15 = vsel %vm1257_vm0, %v8134_v28, 0.0 }
0x1a55   : > { %8138 = vadd.xlane.f32.xlu2 %v8137_v15  ;;  %v11320_v8 = vsub.f32 %v8175_v27, %v11313_v1  ;;  %8403 = vmatpush.msrb.mxu3 %v11313_v1 }
0x1a56   : > { %8195 = vmatpush.msrb.mxu0 %v11313_v1 }
0x1a57   : > { %v8233_v3 = vand.u32 4294901760, %v11320_v8  ;;  %8405 = vmatpush.msrb.mxu3 %v11322_v52 }
0x1a58   : > { %8197 = vmatpush.msrb.mxu0 %v11322_v52 }
0x1a59   : > { %v8234_v14 = vsub.f32 %v11320_v8, %v8233_v3  ;;  %8362 = vmatpush.msrb.mxu2 %v8233_v3  ;;  %8407 = vmatpush.msrb.mxu3 %v11332_v34 }
0x1a5a   : > { %8199 = vmatpush.msrb.mxu0 %v11332_v34 }
0x1a5b   : > { %v8235_v56 = vand.u32 4294901760, %v8234_v14  ;;  %8366 = vmatpush.msrb.mxu2 %v8239_v37  ;;  %8409 = vmatpush.msrb.mxu3 %v11341_v7 }
0x1a5c   : > { %8201 = vmatpush.msrb.mxu0 %v11341_v7 }
0x1a5d   : > { %8236 = vmatpush.msrb.mxu1 %v8235_v56  ;;  %8370 = vmatpush.msrb.mxu2 %v8245_v13 }
0x1a5e   : > { %8411 = vmatpush.msrb.mxu3 %v8202_v60  ;;  %8203 = vmatpush.msrb.mxu0 %v8202_v60 }
0x1a5f   : > { %8242 = vmatpush.msrb.mxu1 %v8241_v32  ;;  %8374 = vmatpush.msrb.mxu2 %v8251_v54 }
0x1a60   : > { %8413 = vmatpush.msrb.mxu3 %v8204_v63  ;;  %8205 = vmatpush.msrb.mxu0 %v8204_v63 }
0x1a61   : > { %8248 = vmatpush.msrb.mxu1 %v8247_v5  ;;  %8378 = vmatpush.msrb.mxu2 %v8257_v35 }
0x1a62   : > { %8415 = vmatpush.msrb.mxu3 %v8206_v9  ;;  %8207 = vmatpush.msrb.mxu0 %v8206_v9 }
0x1a63   : > { %8254 = vmatpush.msrb.mxu1 %v8253_v38  ;;  %8382 = vmatpush.msrb.mxu2 %v8263_v10 }
0x1a64   : > { %8288 = vmatpush.msra.mxu0 %v11311_v39 }
0x1a65   : > { %8260 = vmatpush.msrb.mxu1 %v8259_v6  ;;  %8386 = vmatpush.msrb.mxu2 %v8269_v48 }
0x1a66   : > { %8291 = vmatpush.msra.mxu0 %v11320_v8  ;;  %v8907_v8 = vld [vmem:[%s11501_s28] ss:$0 sm:$0xff] }
0x1a67   : > { %8266 = vmatpush.msrb.mxu1 %v8265_v43 }
0x1a68   : > { %8294 = vmatpush.msra.mxu0 %v11330_v42 }
0x1a69   : > { %8272 = vmatpush.msrb.mxu1 %v8271_v46 }
0x1a6a   : > { %8297 = vmatpush.msra.mxu0 %v8244_v29 }
0x1a6b   : > { %8325 = vmatpush.msra.mxu1 %v11307_v23 }
0x1a6c   : > { %8300 = vmatpush.msra.mxu0 %v8250_v22 }
0x1a6d   : > { %8327 = vmatpush.msra.mxu1 %v11313_v1 }
0x1a6e   : > { %8303 = vmatpush.msra.mxu0 %v8256_v62 }
0x1a6f   : > { %8329 = vmatpush.msra.mxu1 %v11322_v52 }
0x1a70   : > { %8306 = vmatpush.msra.mxu0 %v8262_v11 }
0x1a71   : > { %8331 = vmatpush.msra.mxu1 %v11332_v34 }
0x1a72   : > { %8309 = vmatpush.msra.mxu0 %v8268_v57 }
0x1a73   : > { %8333 = vmatpush.msra.mxu1 %v11341_v7 }
0x1a75   : > { %8335 = vmatpush.msra.mxu1 %v8202_v60 }
0x1a77   : > { %8337 = vmatpush.msra.mxu1 %v8204_v63 }
0x1a79   : > { %8339 = vmatpush.msra.mxu1 %v8206_v9 }
0x1ac8   : > { %v8139_v44 = vpop.xlane.xlu2 %8138 }
0x1ac9   : > { %v8140_v26 = vmul.f32 %v8139_v44, %v10197_v21  ;;  %v8906_v44 = vld [vmem:[%s11500_s27] ss:$0 sm:$0xff]  ;;  %s9128_s27 = sshra.s32 %s8527_s24, 4  ;;  %s9129_s27 = int_to_ptr.hbm [resolvable:$true] %s9128_s27 }
0x1aca   : > { %s9130_s28 = scalar_lea.hbm %s9129_s27, 8  ;;  %p9135_p3 = scmp.lt.s32.totalorder %s9129_s27, %s9465_s30 }
0x1acb   : > { %v11301_v24 = vsub.f32 %v8134_v28, %v8140_v26  ;;  %v8905_v28 = vld [vmem:[%s11499_s22] ss:$0 sm:$0xff]  ;;  %s8507_s22 = scalar_lea.sflag [#allocation4], %s11362_s15  ;;  %p9131_p9 = scmp.ne.s32.totalorder %s9129_s27, %s9130_s28 }
0x1acc   : > { %p9136_p4 = scmp.lt.s32.totalorder %s9134_s18, %s9130_s28 }
0x1acd   : > { %v8142_v30 = vmul.f32 %v11301_v24, %v11301_v24  ;;  %p9132_p12 = pnand %p9131_p9, %p9510_p5 }
0x1ace   : > { %p9137_p7 = por %p9136_p4, %p9135_p3 }
0x1acf   : > { %v8143_v53 = vsel %vm1257_vm0, %v8142_v30, 0.0  ;;  %p9133_p0 = pneg %p9132_p12 }
0x1ad0   : > { %8144 = vadd.xlane.f32.xlu0 %v8143_v53 }
0x1ad1   : > { %p9138_p8 = pnand %p9137_p7, %p9133_p0 }
0x1b43   : > { %v8145_v36 = vpop.xlane.xlu0 %8144 }
0x1b44   : > { %v8146_v2 = vmul.f32 %v8145_v36, %v10197_v21 }
0x1b46   : > { %v8147_v20 = vadd.f32 1e-05, %v8146_v2 }
0x1b48   : > { %8954 = vrsqrt.f32 %v8147_v20  ;;  %vm8154_vm13 = vweird.f32 %v8147_v20 }
0x1b4e   : > { %v8955_v61 = vpop.eup %8954 }
0x1b4f   : > { %v8149_v4 = vmul.f32 %v8955_v61, %v8147_v20  ;;  %vm8155_vm12 = vweird.f32 %v8955_v61 }
0x1b50   : > { %vm8156_vm14 = vmor %vm8154_vm13, %vm8155_vm12 }
0x1b51   : > { %v8150_v21 = vmul.f32 %v8955_v61, %v8149_v4 }
0x1b53   : > { %v8151_v17 = vmul.f32 0.5, %v8150_v21 }
0x1b55   : > { %v8152_v33 = vsub.f32 1.5, %v8151_v17 }
0x1b57   : > { %v8153_v40 = vmul.f32 %v8955_v61, %v8152_v33 }
0x1b59   : > { %v8157_v15 = vsel %vm8156_vm14, %v8955_v61, %v8153_v40 }
0x1b5a   : > { %v8158_v26 = vmul.f32 %v8157_v15, %v11301_v24 }
0x1b5c   : > { %v8162_v30 = vmul.f32 %v8905_v28, %v8158_v26  ;;  %v9271_v26 = vmov 32.0  }
0x1b5e   : > { %v8166_v53 = vadd.f32 %v8906_v44, %v8162_v30 }
0x1b60   : > { %v8167_v23 = vadd.f32 %v8963_v16, %v8166_v53 }
0x1b62   : > { %v8182_v27 = vsel %vm1257_vm0, %v8167_v23, 0  ;;  %8168 = vst.msk [vmem:[%s11371_s2] sm:$0xff] %vm1257_vm0, %v8167_v23 }
0x1b63   : > { %v8208_v39 = vand.u32 4294901760, %v8182_v27 }
0x1b65   : > { %v8209_v1 = vsub.f32 %v8182_v27, %v8208_v39  ;;  %8274 = vmatmul.f32.vlgmr.msrb.gmra.mxu1 %v8208_v39  ;;  %8388 = vmatmul.f32.vlgmr.msrb.gmra.mxu2 %v8208_v39 }
0x1b66   : > { %8417 = vmatmul.f32.vlgmr.msrb.gmra.mxu3 %v8208_v39 }
0x1b67   : > { %v8210_v24 = vand.u32 4294901760, %v8209_v1 }
0x1b69   : > { %v8211_v45 = vsub.f32 %v8209_v1, %v8210_v24 }
0x1b6b   : > { %v8212_v41 = vand.u32 4294901760, %v8211_v45 }
0x1b6d   : > { %8213 = vmatmul.f32.vlgmr.msrb.gmra.mxu0 %v8212_v41  ;;  %8343 = vmatmul.f32.vlgmr.msra.gmra.mxu1 %v8210_v24 }
0x1b75   : > { %8312 = vmatmul.f32.vlgmr.msra.gmra.mxu0 %v8209_v1 }
0x1be2   : > { %v8275_v52 = vpop.f32.mrf.mxu1 }
0x1be8   : > { %v8389_v14 = vpop.f32.mrf.mxu2 }
0x1be9   : > { %v8418_v29 = vpop.f32.mrf.mxu3 }
0x1bea   : > { %v8214_v19 = vpop.f32.mrf.mxu0  ;;  %v8344_v51 = vpop.f32.mrf.mxu1 }
0x1beb   : > { %v8215_v18 = vadd.f32 %v8907_v8, %v8214_v19 }
0x1bed   : > { %v8276_v3 = vadd.f32 %v8275_v52, %v8215_v18 }
0x1bf2   : > { %v8313_v42 = vpop.f32.mrf.mxu0 }
0x1bf3   : > { %v8314_v34 = vadd.f32 %v8313_v42, %v8276_v3 }
0x1bf5   : > { %v8345_v55 = vadd.f32 %v8344_v51, %v8314_v34 }
0x1bf7   : > { %v8390_v37 = vadd.f32 %v8389_v14, %v8345_v55 }
0x1bf9   : > { %v8419_v7 = vadd.f32 %v8418_v29, %v8390_v37 }
0x1bfb   : > { %v8422_v12 = vmul.f32 0.70710677, %v8419_v7  ;;  %v8421_v40 = vmul.f32 0.5, %v8419_v7 }
0x1bfd   : > { %v8423_v56 = vmul.f32 %v8422_v12, %v8422_v12 }
0x1bff   : > { %v8424_v31 = vmin.f32 %v8423_v56, 16.0 }
0x1c01   : > { %v8425_v13 = vmul.f32 2.1237322e-06, %v8424_v31  ;;  %v8436_v60 = vmul.f32 3.8918573e-05, %v8424_v31 }
0x1c03   : > { %v8426_v22 = vadd.f32 0.00028619796, %v8425_v13  ;;  %v8437_v47 = vadd.f32 0.001143296, %v8436_v60 }
0x1c05   : > { %v8427_v32 = vmul.f32 %v8426_v22, %v8424_v31  ;;  %v8438_v59 = vmul.f32 %v8437_v47, %v8424_v31 }
0x1c07   : > { %v8439_v62 = vadd.f32 0.014752088, %v8438_v59  ;;  %v8428_v63 = vadd.f32 0.0036580483, %v8427_v32 }
0x1c09   : > { %v8440_v54 = vmul.f32 %v8439_v62, %v8424_v31  ;;  %v8429_v5 = vmul.f32 %v8428_v63, %v8424_v31 }
0x1c0b   : > { %v8441_v49 = vadd.f32 0.112945676, %v8440_v54  ;;  %v8430_v9 = vadd.f32 0.05243302, %v8429_v5 }
0x1c0d   : > { %v8442_v35 = vmul.f32 %v8441_v49, %v8424_v31  ;;  %v8431_v10 = vmul.f32 %v8430_v9, %v8424_v31 }
0x1c0f   : > { %v8443_v11 = vadd.f32 0.4994258, %v8442_v35  ;;  %v8432_v57 = vadd.f32 0.18741608, %v8431_v10 }
0x1c11   : > { %v8444_v58 = vmul.f32 %v8443_v11, %v8424_v31  ;;  %v8433_v6 = vmul.f32 %v8432_v57, %v8424_v31 }
0x1c13   : > { %v8445_v0 = vadd.f32 1.0, %v8444_v58  ;;  %v8434_v50 = vadd.f32 1.1283791, %v8433_v6 }
0x1c15   : > { %8956 = vrcp.f32 %v8445_v0  ;;  %v8457_v43 = vand.u32 2147483648, %v8445_v0  ;;  %v8455_v36 = vand.u32 2147483647, %v8445_v0  ;;  %vm8451_vm15 = vweird.f32 %v8445_v0 }
0x1c16   : > { %v8435_v61 = vmul.f32 %v8434_v50, %v8422_v12  ;;  %8958 = vrcp.f32 %v9271_v26 }
0x1c17   : > { %v8458_v20 = vor.u32 1.1754944e-38, %v8457_v43  ;;  %vm8456_vm4 = vcmp.eq.f32.partialorder %v8455_v36, 8.507059e+37 }
0x1c1b   : > { %v8957_v38 = vpop.eup %8956 }
0x1c1c   : > { %v8447_v25 = vmul.f32 %v8957_v38, %v8445_v0  ;;  %vm8452_vm0 = vweird.f32 %v8957_v38  ;;  %v8959_v30 = vpop.eup %8958 }
0x1c1d   : > { %vm8453_vm3 = vmor %vm8451_vm15, %vm8452_vm0  ;;  %v8472_v53 = vmul.f32 32.0, %v8959_v30  ;;  %vm8476_vm6 = vweird.f32 %v8959_v30 }
0x1c1e   : > { %v8448_v48 = vsub.f32 1.0, %v8447_v25 }
0x1c1f   : > { %v8473_v16 = vsub.f32 1.0, %v8472_v53 }
0x1c20   : > { %v8449_v46 = vmul.f32 %v8957_v38, %v8448_v48 }
0x1c21   : > { %v8474_v23 = vmul.f32 %v8959_v30, %v8473_v16 }
0x1c22   : > { %v8450_v2 = vadd.f32 %v8957_v38, %v8449_v46 }
0x1c23   : > { %v8475_v27 = vadd.f32 %v8959_v30, %v8474_v23 }
0x1c24   : > { %v8454_v4 = vsel %vm8453_vm3, %v8957_v38, %v8450_v2 }
0x1c25   : > { %v8459_v21 = vsel %vm8456_vm4, %v8458_v20, %v8454_v4  ;;  %v8477_v39 = vsel %vm8476_vm6, %v8959_v30, %v8475_v27 }
0x1c26   : > { %v8460_v17 = vmul.f32 %v8459_v21, %v8435_v61 }
0x1c28   : > { %v8740_v33 = vclamps-f32 %v8460_v17, 1.0 }
0x1c2a   : > { %v8463_v28 = vadd.f32 1.0, %v8740_v33 }
0x1c2c   : > { %v8464_v15 = vmul.f32 %v8463_v28, %v8421_v40 }
0x1c2e   : > { %v8468_v44 = vsel %vm8467_vm5, %v8464_v15, 0.0 }
0x1c2f   : > { %8469 = vadd.xlane.f32.xlu2 %v8468_v44 }
0x1ca2   : > { %v8470_v1 = vpop.xlane.xlu2 %8469 }
0x1ca3   : > { %v8478_v24 = vmul.f32 %v8477_v39, %v8470_v1 }
0x1ca5   : > { %v8479_v45 = vsub.f32 %v8464_v15, %v8478_v24 }
0x1ca7   : > { %v8480_v41 = vmul.f32 %v8479_v45, %v8479_v45 }
0x1ca9   : > { %v8481_v8 = vsel %vm8467_vm5, %v8480_v41, 0.0 }
0x1caa   : > { %8482 = vadd.xlane.f32.xlu0 %v8481_v8 }
0x1cab   : > { %9141 = shalt.err (!%p9138_p8)
}
0x1cac   : > { %s11502_s2 = sld [smem:[#allocation42_spill]]  ;;  %s11505_s18 = sshll.u32 %s9493_s0, 3 }
0x1cad   : > { %s11503_s6 = sld [smem:[#allocation44_spill]] }
0x1cae   : > { %8767 = dma.vmem_to_hbm [thread:$0]  (%p9510_p5), %s8525_s1, 128, %s8527_s24, %s8507_s22  }
0x1caf   : > { %s11504_s11 = sld [smem:[#allocation43_spill]]  ;;  %s11506_s1 = sshll.u32 %s11362_s15, 3 }
0x1cb0   : > { %s1239_s24 = scalar_lea.vmem [#allocation12], %s11506_s1 }
0x1cb1   : > { %s8538_s22 = sshll.u32 %s1239_s24, 4  ;;  %s8539_s22 = int_to_ptr.vmem [resolvable:$true] %s8538_s22 }
0x1cb2   : > { %v8908_v37 = vld [vmem:[%s11502_s2] ss:$0 sm:$0xff]  ;;  %s8512_s2 = scalar_lea.sflag [#allocation13], %s11362_s15 }
0x1cb3   : > { %s8536_s27 = scalar_lea.hbm %s11503_s6, %s11505_s18 }
0x1cb4   : > { %s8540_s28 = sshll.u32 %s8536_s27, 4  ;;  %s8541_s28 = int_to_ptr.hbm [resolvable:$true] %s8540_s28 }
0x1cb5   : > { %v8909_v12 = vld [vmem:[%s11504_s11] ss:$0 sm:$0xff]  ;;  %s9156_s3 = sshra.s32 %s8541_s28, 4  ;;  %s9162_s11 = scalar_lea.hbm %s11503_s6, 16  ;;  %s9157_s3 = int_to_ptr.hbm [resolvable:$true] %s9156_s3 }
0x1cb6   : > { %s9158_s0 = scalar_lea.hbm %s9157_s3, 8  ;;  %p9163_p2 = scmp.lt.s32.totalorder %s9157_s3, %s11503_s6 }
0x1cb7   : > { %p9159_p11 = scmp.ne.s32.totalorder %s9157_s3, %s9158_s0  ;;  %p9164_p10 = scmp.lt.s32.totalorder %s9162_s11, %s9158_s0 }
0x1cb9   : > { %p9160_p13 = pnand %p9159_p11, %p9510_p5  ;;  %p9165_p9 = por %p9164_p10, %p9163_p2 }
0x1cbb   : > { %p9161_p1 = pneg %p9160_p13 }
0x1cbd   : > { %p9166_p12 = pnand %p9165_p9, %p9161_p1 }
0x1d1d   : > { %v8483_v52 = vpop.xlane.xlu0 %8482 }
0x1d1e   : > { %v8484_v19 = vmul.f32 %v8483_v52, %v8477_v39 }
0x1d20   : > { %v8485_v18 = vadd.f32 1e-05, %v8484_v19 }
0x1d22   : > { %8960 = vrsqrt.f32 %v8485_v18  ;;  %vm8492_vm2 = vweird.f32 %v8485_v18 }
0x1d28   : > { %v8961_v3 = vpop.eup %8960 }
0x1d29   : > { %v8487_v42 = vmul.f32 %v8961_v3, %v8485_v18  ;;  %vm8493_vm1 = vweird.f32 %v8961_v3 }
0x1d2a   : > { %vm8494_vm7 = vmor %vm8492_vm2, %vm8493_vm1 }
0x1d2b   : > { %v8488_v34 = vmul.f32 %v8961_v3, %v8487_v42 }
0x1d2d   : > { %v8489_v51 = vmul.f32 0.5, %v8488_v34 }
0x1d2f   : > { %v8490_v55 = vsub.f32 1.5, %v8489_v51 }
0x1d31   : > { %v8491_v14 = vmul.f32 %v8961_v3, %v8490_v55 }
0x1d33   : > { %v8495_v29 = vsel %vm8494_vm7, %v8961_v3, %v8491_v14 }
0x1d34   : > { %v8496_v7 = vmul.f32 %v8495_v29, %v8479_v45 }
0x1d36   : > { %v8500_v56 = vmul.f32 %v8908_v37, %v8496_v7 }
0x1d38   : > { %v8504_v31 = vadd.f32 %v8909_v12, %v8500_v56 }
0x1d3a   : > { %8505 = vst.msk [vmem:[%s1239_s24] sm:$0xff] %vm8467_vm5, %v8504_v31 }
0x1d3b   : > { %9169 = shalt.err (!%p9166_p12)
}
0x1d3c   : > { %8768 = dma.vmem_to_hbm [thread:$0]  (%p9510_p5), %s8539_s22, 128, %s8541_s28, %s8512_s2  }
0x1d3d PF: > { %s11507_s18 = sld [smem:[#allocation47_spill]] }
0x1d3e   : > { %s11508_s27 = sld [smem:[#allocation45_spill]] }
0x1d43   : > { %p8804_p0 = scmp.ge.s32.totalorder %s11507_s18, 2 }
0x1d44   : > { %s8552_s1 = sand.u32 1, %s11508_s27  }
0x1d45   : > { %p8788_p3 = pnand %p8804_p0, %p9514_p6  ;;  %s8553_s24 = scalar_lea.sflag [#allocation4], %s8552_s1 }
0x1d47   : > { %p8789_p4 = pneg %p8788_p3 }
0x1d49   : > { %9199 = dma.done.wait (%p8789_p4), %s8553_s24, 128  }
0x1d4a   : > { %9201 = vsyncadd (%p8789_p4), %s8553_s24, 4294967168  ;;  %s8563_s3 = scalar_lea.sflag [#allocation13], %s8552_s1 }
0x1d4b   : > { %9203 = dma.done.wait (%p8789_p4), %s8563_s3, 128  }
0x1d4c   : > { %9205 = vsyncadd (%p8789_p4), %s8563_s3, 4294967168  ;;  %s11510_s22 = sld [smem:[#allocation48_spill]]  ;;  %s11513_s15 = smov %s9212_s16 }
0x1d4d   : > { %s11511_s0 = sld [smem:[#allocation46_spill]] }
0x1d4e   : > { %s11512_s18 = sld [smem:[#allocation49_spill]] }
0x1d52   : > { %p94_p5 = scmp.ge.s32.totalorder %s11510_s22, 4  }
0x1d53   : > { %s11514_s16 = smov %s11511_s0 }
0x1d54   :  { %96 = sbr.rel (!%p94_p5) target bundleno = 77 (0x4d), region = 279 }
0x1d59   :  { %8569 = vsyncpa [#allocation3], 1 }
0x1d5a   :  { %8571 = vsyncpa [#allocation3 + $0x1], 1 }
0x1d5b   :  { %8572 = vsyncpa [#allocation6], 1 }
0x1d5c   :  { %8573 = vsyncpa [#allocation9], 1 }
0x1d5d   :  { %8574 = vsyncpa [#allocation4], 1 }
0x1d5e   :  { %8576 = vsyncpa [#allocation4 + $0x1], 1 }
0x1d5f   :  { %8577 = vsyncpa [#allocation13], 1 }
0x1d60   :  { %8579 = vsyncpa [#allocation13 + $0x1], 1 }

</bundles_post_ra>
